<compile_context>
chip_gen: v7x
topology: tpu7x:2x2x1
jax: 0.10.0
libtpu: 0.0.40
codegen_flags: <defaults>
</compile_context>

<pallas_src>
import functools
import math

import jax
import jax.numpy as jnp
from jax.experimental import pallas as pl
from jax.experimental.pallas import tpu as pltpu


def _silu(x):
    return x * jax.nn.sigmoid(x)


# --------------------------------- kernel -----------------------------------

def effblock_kernel(x_ref, w1_ref, w3_ref, cols_ref, se1_ref, se2_ref, o_ref,
                    *, ks, compute_dtype):
    f32 = jnp.float32
    cdt = compute_dtype
    rows_inner = w1_ref.shape[0]          # tb * inner_dim
    rows_out = w3_ref.shape[0]            # tb * in_ch
    L = x_ref.shape[1]
    pad = ks // 2

    # Static views into the merged column pack: [b1 | b2 | b3 | taps k=0..ks-1]
    b1 = cols_ref[0:rows_inner, :]
    b2 = cols_ref[rows_inner:2 * rows_inner, :]
    b3 = cols_ref[2 * rows_inner:2 * rows_inner + rows_out, :]
    t0 = 2 * rows_inner + rows_out

    def tap(k):
        return cols_ref[t0 + k * rows_inner: t0 + (k + 1) * rows_inner, :]

    x = x_ref[...].astype(cdt)            # (tb*Cin, L), lane-dense

    # ---- 1x1 conv (BN1 scale already folded into w1) + bias + SiLU ----------
    h = jnp.dot(w1_ref[...], x, preferred_element_type=f32)   # (tb*inner, L) f32
    h = _silu((h + b1).astype(cdt))

    # ---- depthwise 'same' conv: lane rolls (XLU) + edge masks ---------------
    # Tap accumulation stays f32 (taps are f32 columns) even when cdt is bf16.
    lane = jax.lax.broadcasted_iota(jnp.int32, (1, L), 1)
    dw = h * tap(pad)                                          # center tap, f32
    for k in range(ks):                                        # static small loop
        d = k - pad
        if d == 0:
            continue
        rolled = pltpu.roll(h, shift=(-d) % L, axis=1)         # rolled[:, l] == h[:, l+d]
        valid = (lane < (L - d)) if d > 0 else (lane >= (-d))
        dw = dw + jnp.where(valid, rolled, 0) * tap(k)
    h = _silu((dw + b2).astype(cdt))                           # (tb*inner, L) cdt

    # ---- Squeeze-Excitation, computed in "row space" ------------------------
    # Mean over L via a transposed-RHS dot (MXU; contraction over lanes) so the
    # per-(batch, channel) means land on the lane axis; the two tiny M=1
    # matmuls use block-diagonal (per-batch) SE weights; gate g is a row.
    inv_l = jnp.full((1, L), 1.0 / L, dtype=cdt)
    y_row = jax.lax.dot_general(inv_l, h, (((1,), (1,)), ((), ())),
                                preferred_element_type=f32)    # (1, tb*inner)
    wse1 = se1_ref[0:rows_inner, :]                            # (tb*inner, tb*se)
    bse1 = se1_ref[rows_inner:rows_inner + 1, :]               # (1, tb*se)
    z = _silu(jnp.dot(y_row, wse1, preferred_element_type=f32) + bse1)
    se_cols = wse1.shape[1]
    wse2 = se2_ref[0:se_cols, :]                               # (tb*se, tb*inner)
    bse2 = se2_ref[se_cols:se_cols + 1, :]                     # (1, tb*inner)
    g_row = jax.nn.sigmoid(jnp.dot(z, wse2, preferred_element_type=f32) + bse2)

    # ---- 1x1 conv (inner -> in_ch): SE gate folded into w3's columns --------
    # sum_i w3[o,i] * (g[i] * h[i,l]) == sum_i (w3[o,i] * g[i]) * h[i,l]
    # Gate fold done in f32 (w3 shipped f32), cast to the MXU dtype last.
    w3s = (w3_ref[...] * g_row).astype(cdt)
    out = jnp.dot(w3s, h, preferred_element_type=f32)          # (tb*Cin, L) f32
    o_ref[...] = _silu(out + b3).astype(o_ref.dtype)


# --------------------------------- wrapper ----------------------------------

def effblock_forward(x_ncl, packed, *, ks, tb, compute_dtype=jnp.float32):
    """x_ncl: (B, C, L) in PyTorch Conv1d layout.  packed = pack_params(..., tb=tb)."""
    B, Cin, L = x_ncl.shape
    assert B % tb == 0, "batch must be divisible by the batch tile tb"
    assert ks % 2 == 1, "'same' depthwise conv implemented for odd kernel sizes"
    assert L % 128 == 0, "sequence length must be lane-aligned (multiple of 128)"
    grid = (B // tb,)

    # Metadata-only reshape of contiguous NCL data: the kernel sees lane-dense
    # (rows, L) blocks and stores them back the same way.
    x2d = x_ncl.reshape(B * Cin, L)

    def full_spec(arr):
        nd = arr.ndim
        return pl.BlockSpec(arr.shape, lambda i, _n=nd: (0,) * _n)

    in_specs = [pl.BlockSpec((tb * Cin, L), lambda i: (i, 0))]
    in_specs += [full_spec(a) for a in packed]

    out2d = pl.pallas_call(
        functools.partial(effblock_kernel, ks=ks, compute_dtype=compute_dtype),
        out_shape=jax.ShapeDtypeStruct((B * Cin, L), x_ncl.dtype),
        grid_spec=pltpu.PrefetchScalarGridSpec(
            num_scalar_prefetch=0,
            grid=grid,
            in_specs=in_specs,
            out_specs=pl.BlockSpec((tb * Cin, L), lambda i: (i, 0)),
        ),
        compiler_params=pltpu.CompilerParams(
            dimension_semantics=("parallel",),   # >=2 grid steps feed both v7x TCs
            vmem_limit_bytes=32 * 1024 * 1024,
        ),
    )(x2d, *packed)
    return out2d.reshape(B, Cin, L)


# --------------------------- per-chip configuration ---------------------------

def _device_kind():
    try:
        return jax.devices()[0].device_kind.lower()
    except Exception:
        return ""


def pick_batch_tile(batch):
    """grid=(1,) on single-TC chips (v5e/v6e); two steps on v7x (2 TCs/chip)."""
    kind = _device_kind()
    if ("v7" in kind or "7x" in kind) and batch % 2 == 0:
        return batch // 2
    return batch


def pick_low_precision_compute():
    """bf16 elementwise only where the VPU/EUP support it (v6e / v7x)."""
    kind = _device_kind()
    if any(t in kind for t in ("v6", "v7", "7x")):
        return jnp.bfloat16
    return jnp.float32                    # v5e & older: f32 activations end-to-end


# ------------------------------ parameter setup ------------------------------

def fold_bn(gamma, beta, mean, var, eps=1e-5):
    scale = gamma / jnp.sqrt(var + eps)
    return scale, beta - mean * scale


def init_raw_params(key, in_ch, inner_dim, se_hidden, ks):
    keys = iter(jax.random.split(key, 24))

    def nrm(shape, fan_in):
        return jax.random.normal(next(keys), shape, jnp.float32) / math.sqrt(fan_in)

    def bn(c):
        gamma = 1.0 + 0.1 * jax.random.normal(next(keys), (c,), jnp.float32)
        beta = 0.1 * jax.random.normal(next(keys), (c,), jnp.float32)
        mean = 0.1 * jax.random.normal(next(keys), (c,), jnp.float32)
        var = 1.0 + 0.1 * jnp.abs(jax.random.normal(next(keys), (c,), jnp.float32))
        return fold_bn(gamma, beta, mean, var)

    p = {}
    p['w1'] = nrm((inner_dim, in_ch), in_ch)             # Conv1d k=1 weight (out, in)
    p['bn1_s'], p['bn1_b'] = bn(inner_dim)
    p['wdw'] = nrm((inner_dim, ks), ks)                  # depthwise taps (channel, k)
    p['bn2_s'], p['bn2_b'] = bn(inner_dim)
    p['wse1'] = nrm((se_hidden, inner_dim), inner_dim)   # SE Linear1 (out, in) + bias
    p['bse1'] = 0.1 * jax.random.normal(next(keys), (se_hidden,), jnp.float32)
    p['wse2'] = nrm((inner_dim, se_hidden), se_hidden)   # SE Linear2 (out, in) + bias
    p['bse2'] = 0.1 * jax.random.normal(next(keys), (inner_dim,), jnp.float32)
    p['w3'] = nrm((in_ch, inner_dim), inner_dim)         # Conv1d k=1 weight (out, in)
    p['bn3_s'], p['bn3_b'] = bn(in_ch)
    return p


def pack_params(p, *, tb, weight_dtype=jnp.float32):
    """One-time prep of kernel-ready params for a batch tile of size tb.

    * BN scales are folded into w1 / w3 rows and into the depthwise taps here
      (in f32; cast to weight_dtype last).
    * 1x1-conv and SE weights become block-diagonal (kron(I_tb, W)) so a single
      matmul covers the whole batch tile.  (The kron grows as tb^2 — fine at
      these sizes; for much larger channel counts switch to a channels-in-
      sublanes layout instead.)
    * All per-channel bias/tap columns are merged into ONE (R, 1) f32 buffer;
      each SE weight carries its bias as an appended row.
    """
    f32 = jnp.float32
    eye = jnp.eye(tb, dtype=f32)

    def blockdiag(w):
        return jnp.kron(eye, w.astype(f32))

    def col(v):
        return jnp.tile(v.astype(f32).reshape(-1, 1), (tb, 1))

    # Fold BN scales into weights (f32).
    w1 = p['w1'].astype(f32) * p['bn1_s'][:, None]
    w3 = p['w3'].astype(f32) * p['bn3_s'][:, None]
    wdw = p['wdw'].astype(f32) * p['bn2_s'][:, None]
    ks = wdw.shape[1]

    w1_blk = blockdiag(w1).astype(weight_dtype)     # (tb*inner, tb*in_ch)
    w3_blk = blockdiag(w3)                          # (tb*in_ch, tb*inner) f32 (gate folded in-kernel)

    # Merged column pack: [b1 | b2 | b3 | taps k=0..ks-1], all (rows, 1) f32.
    cols = jnp.concatenate(
        [col(p['bn1_b']), col(p['bn2_b']), col(p['bn3_b'])]
        + [col(wdw[:, k]) for k in range(ks)], axis=0)

    def se_pack(w, b):
        # transposed block-diagonal SE weight with its bias appended as a row.
        wt = blockdiag(w).T                                   # (tb*in, tb*out)
        brow = jnp.tile(b.astype(f32), (tb,)).reshape(1, -1)  # (1, tb*out)
        padrows = jnp.zeros((7, wt.shape[1]), f32)            # keep row count 8-aligned
        return jnp.concatenate([wt, brow, padrows], axis=0)

    se1 = se_pack(p['wse1'], p['bse1'])             # (tb*inner + 8, tb*se)
    se2 = se_pack(p['wse2'], p['bse2'])             # (tb*se + 8, tb*inner)

    return (w1_blk, w3_blk, cols, se1, se2)


# --------------------------------- reference ---------------------------------

def reference_forward(x_ncl, p, *, ks):
    def ch(v):
        return v[None, :, None]
    L = x_ncl.shape[-1]
    pad = ks // 2
    h = jnp.einsum('oc,bcl->bol', p['w1'], x_ncl)
    h = _silu(h * ch(p['bn1_s']) + ch(p['bn1_b']))
    hp = jnp.pad(h, ((0, 0), (0, 0), (pad, pad)))
    dw = sum(hp[:, :, k:k + L] * p['wdw'][None, :, k, None] for k in range(ks))
    h = _silu(dw * ch(p['bn2_s']) + ch(p['bn2_b']))
    y = h.mean(axis=2)                                       # (B, inner)
    z = _silu(y @ p['wse1'].T + p['bse1'])
    g = jax.nn.sigmoid(z @ p['wse2'].T + p['bse2'])
    h = h * g[:, :, None]
    out = jnp.einsum('oc,bcl->bol', p['w3'], h)
    return _silu(out * ch(p['bn3_s']) + ch(p['bn3_b']))


# ----------------------------------- main ------------------------------------

if __name__ == "__main__":
    # EffBlock(in_ch=8, ks=5, resize_factor=4, activation=nn.SiLU)
    B, in_ch, L = 8, 8, 128
    ks_conv = 5
    resize_factor = 4
    inner_dim = in_ch * resize_factor            # 32
    se_hidden = inner_dim // resize_factor       # se_reduction defaults to resize_factor -> 8

    key = jax.random.PRNGKey(0)
    kx, kp = jax.random.split(key)
    x = jax.random.normal(kx, (B, in_ch, L), jnp.float32)    # NCL, like PyTorch
    raw = init_raw_params(kp, in_ch, inner_dim, se_hidden, ks_conv)
    ref = reference_forward(x, raw, ks=ks_conv)

    tb = pick_batch_tile(B)                      # grid=(1,) on v5e/v6e, (2,) on v7x

    # ---- f32 path (all chips) ------------------------------------------------
    packed_f32 = pack_params(raw, tb=tb, weight_dtype=jnp.float32)
    out_f32 = jax.block_until_ready(
        effblock_forward(x, packed_f32, ks=ks_conv, tb=tb,
                         compute_dtype=jnp.float32))
    assert out_f32.shape == (B, in_ch, L)
    assert jnp.allclose(out_f32, ref, atol=1e-2, rtol=1e-2), \
        "f32 kernel mismatch vs reference"

    # ---- reduced-precision path: bf16 weights everywhere; bf16 activations /
    # elementwise only on chips with a bf16 VPU/EUP (v6e/v7x), f32 on v5e. ----
    cdt = pick_low_precision_compute()
    packed_lp = pack_params(raw, tb=tb, weight_dtype=jnp.bfloat16)
    x_lp = x.astype(cdt)
    out_lp = jax.block_until_ready(
        effblock_forward(x_lp, packed_lp, ks=ks_conv, tb=tb, compute_dtype=cdt))
    assert out_lp.shape == (B, in_ch, L) and out_lp.dtype == cdt
    mean_err = float(jnp.mean(jnp.abs(out_lp.astype(jnp.float32) - ref)))
    assert mean_err < 4e-2, f"reduced-precision kernel deviates too much: {mean_err}"

    print("KERNEL_OK")
</pallas_src>

<mosaic_0001>
module attributes {stable_mosaic.version = 11 : i64} {
  func.func @effblock_kernel(%arg0: i32, %arg1: memref<64x128xf32, #tpu.memory_space<vmem>>, %arg2: memref<256x64xf32, #tpu.memory_space<vmem>>, %arg3: memref<64x256xf32, #tpu.memory_space<vmem>>, %arg4: memref<1856x1xf32, #tpu.memory_space<vmem>>, %arg5: memref<264x64xf32, #tpu.memory_space<vmem>>, %arg6: memref<72x256xf32, #tpu.memory_space<vmem>>, %arg7: memref<64x128xf32, #tpu.memory_space<vmem>>) attributes {dimension_semantics = [#tpu.dimension_semantics<parallel>], iteration_bounds = array<i64: 1>, scalar_prefetch = 0 : i64, scratch_operands = 0 : i64, tpu.core_type = #tpu.core_type<tc>, window_params = [{transform_indices = @transform_0, window_bounds = array<i64: 64, 128>}, {pipeline_mode = #tpu.pipeline_mode<synchronous>, transform_indices = @transform_1, window_bounds = array<i64: 256, 64>}, {pipeline_mode = #tpu.pipeline_mode<synchronous>, transform_indices = @transform_2, window_bounds = array<i64: 64, 256>}, {pipeline_mode = #tpu.pipeline_mode<synchronous>, transform_indices = @transform_3, window_bounds = array<i64: 1856, 1>}, {pipeline_mode = #tpu.pipeline_mode<synchronous>, transform_indices = @transform_4, window_bounds = array<i64: 264, 64>}, {pipeline_mode = #tpu.pipeline_mode<synchronous>, transform_indices = @transform_5, window_bounds = array<i64: 72, 256>}, {transform_indices = @transform_6, window_bounds = array<i64: 64, 128>}]} {
    %c0 = arith.constant 0 : index
    %c0_0 = arith.constant 0 : index
    %0 = vector.load %arg4[%c0, %c0_0] : memref<1856x1xf32, #tpu.memory_space<vmem>>, vector<256x1xf32>
    %c256 = arith.constant 256 : index
    %c0_1 = arith.constant 0 : index
    %1 = vector.load %arg4[%c256, %c0_1] : memref<1856x1xf32, #tpu.memory_space<vmem>>, vector<256x1xf32>
    %c512 = arith.constant 512 : index
    %c0_2 = arith.constant 0 : index
    %2 = vector.load %arg4[%c512, %c0_2] : memref<1856x1xf32, #tpu.memory_space<vmem>>, vector<64x1xf32>
    %c0_3 = arith.constant 0 : index
    %c0_4 = arith.constant 0 : index
    %3 = vector.load %arg1[%c0_3, %c0_4] : memref<64x128xf32, #tpu.memory_space<vmem>>, vector<64x128xf32>
    %c0_5 = arith.constant 0 : index
    %c0_6 = arith.constant 0 : index
    %4 = vector.load %arg2[%c0_5, %c0_6] : memref<256x64xf32, #tpu.memory_space<vmem>>, vector<256x64xf32>
    %cst = arith.constant dense<0.000000e+00> : vector<256x128xf32>
    %5 = tpu.matmul %4, %3, %cst {dimension_numbers = #tpu.dot_dimension_numbers<[1], [0], [0], [1], [0, 0, 1, 1], [], []>} : vector<256x64xf32>, vector<64x128xf32>, vector<256x128xf32> -> vector<256x128xf32>
    %6 = vector.broadcast %0 : vector<256x1xf32> to vector<256x128xf32>
    %7 = arith.addf %5, %6 : vector<256x128xf32>
    %8 = arith.negf %7 : vector<256x128xf32>
    %9 = math.exp %8 : vector<256x128xf32>
    %cst_7 = arith.constant 1.000000e+00 : f32
    %10 = vector.broadcast %cst_7 : f32 to vector<256x128xf32>
    %11 = arith.addf %10, %9 : vector<256x128xf32>
    %12 = arith.divf %10, %11 : vector<256x128xf32>
    %13 = arith.mulf %7, %12 : vector<256x128xf32>
    %14 = tpu.iota {dimensions = array<i32: 1>} : vector<1x128xi32>
    %c1088 = arith.constant 1088 : index
    %c0_8 = arith.constant 0 : index
    %15 = vector.load %arg4[%c1088, %c0_8] : memref<1856x1xf32, #tpu.memory_space<vmem>>, vector<256x1xf32>
    %16 = vector.broadcast %15 : vector<256x1xf32> to vector<256x128xf32>
    %17 = arith.mulf %13, %16 : vector<256x128xf32>
    %c2_i32 = arith.constant 2 : i32
    %18 = tpu.dynamic_rotate %13 by %c2_i32 dim 1 : vector<256x128xf32>, i32 -> vector<256x128xf32>
    %c2_i32_9 = arith.constant 2 : i32
    %19 = vector.broadcast %c2_i32_9 : i32 to vector<1x128xi32>
    %20 = arith.cmpi sge, %14, %19 : vector<1x128xi32>
    %c0_i32 = arith.constant 0 : i32
    %21 = arith.sitofp %c0_i32 : i32 to f32
    %22 = vector.shape_cast %20 : vector<1x128xi1> to vector<1x128xi1>
    %23 = vector.broadcast %22 : vector<1x128xi1> to vector<256x128xi1>
    %24 = vector.broadcast %21 : f32 to vector<256x128xf32>
    %25 = arith.select %23, %18, %24 : vector<256x128xi1>, vector<256x128xf32>
    %c576 = arith.constant 576 : index
    %c0_10 = arith.constant 0 : index
    %26 = vector.load %arg4[%c576, %c0_10] : memref<1856x1xf32, #tpu.memory_space<vmem>>, vector<256x1xf32>
    %27 = vector.broadcast %26 : vector<256x1xf32> to vector<256x128xf32>
    %28 = arith.mulf %25, %27 : vector<256x128xf32>
    %29 = arith.addf %17, %28 : vector<256x128xf32>
    %c1_i32 = arith.constant 1 : i32
    %30 = tpu.dynamic_rotate %13 by %c1_i32 dim 1 : vector<256x128xf32>, i32 -> vector<256x128xf32>
    %c1_i32_11 = arith.constant 1 : i32
    %31 = vector.broadcast %c1_i32_11 : i32 to vector<1x128xi32>
    %32 = arith.cmpi sge, %14, %31 : vector<1x128xi32>
    %c0_i32_12 = arith.constant 0 : i32
    %33 = arith.sitofp %c0_i32_12 : i32 to f32
    %34 = vector.shape_cast %32 : vector<1x128xi1> to vector<1x128xi1>
    %35 = vector.broadcast %34 : vector<1x128xi1> to vector<256x128xi1>
    %36 = vector.broadcast %33 : f32 to vector<256x128xf32>
    %37 = arith.select %35, %30, %36 : vector<256x128xi1>, vector<256x128xf32>
    %c832 = arith.constant 832 : index
    %c0_13 = arith.constant 0 : index
    %38 = vector.load %arg4[%c832, %c0_13] : memref<1856x1xf32, #tpu.memory_space<vmem>>, vector<256x1xf32>
    %39 = vector.broadcast %38 : vector<256x1xf32> to vector<256x128xf32>
    %40 = arith.mulf %37, %39 : vector<256x128xf32>
    %41 = arith.addf %29, %40 : vector<256x128xf32>
    %c127_i32 = arith.constant 127 : i32
    %42 = tpu.dynamic_rotate %13 by %c127_i32 dim 1 : vector<256x128xf32>, i32 -> vector<256x128xf32>
    %c127_i32_14 = arith.constant 127 : i32
    %43 = vector.broadcast %c127_i32_14 : i32 to vector<1x128xi32>
    %44 = arith.cmpi slt, %14, %43 : vector<1x128xi32>
    %c0_i32_15 = arith.constant 0 : i32
    %45 = arith.sitofp %c0_i32_15 : i32 to f32
    %46 = vector.shape_cast %44 : vector<1x128xi1> to vector<1x128xi1>
    %47 = vector.broadcast %46 : vector<1x128xi1> to vector<256x128xi1>
    %48 = vector.broadcast %45 : f32 to vector<256x128xf32>
    %49 = arith.select %47, %42, %48 : vector<256x128xi1>, vector<256x128xf32>
    %c1344 = arith.constant 1344 : index
    %c0_16 = arith.constant 0 : index
    %50 = vector.load %arg4[%c1344, %c0_16] : memref<1856x1xf32, #tpu.memory_space<vmem>>, vector<256x1xf32>
    %51 = vector.broadcast %50 : vector<256x1xf32> to vector<256x128xf32>
    %52 = arith.mulf %49, %51 : vector<256x128xf32>
    %53 = arith.addf %41, %52 : vector<256x128xf32>
    %c126_i32 = arith.constant 126 : i32
    %54 = tpu.dynamic_rotate %13 by %c126_i32 dim 1 : vector<256x128xf32>, i32 -> vector<256x128xf32>
    %c126_i32_17 = arith.constant 126 : i32
    %55 = vector.broadcast %c126_i32_17 : i32 to vector<1x128xi32>
    %56 = arith.cmpi slt, %14, %55 : vector<1x128xi32>
    %c0_i32_18 = arith.constant 0 : i32
    %57 = arith.sitofp %c0_i32_18 : i32 to f32
    %58 = vector.shape_cast %56 : vector<1x128xi1> to vector<1x128xi1>
    %59 = vector.broadcast %58 : vector<1x128xi1> to vector<256x128xi1>
    %60 = vector.broadcast %57 : f32 to vector<256x128xf32>
    %61 = arith.select %59, %54, %60 : vector<256x128xi1>, vector<256x128xf32>
    %c1600 = arith.constant 1600 : index
    %c0_19 = arith.constant 0 : index
    %62 = vector.load %arg4[%c1600, %c0_19] : memref<1856x1xf32, #tpu.memory_space<vmem>>, vector<256x1xf32>
    %63 = vector.broadcast %62 : vector<256x1xf32> to vector<256x128xf32>
    %64 = arith.mulf %61, %63 : vector<256x128xf32>
    %65 = arith.addf %53, %64 : vector<256x128xf32>
    %66 = vector.broadcast %1 : vector<256x1xf32> to vector<256x128xf32>
    %67 = arith.addf %65, %66 : vector<256x128xf32>
    %68 = arith.negf %67 : vector<256x128xf32>
    %69 = math.exp %68 : vector<256x128xf32>
    %cst_20 = arith.constant 1.000000e+00 : f32
    %70 = vector.broadcast %cst_20 : f32 to vector<256x128xf32>
    %71 = arith.addf %70, %69 : vector<256x128xf32>
    %72 = arith.divf %70, %71 : vector<256x128xf32>
    %73 = arith.mulf %67, %72 : vector<256x128xf32>
    %cst_21 = arith.constant 7.812500e-03 : f32
    %74 = vector.broadcast %cst_21 : f32 to vector<1x128xf32>
    %cst_22 = arith.constant dense<0.000000e+00> : vector<1x256xf32>
    %75 = tpu.matmul %74, %73, %cst_22 {dimension_numbers = #tpu.dot_dimension_numbers<[1], [1], [0], [0], [0, 0, 1, 0], [], []>} : vector<1x128xf32>, vector<256x128xf32>, vector<1x256xf32> -> vector<1x256xf32>
    %c0_23 = arith.constant 0 : index
    %c0_24 = arith.constant 0 : index
    %76 = vector.load %arg5[%c0_23, %c0_24] : memref<264x64xf32, #tpu.memory_space<vmem>>, vector<256x64xf32>
    %c256_25 = arith.constant 256 : index
    %c0_26 = arith.constant 0 : index
    %77 = vector.load %arg5[%c256_25, %c0_26] : memref<264x64xf32, #tpu.memory_space<vmem>>, vector<1x64xf32>
    %cst_27 = arith.constant dense<0.000000e+00> : vector<1x64xf32>
    %78 = tpu.matmul %75, %76, %cst_27 {dimension_numbers = #tpu.dot_dimension_numbers<[1], [0], [0], [1], [0, 0, 1, 1], [], []>} : vector<1x256xf32>, vector<256x64xf32>, vector<1x64xf32> -> vector<1x64xf32>
    %79 = arith.addf %78, %77 : vector<1x64xf32>
    %80 = arith.negf %79 : vector<1x64xf32>
    %81 = math.exp %80 : vector<1x64xf32>
    %cst_28 = arith.constant 1.000000e+00 : f32
    %82 = vector.broadcast %cst_28 : f32 to vector<1x64xf32>
    %83 = arith.addf %82, %81 : vector<1x64xf32>
    %84 = arith.divf %82, %83 : vector<1x64xf32>
    %85 = arith.mulf %79, %84 : vector<1x64xf32>
    %c0_29 = arith.constant 0 : index
    %c0_30 = arith.constant 0 : index
    %86 = vector.load %arg6[%c0_29, %c0_30] : memref<72x256xf32, #tpu.memory_space<vmem>>, vector<64x256xf32>
    %c64 = arith.constant 64 : index
    %c0_31 = arith.constant 0 : index
    %87 = vector.load %arg6[%c64, %c0_31] : memref<72x256xf32, #tpu.memory_space<vmem>>, vector<1x256xf32>
    %cst_32 = arith.constant dense<0.000000e+00> : vector<1x256xf32>
    %88 = tpu.matmul %85, %86, %cst_32 {dimension_numbers = #tpu.dot_dimension_numbers<[1], [0], [0], [1], [0, 0, 1, 1], [], []>} : vector<1x64xf32>, vector<64x256xf32>, vector<1x256xf32> -> vector<1x256xf32>
    %89 = arith.addf %88, %87 : vector<1x256xf32>
    %90 = arith.negf %89 : vector<1x256xf32>
    %91 = math.exp %90 : vector<1x256xf32>
    %cst_33 = arith.constant 1.000000e+00 : f32
    %92 = vector.broadcast %cst_33 : f32 to vector<1x256xf32>
    %93 = arith.addf %92, %91 : vector<1x256xf32>
    %94 = arith.divf %92, %93 : vector<1x256xf32>
    %c0_34 = arith.constant 0 : index
    %c0_35 = arith.constant 0 : index
    %95 = vector.load %arg3[%c0_34, %c0_35] : memref<64x256xf32, #tpu.memory_space<vmem>>, vector<64x256xf32>
    %96 = vector.broadcast %94 : vector<1x256xf32> to vector<64x256xf32>
    %97 = arith.mulf %95, %96 : vector<64x256xf32>
    %cst_36 = arith.constant dense<0.000000e+00> : vector<64x128xf32>
    %98 = tpu.matmul %97, %73, %cst_36 {dimension_numbers = #tpu.dot_dimension_numbers<[1], [0], [0], [1], [0, 0, 1, 1], [], []>} : vector<64x256xf32>, vector<256x128xf32>, vector<64x128xf32> -> vector<64x128xf32>
    %99 = vector.broadcast %2 : vector<64x1xf32> to vector<64x128xf32>
    %100 = arith.addf %98, %99 : vector<64x128xf32>
    %101 = arith.negf %100 : vector<64x128xf32>
    %102 = math.exp %101 : vector<64x128xf32>
    %cst_37 = arith.constant 1.000000e+00 : f32
    %103 = vector.broadcast %cst_37 : f32 to vector<64x128xf32>
    %104 = arith.addf %103, %102 : vector<64x128xf32>
    %105 = arith.divf %103, %104 : vector<64x128xf32>
    %106 = arith.mulf %100, %105 : vector<64x128xf32>
    %c0_38 = arith.constant 0 : index
    %c0_39 = arith.constant 0 : index
    %107 = vector.load %arg7[%c0_38, %c0_39] : memref<64x128xf32, #tpu.memory_space<vmem>>, vector<64x128xf32>
    tpu.vector_store %arg7[%c0_38, %c0_39], %106 {strides = array<i32>} : memref<64x128xf32, #tpu.memory_space<vmem>>, vector<64x128xf32>,
    return
  }
  func.func @transform_0(%arg0: i32) -> (i32, i32) {
    %c0_i32 = arith.constant 0 : i32
    %c0_i32_0 = arith.constant 0 : i32
    return %arg0, %c0_i32 : i32, i32
  }
  func.func @transform_1(%arg0: i32) -> (i32, i32) {
    %c0_i32 = arith.constant 0 : i32
    %c0_i32_0 = arith.constant 0 : i32
    %c0_i32_1 = arith.constant 0 : i32
    return %c0_i32, %c0_i32_0 : i32, i32
  }
  func.func @transform_2(%arg0: i32) -> (i32, i32) {
    %c0_i32 = arith.constant 0 : i32
    %c0_i32_0 = arith.constant 0 : i32
    %c0_i32_1 = arith.constant 0 : i32
    return %c0_i32, %c0_i32_0 : i32, i32
  }
  func.func @transform_3(%arg0: i32) -> (i32, i32) {
    %c0_i32 = arith.constant 0 : i32
    %c0_i32_0 = arith.constant 0 : i32
    %c0_i32_1 = arith.constant 0 : i32
    return %c0_i32, %c0_i32_0 : i32, i32
  }
  func.func @transform_4(%arg0: i32) -> (i32, i32) {
    %c0_i32 = arith.constant 0 : i32
    %c0_i32_0 = arith.constant 0 : i32
    %c0_i32_1 = arith.constant 0 : i32
    return %c0_i32, %c0_i32_0 : i32, i32
  }
  func.func @transform_5(%arg0: i32) -> (i32, i32) {
    %c0_i32 = arith.constant 0 : i32
    %c0_i32_0 = arith.constant 0 : i32
    %c0_i32_1 = arith.constant 0 : i32
    return %c0_i32, %c0_i32_0 : i32, i32
  }
  func.func @transform_6(%arg0: i32) -> (i32, i32) {
    %c0_i32 = arith.constant 0 : i32
    %c0_i32_0 = arith.constant 0 : i32
    return %arg0, %c0_i32 : i32, i32
  }
}

</mosaic_0001>

<bundles_post_ra>
// kernel: tpu_custom_call.1
= control target key start
LH: loop header
LB: loop body
LE: loop exit
PB: predicated region body
PF: predicated region fallthrough
CT: control target
= control target key end

     0   :  { %v4267_v3 = vmov 0   ;;  %vm296_vm0 = vcmask 523264   ;;  %s7067_s0 = inlined_call_operand.vmem [shape: f32[64,128], index: 0, kind: input, shape index: {}]   ;;  %s7068_s1 = inlined_call_operand.vmem [shape: f32[256,64], index: 1, kind: input, shape index: {}]   ;;  %s7069_s2 = inlined_call_operand.vmem [shape: f32[64,256], index: 2, kind: input, shape index: {}]   ;;  %s7070_s3 = inlined_call_operand.vmem [shape: f32[1856,1], index: 3, kind: input, shape index: {}]   ;;  %s7071_s4 = inlined_call_operand.vmem [shape: f32[264,64], index: 4, kind: input, shape index: {}]   ;;  %s7072_s5 = inlined_call_operand.vmem [shape: f32[72,256], index: 5, kind: input, shape index: {}]   ;;  %s7073_s6 = inlined_call_operand.hbm [shape: f32[64,128], index: 6, kind: output, shape index: {}]  }
   0x1   :  { %v40_v0 = vld [vmem:[%s7070_s3 + $0x80] sm:$0xff]  ;;  %3942 = vset.pattern.permute.xlu1 %v4267_v3  ;;  %3941 = vset.pattern.permute.xlu0 %v4267_v3  ;;  %v97_v4 = vld [vmem:[%s7067_s0 + $0x8] sm:$0xff]  ;;  %v98_v6 = vld [vmem:[%s7067_s0 + $0x10] sm:$0xff] }
   0x2   :  { %v24_v1 = vld [vmem:[%s7070_s3] sm:$0xff]  ;;  %218 = vperm.xlu0 %3941, %v40_v0   ;;  %v99_v7 = vld [vmem:[%s7067_s0 + $0x18] sm:$0xff]  ;;  %v41_v8 = vld [vmem:[%s7070_s3 + $0x88] sm:$0xff] }
   0x3   :  { %v96_v2 = vld [vmem:[%s7067_s0] sm:$0xff]  ;;  %138 = vperm.xlu1 %3942, %v24_v1   ;;  %v25_v9 = vld [vmem:[%s7070_s3 + $0x8] sm:$0xff]  ;;  %v3807_v10 = vpack.c.bf16 %v99_v7, %v98_v6  ;;  %v42_v14 = vld [vmem:[%s7070_s3 + $0x90] sm:$0xff] }
   0x4   :  { %v3803_v5 = vpack.c.bf16 %v97_v4, %v96_v2  ;;  %v100_v11 = vld [vmem:[%s7067_s0 + $0x20] sm:$0xff]  ;;  %v101_v12 = vld [vmem:[%s7067_s0 + $0x28] sm:$0xff]  ;;  %v43_v15 = vld [vmem:[%s7070_s3 + $0x98] sm:$0xff] }
   0x5   :  { %v104_v13 = vld [vmem:[%s7068_s1] sm:$0xff]  ;;  %v3811_v16 = vpack.c.bf16 %v101_v12, %v100_v11  ;;  %v102_v17 = vld [vmem:[%s7067_s0 + $0x30] sm:$0xff]  ;;  %v103_v18 = vld [vmem:[%s7067_s0 + $0x38] sm:$0xff] }
   0x6   :  { %3804 = vmatprep.subr.bf16.mxu1 %v3803_v5  ;;  %223 = vperm.xlu0 %3941, %v41_v8   ;;  %v26_v19 = vld [vmem:[%s7070_s3 + $0x10] sm:$0xff]  ;;  %v27_v20 = vld [vmem:[%s7070_s3 + $0x18] sm:$0xff]  ;;  %v3815_v21 = vpack.c.bf16 %v103_v18, %v102_v17  ;;  %v44_v22 = vld [vmem:[%s7070_s3 + $0xa0] sm:$0xff] }
   0x7   :  { %3806 = vmatpush3.bf16.msra.mxu1 %v3803_v5  ;;  %143 = vperm.xlu1 %3942, %v25_v9   ;;  %v45_v23 = vld [vmem:[%s7070_s3 + $0xa8] sm:$0xff]  ;;  %v106_v25 = vld [vmem:[%s7068_s1 + $0x10] sm:$0xff]  ;;  %v28_v26 = vld [vmem:[%s7070_s3 + $0x20] sm:$0xff] }
   0x8   :  { %3808 = vmatprep.subr.bf16.mxu1 %v3807_v10  ;;  %3755 = vmatprep.mubr.msk.f32.mxu1 %vm296_vm0, %v104_v13  ;;  %v105_v24 = vld [vmem:[%s7068_s1 + $0x8] sm:$0xff]  ;;  %v107_v28 = vld [vmem:[%s7068_s1 + $0x18] sm:$0xff]  ;;  %v108_v29 = vld [vmem:[%s7068_s1 + $0x20] sm:$0xff] }
   0x9   :  { %v29_v27 = vld [vmem:[%s7070_s3 + $0x28] sm:$0xff]  ;;  %v46_v30 = vld [vmem:[%s7070_s3 + $0xb0] sm:$0xff]  ;;  %v47_v31 = vld [vmem:[%s7070_s3 + $0xb8] sm:$0xff] }
   0xa   :  { %228 = vperm.xlu0 %3941, %v42_v14   ;;  %v109_v32 = vld [vmem:[%s7068_s1 + $0x28] sm:$0xff]  ;;  %v110_v33 = vld [vmem:[%s7068_s1 + $0x30] sm:$0xff]  ;;  %v31_v35 = vld [vmem:[%s7070_s3 + $0x38] sm:$0xff] }
   0xb   :  { %3810 = vmatpush3.bf16.msra.mxu1 %v3807_v10  ;;  %233 = vperm.xlu1 %3942, %v43_v15   ;;  %v30_v34 = vld [vmem:[%s7070_s3 + $0x30] sm:$0xff]  ;;  %v111_v36 = vld [vmem:[%s7068_s1 + $0x38] sm:$0xff]  ;;  %v112_v37 = vld [vmem:[%s7068_s1 + $0x40] sm:$0xff] }
   0xc   :  { %3812 = vmatprep.subr.bf16.mxu1 %v3811_v16  ;;  %v48_v38 = vld [vmem:[%s7070_s3 + $0xc0] sm:$0xff]  ;;  %v49_v39 = vld [vmem:[%s7070_s3 + $0xc8] sm:$0xff]  ;;  %v114_v41 = vld [vmem:[%s7068_s1 + $0x50] sm:$0xff] }
   0xd   :  { %v113_v40 = vld [vmem:[%s7068_s1 + $0x48] sm:$0xff]  ;;  %v32_v42 = vld [vmem:[%s7070_s3 + $0x40] sm:$0xff]  ;;  %v115_v44 = vld [vmem:[%s7068_s1 + $0x58] sm:$0xff] }
   0xe   :  { %148 = vperm.xlu0 %3941, %v26_v19   ;;  %v33_v43 = vld [vmem:[%s7070_s3 + $0x48] sm:$0xff]  ;;  %v116_v45 = vld [vmem:[%s7068_s1 + $0x60] sm:$0xff]  ;;  %v50_v46 = vld [vmem:[%s7070_s3 + $0xd0] sm:$0xff] }
   0xf   :  { %3814 = vmatpush3.bf16.msra.mxu1 %v3811_v16  ;;  %153 = vperm.xlu1 %3942, %v27_v20   ;;  %v51_v47 = vld [vmem:[%s7070_s3 + $0xd8] sm:$0xff]  ;;  %v117_v48 = vld [vmem:[%s7068_s1 + $0x68] sm:$0xff] }
  0x10   :  { %3816 = vmatprep.subr.bf16.mxu1 %v3815_v21 }
  0x12   :  { %238 = vperm.xlu0 %3941, %v44_v22  }
  0x13   :  { %3818 = vmatpush3.bf16.msra.mxu1 %v3815_v21  ;;  %243 = vperm.xlu1 %3942, %v45_v23  }
  0x16   :  { %3756 = vmatmul.mubr.msk.f32.vlgmr.msra.gmra.mrb[0].mxu1 %vm296_vm0, %v105_v24  ;;  %158 = vperm.xlu0 %3941, %v28_v26  }
  0x17   :  { %3758 = vmatprep.mubr.msk.f32.mxu1 %vm296_vm0, %v106_v25  ;;  %163 = vperm.xlu1 %3942, %v29_v27  }
  0x1a   :  { %3759 = vmatmul.mubr.msk.f32.gmra.mrb[2].mxu1 %vm296_vm0, %v107_v28  ;;  %248 = vperm.xlu0 %3941, %v46_v30  }
  0x1b   :  { %3761 = vmatprep.mubr.msk.f32.mxu1 %vm296_vm0, %v108_v29  ;;  %253 = vperm.xlu1 %3942, %v47_v31  }
  0x1e   :  { %3762 = vmatmul.mubr.msk.f32.gmra.mrb[4].mxu1 %vm296_vm0, %v109_v32  ;;  %168 = vperm.xlu0 %3941, %v30_v34  }
  0x1f   :  { %3764 = vmatprep.mubr.msk.f32.mxu1 %vm296_vm0, %v110_v33  ;;  %173 = vperm.xlu1 %3942, %v31_v35  }
  0x22   :  { %3765 = vmatmul.mubr.msk.f32.gmra.mrb[6].mxu1 %vm296_vm0, %v111_v36  ;;  %258 = vperm.xlu0 %3941, %v48_v38  }
  0x23   :  { %3767 = vmatprep.mubr.msk.f32.mxu1 %vm296_vm0, %v112_v37  ;;  %263 = vperm.xlu1 %3942, %v49_v39  }
  0x26   :  { %3768 = vmatmul.mubr.msk.f32.gmra.mrb[8].mxu1 %vm296_vm0, %v113_v40  ;;  %178 = vperm.xlu0 %3941, %v32_v42  }
  0x27   :  { %3770 = vmatprep.mubr.msk.f32.mxu1 %vm296_vm0, %v114_v41  ;;  %183 = vperm.xlu1 %3942, %v33_v43  }
  0x2a   :  { %3771 = vmatmul.mubr.msk.f32.gmra.mrb[10].mxu1 %vm296_vm0, %v115_v44 }
  0x2b   :  { %3773 = vmatprep.mubr.msk.f32.mxu1 %vm296_vm0, %v116_v45 }
  0x2c   :  { %11 = vsyncpa [#allocation3], 0  ;;  %268 = vperm.xlu0 %3941, %v50_v46   ;;  %273 = vperm.xlu1 %3942, %v51_v47   ;;  %v118_v49 = vld [vmem:[%s7068_s1 + $0x70] sm:$0xff]  ;;  %v35_v51 = vld [vmem:[%s7070_s3 + $0x58] sm:$0xff]  ;;  %s4268_s16 = smov 2   ;;  %s4269_s17 = smov 1  }
  0x2d   :  { %v34_v50 = vld [vmem:[%s7070_s3 + $0x50] sm:$0xff]  ;;  %v119_v52 = vld [vmem:[%s7068_s1 + $0x78] sm:$0xff]  ;;  %v120_v53 = vld [vmem:[%s7068_s1 + $0x80] sm:$0xff]  ;;  %s4270_s18 = smov 127   ;;  %s4271_s19 = smov 126  }
  0x2e   :  { %3774 = vmatmul.mubr.msk.f32.gmra.mrb[12].mxu1 %vm296_vm0, %v117_v48  ;;  %v52_v54 = vld [vmem:[%s7070_s3 + $0xe0] sm:$0xff]  ;;  %v53_v55 = vld [vmem:[%s7070_s3 + $0xe8] sm:$0xff]  ;;  %v122_v57 = vld [vmem:[%s7068_s1 + $0x90] sm:$0xff] }
  0x2f   :  { %3776 = vmatprep.mubr.msk.f32.mxu1 %vm296_vm0, %v118_v49  ;;  %v121_v56 = vld [vmem:[%s7068_s1 + $0x88] sm:$0xff]  ;;  %v36_v58 = vld [vmem:[%s7070_s3 + $0x60] sm:$0xff]  ;;  %v123_v60 = vld [vmem:[%s7068_s1 + $0x98] sm:$0xff] }
  0x30   :  { %188 = vperm.xlu0 %3941, %v34_v50   ;;  %193 = vperm.xlu1 %3942, %v35_v51   ;;  %v37_v59 = vld [vmem:[%s7070_s3 + $0x68] sm:$0xff]  ;;  %v124_v61 = vld [vmem:[%s7068_s1 + $0xa0] sm:$0xff]  ;;  %v54_v62 = vld [vmem:[%s7070_s3 + $0xf0] sm:$0xff] }
  0x31   :  { %v55_v63 = vld [vmem:[%s7070_s3 + $0xf8] sm:$0xff]  ;;  %v125_v0 = vld [vmem:[%s7068_s1 + $0xa8] sm:$0xff]  ;;  %v126_v1 = vld [vmem:[%s7068_s1 + $0xb0] sm:$0xff] }
  0x32   :  { %3777 = vmatmul.mubr.msk.f32.gmra.mrb[14].mxu1 %vm296_vm0, %v119_v52  ;;  %v38_v2 = vld [vmem:[%s7070_s3 + $0x70] sm:$0xff]  ;;  %v39_v3 = vld [vmem:[%s7070_s3 + $0x78] sm:$0xff]  ;;  %v128_v5 = vld [vmem:[%s7068_s1 + $0xc0] sm:$0xff] }
  0x33   :  { %3779 = vmatprep.mubr.msk.f32.mxu1 %vm296_vm0, %v120_v53  ;;  %v127_v4 = vld [vmem:[%s7068_s1 + $0xb8] sm:$0xff]  ;;  %v860_v6 = vld [vmem:[%s7070_s3 + $0x4c0] sm:$0xff]  ;;  %v861_v7 = vld [vmem:[%s7070_s3 + $0x4c8] sm:$0xff] }
  0x34   :  { %278 = vperm.xlu0 %3941, %v52_v54   ;;  %283 = vperm.xlu1 %3942, %v53_v55   ;;  %v129_v8 = vld [vmem:[%s7068_s1 + $0xc8] sm:$0xff]  ;;  %v130_v9 = vld [vmem:[%s7068_s1 + $0xd0] sm:$0xff]  ;;  %v1183_v10 = vld [vmem:[%s7070_s3 + $0x2c0] sm:$0xff] }
  0x35   :  { %v1184_v11 = vld [vmem:[%s7070_s3 + $0x2c8] sm:$0xff]  ;;  %v131_v12 = vld [vmem:[%s7068_s1 + $0xd8] sm:$0xff]  ;;  %v132_v13 = vld [vmem:[%s7068_s1 + $0xe0] sm:$0xff] }
  0x36   :  { %3780 = vmatmul.mubr.msk.f32.gmra.mrb[16].mxu1 %vm296_vm0, %v121_v56  ;;  %v844_v14 = vld [vmem:[%s7070_s3 + $0x440] sm:$0xff]  ;;  %v845_v15 = vld [vmem:[%s7070_s3 + $0x448] sm:$0xff]  ;;  %v134_v17 = vld [vmem:[%s7068_s1 + $0xf0] sm:$0xff] }
  0x37   :  { %3782 = vmatprep.mubr.msk.f32.mxu1 %vm296_vm0, %v122_v57  ;;  %v133_v16 = vld [vmem:[%s7068_s1 + $0xe8] sm:$0xff]  ;;  %v1167_v18 = vld [vmem:[%s7070_s3 + $0x240] sm:$0xff]  ;;  %v135_v20 = vld [vmem:[%s7068_s1 + $0xf8] sm:$0xff] }
  0x38   :  { %198 = vperm.xlu0 %3941, %v36_v58   ;;  %203 = vperm.xlu1 %3942, %v37_v59   ;;  %v1168_v19 = vld [vmem:[%s7070_s3 + $0x248] sm:$0xff]  ;;  %v1538_v21 = vld [vmem:[%s7070_s3 + $0x3c0] sm:$0xff]  ;;  %v862_v33 = vld [vmem:[%s7070_s3 + $0x4d0] sm:$0xff] }
  0x39   :  { %v1539_v22 = vld [vmem:[%s7070_s3 + $0x3c8] sm:$0xff]  ;;  %v1522_v23 = vld [vmem:[%s7070_s3 + $0x340] sm:$0xff]  ;;  %v863_v34 = vld [vmem:[%s7070_s3 + $0x4d8] sm:$0xff] }
  0x3a   :  { %3783 = vmatmul.mubr.msk.f32.gmra.mrb[18].mxu1 %vm296_vm0, %v123_v60  ;;  %v1523_v24 = vld [vmem:[%s7070_s3 + $0x348] sm:$0xff]  ;;  %v1893_v25 = vld [vmem:[%s7070_s3 + $0x5c0] sm:$0xff]  ;;  %v1185_v35 = vld [vmem:[%s7070_s3 + $0x2d0] sm:$0xff] }
  0x3b   :  { %3785 = vmatprep.mubr.msk.f32.mxu1 %vm296_vm0, %v124_v61  ;;  %v1894_v26 = vld [vmem:[%s7070_s3 + $0x5c8] sm:$0xff]  ;;  %v1877_v27 = vld [vmem:[%s7070_s3 + $0x540] sm:$0xff]  ;;  %v1186_v36 = vld [vmem:[%s7070_s3 + $0x2d8] sm:$0xff] }
  0x3c   :  { %288 = vperm.xlu0 %3941, %v54_v62   ;;  %293 = vperm.xlu1 %3942, %v55_v63   ;;  %v1878_v28 = vld [vmem:[%s7070_s3 + $0x548] sm:$0xff]  ;;  %v2248_v29 = vld [vmem:[%s7070_s3 + $0x6c0] sm:$0xff]  ;;  %v846_v37 = vld [vmem:[%s7070_s3 + $0x450] sm:$0xff] }
  0x3d   :  { %v2249_v30 = vld [vmem:[%s7070_s3 + $0x6c8] sm:$0xff]  ;;  %v2232_v31 = vld [vmem:[%s7070_s3 + $0x640] sm:$0xff]  ;;  %v847_v38 = vld [vmem:[%s7070_s3 + $0x458] sm:$0xff] }
  0x3e   :  { %3786 = vmatmul.mubr.msk.f32.gmra.mrb[20].mxu1 %vm296_vm0, %v125_v0  ;;  %v2233_v32 = vld [vmem:[%s7070_s3 + $0x648] sm:$0xff]  ;;  %v1169_v39 = vld [vmem:[%s7070_s3 + $0x250] sm:$0xff]  ;;  %v1170_v40 = vld [vmem:[%s7070_s3 + $0x258] sm:$0xff] }
  0x3f   :  { %3788 = vmatprep.mubr.msk.f32.mxu1 %vm296_vm0, %v126_v1  ;;  %v1540_v41 = vld [vmem:[%s7070_s3 + $0x3d0] sm:$0xff]  ;;  %v1541_v42 = vld [vmem:[%s7070_s3 + $0x3d8] sm:$0xff]  ;;  %v72_v43 = vld [vmem:[%s7070_s3 + $0x180] sm:$0xff] }
  0x40   :  { %208 = vperm.xlu0 %3941, %v38_v2   ;;  %213 = vperm.xlu1 %3942, %v39_v3   ;;  %v73_v44 = vld [vmem:[%s7070_s3 + $0x188] sm:$0xff]  ;;  %v1524_v45 = vld [vmem:[%s7070_s3 + $0x350] sm:$0xff]  ;;  %v1525_v46 = vld [vmem:[%s7070_s3 + $0x358] sm:$0xff] }
  0x41   :  { %v56_v49 = vld [vmem:[%s7070_s3 + $0x100] sm:$0xff]  ;;  %v57_v50 = vld [vmem:[%s7070_s3 + $0x108] sm:$0xff]  ;;  %v1895_v53 = vld [vmem:[%s7070_s3 + $0x5d0] sm:$0xff] }
  0x42   :  { %3789 = vmatmul.mubr.msk.f32.gmra.mrb[22].mxu1 %vm296_vm0, %v127_v4  ;;  %v1896_v54 = vld [vmem:[%s7070_s3 + $0x5d8] sm:$0xff]  ;;  %v1879_v57 = vld [vmem:[%s7070_s3 + $0x550] sm:$0xff] }
  0x43   :  { %3791 = vmatprep.mubr.msk.f32.mxu1 %vm296_vm0, %v128_v5  ;;  %v1880_v58 = vld [vmem:[%s7070_s3 + $0x558] sm:$0xff]  ;;  %v2250_v61 = vld [vmem:[%s7070_s3 + $0x6d0] sm:$0xff]  ;;  %v864_v5 = vld [vmem:[%s7070_s3 + $0x4e0] sm:$0xff] }
  0x44   :  { %958 = vperm.xlu0 %3941, %v860_v6   ;;  %963 = vperm.xlu1 %3942, %v861_v7   ;;  %v2251_v62 = vld [vmem:[%s7070_s3 + $0x6d8] sm:$0xff]  ;;  %v2234_v1 = vld [vmem:[%s7070_s3 + $0x650] sm:$0xff]  ;;  %v865_v6 = vld [vmem:[%s7070_s3 + $0x4e8] sm:$0xff] }
  0x45   :  { %v2235_v2 = vld [vmem:[%s7070_s3 + $0x658] sm:$0xff] }
  0x46   :  { %3792 = vmatmul.mubr.msk.f32.gmra.mrb[24].mxu1 %vm296_vm0, %v129_v8 }
  0x47   :  { %3794 = vmatprep.mubr.msk.f32.mxu1 %vm296_vm0, %v130_v9  ;;  %v1187_v9 = vld [vmem:[%s7070_s3 + $0x2e0] sm:$0xff] }
  0x48   :  { %1281 = vperm.xlu0 %3941, %v1183_v10   ;;  %1286 = vperm.xlu1 %3942, %v1184_v11   ;;  %v1188_v10 = vld [vmem:[%s7070_s3 + $0x2e8] sm:$0xff] }
  0x4a   :  { %3795 = vmatmul.mubr.msk.f32.gmra.mrb[26].mxu1 %vm296_vm0, %v131_v12 }
  0x4b   :  { %3797 = vmatprep.mubr.msk.f32.mxu1 %vm296_vm0, %v132_v13  ;;  %v848_v13 = vld [vmem:[%s7070_s3 + $0x460] sm:$0xff] }
  0x4c   :  { %878 = vperm.xlu0 %3941, %v844_v14   ;;  %883 = vperm.xlu1 %3942, %v845_v15   ;;  %v849_v14 = vld [vmem:[%s7070_s3 + $0x468] sm:$0xff] }
  0x4e   :  { %3798 = vmatmul.mubr.msk.f32.gmra.mrb[28].mxu1 %vm296_vm0, %v133_v16 }
  0x4f   :  { %3800 = vmatprep.mubr.msk.f32.mxu1 %vm296_vm0, %v134_v17  ;;  %v1171_v17 = vld [vmem:[%s7070_s3 + $0x260] sm:$0xff] }
  0x50   :  { %1201 = vperm.xlu0 %3941, %v1167_v18   ;;  %1206 = vperm.xlu1 %3942, %v1168_v19   ;;  %v1172_v18 = vld [vmem:[%s7070_s3 + $0x268] sm:$0xff] }
  0x52   :  { %3801 = vmatmul.mubr.msk.f32.gmra.mrb[30].mxu1 %vm296_vm0, %v135_v20 }
  0x54   :  { %1636 = vperm.xlu0 %3941, %v1538_v21   ;;  %1641 = vperm.xlu1 %3942, %v1539_v22   ;;  %v1542_v21 = vld [vmem:[%s7070_s3 + $0x3e0] sm:$0xff]  ;;  %v1543_v22 = vld [vmem:[%s7070_s3 + $0x3e8] sm:$0xff] }
  0x58   :  { %1556 = vperm.xlu0 %3941, %v1522_v23   ;;  %1561 = vperm.xlu1 %3942, %v1523_v24  }
  0x5c   :  { %1991 = vperm.xlu0 %3941, %v1893_v25   ;;  %1996 = vperm.xlu1 %3942, %v1894_v26   ;;  %v74_v25 = vld [vmem:[%s7070_s3 + $0x190] sm:$0xff]  ;;  %v75_v26 = vld [vmem:[%s7070_s3 + $0x198] sm:$0xff] }
  0x60   :  { %1911 = vperm.xlu0 %3941, %v1877_v27   ;;  %1916 = vperm.xlu1 %3942, %v1878_v28  }
  0x64   :  { %2346 = vperm.xlu0 %3941, %v2248_v29   ;;  %2351 = vperm.xlu1 %3942, %v2249_v30   ;;  %v1526_v29 = vld [vmem:[%s7070_s3 + $0x360] sm:$0xff]  ;;  %v1527_v30 = vld [vmem:[%s7070_s3 + $0x368] sm:$0xff] }
  0x68   :  { %2266 = vperm.xlu0 %3941, %v2232_v31   ;;  %2271 = vperm.xlu1 %3942, %v2233_v32  }
  0x6c   :  { %968 = vperm.xlu0 %3941, %v862_v33   ;;  %973 = vperm.xlu1 %3942, %v863_v34   ;;  %v58_v33 = vld [vmem:[%s7070_s3 + $0x110] sm:$0xff]  ;;  %v59_v34 = vld [vmem:[%s7070_s3 + $0x118] sm:$0xff] }
  0x70   :  { %1291 = vperm.xlu0 %3941, %v1185_v35   ;;  %1296 = vperm.xlu1 %3942, %v1186_v36  }
  0x74   :  { %888 = vperm.xlu0 %3941, %v846_v37   ;;  %893 = vperm.xlu1 %3942, %v847_v38   ;;  %v1897_v37 = vld [vmem:[%s7070_s3 + $0x5e0] sm:$0xff]  ;;  %v1898_v38 = vld [vmem:[%s7070_s3 + $0x5e8] sm:$0xff] }
  0x78   :  { %1211 = vperm.xlu0 %3941, %v1169_v39   ;;  %1216 = vperm.xlu1 %3942, %v1170_v40  }
  0x7c   :  { %1646 = vperm.xlu0 %3941, %v1540_v41   ;;  %1651 = vperm.xlu1 %3942, %v1541_v42   ;;  %v1881_v41 = vld [vmem:[%s7070_s3 + $0x560] sm:$0xff]  ;;  %v1882_v42 = vld [vmem:[%s7070_s3 + $0x568] sm:$0xff] }
  0x80   :  { %2570 = vperm.xlu0 %3941, %v72_v43   ;;  %2575 = vperm.xlu1 %3942, %v73_v44  }
  0x81   :  { %v4662_v47 = vpop.permute.xlu0 %218 }
  0x82   :  { %v4664_v48 = vpop.permute.xlu1 %138 }
  0x84   :  { %1566 = vperm.xlu0 %3941, %v1524_v45   ;;  %1571 = vperm.xlu1 %3942, %v1525_v46   ;;  %v2252_v45 = vld [vmem:[%s7070_s3 + $0x6e0] sm:$0xff]  ;;  %v2253_v46 = vld [vmem:[%s7070_s3 + $0x6e8] sm:$0xff] }
  0x85   :  { %v4672_v51 = vpop.permute.xlu0 %223 }
  0x86   :  { %v4674_v52 = vpop.permute.xlu1 %143 }
  0x88   :  { %2490 = vperm.xlu0 %3941, %v56_v49   ;;  %2495 = vperm.xlu1 %3942, %v57_v50  }
  0x89   :  { %v4682_v55 = vpop.permute.xlu0 %228 }
  0x8a   :  { %v4684_v56 = vpop.permute.xlu1 %233 }
  0x8c   :  { %2001 = vperm.xlu0 %3941, %v1895_v53   ;;  %2006 = vperm.xlu1 %3942, %v1896_v54   ;;  %v2236_v53 = vld [vmem:[%s7070_s3 + $0x660] sm:$0xff]  ;;  %v2237_v54 = vld [vmem:[%s7070_s3 + $0x668] sm:$0xff] }
  0x8d   :  { %v4692_v59 = vpop.permute.xlu0 %148 }
  0x8e   :  { %v4694_v60 = vpop.permute.xlu1 %153 }
  0x90   :  { %1921 = vperm.xlu0 %3941, %v1879_v57   ;;  %1926 = vperm.xlu1 %3942, %v1880_v58  }
  0x91   :  { %v4702_v63 = vpop.permute.xlu0 %238 }
  0x92   :  { %v4704_v0 = vpop.permute.xlu1 %243 }
  0x94   :  { %2356 = vperm.xlu0 %3941, %v2250_v61   ;;  %2361 = vperm.xlu1 %3942, %v2251_v62   ;;  %v866_v61 = vld [vmem:[%s7070_s3 + $0x4f0] sm:$0xff]  ;;  %v867_v62 = vld [vmem:[%s7070_s3 + $0x4f8] sm:$0xff] }
  0x95   :  { %v4712_v3 = vpop.permute.xlu0 %158 }
  0x96   :  { %v4714_v4 = vpop.permute.xlu1 %163 }
  0x98   :  { %2276 = vperm.xlu0 %3941, %v2234_v1   ;;  %2281 = vperm.xlu1 %3942, %v2235_v2  }
  0x99   :  { %v4722_v7 = vpop.permute.xlu0 %248 }
  0x9a   :  { %v4724_v8 = vpop.permute.xlu1 %253 }
  0x9c   :  { %978 = vperm.xlu0 %3941, %v864_v5   ;;  %983 = vperm.xlu1 %3942, %v865_v6   ;;  %v1189_v5 = vld [vmem:[%s7070_s3 + $0x2f0] sm:$0xff]  ;;  %v1190_v6 = vld [vmem:[%s7070_s3 + $0x2f8] sm:$0xff] }
  0x9d   :  { %v4732_v11 = vpop.permute.xlu0 %168 }
  0x9e   :  { %v4734_v12 = vpop.permute.xlu1 %173 }
  0xa0   :  { %1301 = vperm.xlu0 %3941, %v1187_v9   ;;  %1306 = vperm.xlu1 %3942, %v1188_v10  }
  0xa1   :  { %v4742_v15 = vpop.permute.xlu0 %258 }
  0xa2   :  { %v4744_v16 = vpop.permute.xlu1 %263 }
  0xa4   :  { %898 = vperm.xlu0 %3941, %v848_v13   ;;  %903 = vperm.xlu1 %3942, %v849_v14   ;;  %v850_v13 = vld [vmem:[%s7070_s3 + $0x470] sm:$0xff]  ;;  %v851_v14 = vld [vmem:[%s7070_s3 + $0x478] sm:$0xff] }
  0xa5   :  { %v4752_v19 = vpop.permute.xlu0 %178 }
  0xa6   :  { %v4754_v20 = vpop.permute.xlu1 %183 }
  0xa8   :  { %1221 = vperm.xlu0 %3941, %v1171_v17   ;;  %1226 = vperm.xlu1 %3942, %v1172_v18  }
  0xab   :  { %v4762_v23 = vpop.permute.xlu0 %268  ;;  %v4764_v24 = vpop.permute.xlu1 %273 }
  0xac   :  { %7089 = vst [vmem:[#allocation5_spill] sm:$0xff] %v4762_v23  ;;  %7090 = vst [vmem:[#allocation6_spill] sm:$0xff] %v4764_v24  ;;  %1656 = vperm.xlu0 %3941, %v1542_v21   ;;  %1661 = vperm.xlu1 %3942, %v1543_v22   ;;  %v1173_v21 = vld [vmem:[%s7070_s3 + $0x270] sm:$0xff]  ;;  %v1174_v22 = vld [vmem:[%s7070_s3 + $0x278] sm:$0xff] }
  0xaf   :  { %v4772_v27 = vpop.permute.xlu0 %188  ;;  %v4774_v28 = vpop.permute.xlu1 %193 }
  0xb0   :  { %7091 = vst [vmem:[#allocation7_spill] sm:$0xff] %v4772_v27  ;;  %7092 = vst [vmem:[#allocation8_spill] sm:$0xff] %v4774_v28  ;;  %2580 = vperm.xlu0 %3941, %v74_v25   ;;  %2585 = vperm.xlu1 %3942, %v75_v26  }
  0xb3   :  { %v4782_v31 = vpop.permute.xlu0 %278  ;;  %v4784_v32 = vpop.permute.xlu1 %283 }
  0xb4   :  { %7093 = vst [vmem:[#allocation9_spill] sm:$0xff] %v4782_v31  ;;  %7094 = vst [vmem:[#allocation10_spill] sm:$0xff] %v4784_v32  ;;  %1576 = vperm.xlu0 %3941, %v1526_v29   ;;  %1581 = vperm.xlu1 %3942, %v1527_v30   ;;  %v1544_v29 = vld [vmem:[%s7070_s3 + $0x3f0] sm:$0xff]  ;;  %v1545_v30 = vld [vmem:[%s7070_s3 + $0x3f8] sm:$0xff] }
  0xb7   :  { %v4792_v35 = vpop.permute.xlu0 %198  ;;  %v4794_v36 = vpop.permute.xlu1 %203 }
  0xb8   :  { %7095 = vst [vmem:[#allocation11_spill] sm:$0xff] %v4792_v35  ;;  %7096 = vst [vmem:[#allocation12_spill] sm:$0xff] %v4794_v36  ;;  %2500 = vperm.xlu0 %3941, %v58_v33   ;;  %2505 = vperm.xlu1 %3942, %v59_v34  }
  0xbb   :  { %v4802_v39 = vpop.permute.xlu0 %288  ;;  %v4804_v40 = vpop.permute.xlu1 %293 }
  0xbc   :  { %7097 = vst [vmem:[#allocation13_spill] sm:$0xff] %v4802_v39  ;;  %7098 = vst [vmem:[#allocation14_spill] sm:$0xff] %v4804_v40  ;;  %2011 = vperm.xlu0 %3941, %v1897_v37   ;;  %2016 = vperm.xlu1 %3942, %v1898_v38  }
  0xbf   :  { %v4812_v43 = vpop.permute.xlu0 %208  ;;  %v4814_v44 = vpop.permute.xlu1 %213 }
  0xc0   :  { %7099 = vst [vmem:[#allocation15_spill] sm:$0xff] %v4812_v43  ;;  %7100 = vst [vmem:[#allocation16_spill] sm:$0xff] %v4814_v44  ;;  %1931 = vperm.xlu0 %3941, %v1881_v41   ;;  %1936 = vperm.xlu1 %3942, %v1882_v42  }
  0xc3   :  { %v4822_v49 = vpop.permute.xlu0 %958  ;;  %v4824_v50 = vpop.permute.xlu1 %963 }
  0xc4   :  { %7101 = vst [vmem:[#allocation17_spill] sm:$0xff] %v4822_v49  ;;  %7102 = vst [vmem:[#allocation18_spill] sm:$0xff] %v4824_v50  ;;  %2366 = vperm.xlu0 %3941, %v2252_v45   ;;  %2371 = vperm.xlu1 %3942, %v2253_v46  }
  0xc7   :  { %v4832_v57 = vpop.permute.xlu0 %1281  ;;  %v4834_v58 = vpop.permute.xlu1 %1286 }
  0xc8   :  { %7103 = vst [vmem:[#allocation19_spill] sm:$0xff] %v4832_v57  ;;  %2286 = vperm.xlu0 %3941, %v2236_v53   ;;  %2291 = vperm.xlu1 %3942, %v2237_v54  }
  0xcb   :  { %v4842_v1 = vpop.permute.xlu0 %878  ;;  %v4844_v2 = vpop.permute.xlu1 %883 }
  0xcc   :  { %988 = vperm.xlu0 %3941, %v866_v61   ;;  %993 = vperm.xlu1 %3942, %v867_v62  }
  0xcf   :  { %v4852_v9 = vpop.permute.xlu0 %1201  ;;  %v4854_v10 = vpop.permute.xlu1 %1206 }
  0xd0   :  { %1311 = vperm.xlu0 %3941, %v1189_v5   ;;  %1316 = vperm.xlu1 %3942, %v1190_v6  }
  0xd3   :  { %v4862_v17 = vpop.permute.xlu0 %1636  ;;  %v4864_v18 = vpop.permute.xlu1 %1641 }
  0xd4   :  { %7104 = vst [vmem:[#allocation20_spill] sm:$0xff] %v4862_v17  ;;  %7105 = vst [vmem:[#allocation21_spill] sm:$0xff] %v4864_v18  ;;  %908 = vperm.xlu0 %3941, %v850_v13   ;;  %913 = vperm.xlu1 %3942, %v851_v14  }
  0xd7   :  { %v4872_v25 = vpop.permute.xlu0 %1556  ;;  %v4874_v26 = vpop.permute.xlu1 %1561 }
  0xd8   :  { %1231 = vperm.xlu0 %3941, %v1173_v21   ;;  %1236 = vperm.xlu1 %3942, %v1174_v22  }
  0xdb   :  { %v4882_v33 = vpop.permute.xlu0 %1991  ;;  %v4884_v34 = vpop.permute.xlu1 %1996 }
  0xdc   :  { %7106 = vst [vmem:[#allocation22_spill] sm:$0xff] %v4882_v33  ;;  %7107 = vst [vmem:[#allocation23_spill] sm:$0xff] %v4884_v34  ;;  %1666 = vperm.xlu0 %3941, %v1544_v29   ;;  %1671 = vperm.xlu1 %3942, %v1545_v30  }
  0xdf   :  { %v4886_v37 = vpop.permute.xlu0 %1911  ;;  %v4888_v38 = vpop.permute.xlu1 %1916 }
  0xe3   :  { %v4890_v41 = vpop.permute.xlu0 %2346  ;;  %v4892_v42 = vpop.permute.xlu1 %2351 }
  0xe4   :  { %7108 = vst [vmem:[#allocation24_spill] sm:$0xff] %v4890_v41  ;;  %7109 = vst [vmem:[#allocation25_spill] sm:$0xff] %v4892_v42 }
  0xe7   :  { %v4894_v45 = vpop.permute.xlu0 %2266  ;;  %v4896_v46 = vpop.permute.xlu1 %2271 }
  0xe9   :  { %v3757_v53 = vpop.f32.mrb[0].mxu1 }
  0xea   :  { %v465_v54 = vadd.f32 %v3757_v53, %v4674_v52  ;;  %v459_v61 = vpop.f32.mrb[1].mxu1 }
  0xeb   :  { %v460_v62 = vadd.f32 %v459_v61, %v4664_v48  ;;  %v4900_v5 = vpop.permute.xlu0 %968  ;;  %v4902_v6 = vpop.permute.xlu1 %973 }
  0xec   :  { %7110 = vst [vmem:[#allocation26_spill] sm:$0xff] %v4900_v5  ;;  %7111 = vst [vmem:[#allocation27_spill] sm:$0xff] %v4902_v6  ;;  %v3498_v13 = vmul.f32 -1.442695, %v465_v54 }
  0xed   :  { %v3497_v14 = vmul.f32 -1.442695, %v460_v62  ;;  %v3760_v21 = vpop.f32.mrb[2].mxu1 }
  0xee   :  { %3943 = vpow2.f32 %v3498_v13  ;;  %v469_v22 = vpop.f32.mrb[3].mxu1  ;;  %v4909_v43 = vadd.f32 %v3760_v21, %v4694_v60 }
  0xef   :  { %3945 = vpow2.f32 %v3497_v14  ;;  %v4904_v29 = vpop.permute.xlu0 %1291  ;;  %v4906_v30 = vpop.permute.xlu1 %1296  ;;  %v4912_v52 = vadd.f32 %v469_v22, %v4692_v59 }
  0xf0   :  { %7112 = vst [vmem:[#allocation28_spill] sm:$0xff] %v4904_v29  ;;  %7113 = vst [vmem:[#allocation29_spill] sm:$0xff] %v4906_v30  ;;  %v3500_v13 = vmul.f32 -1.442695, %v4909_v43 }
  0xf1   :  { %v3763_v48 = vpop.f32.mrb[4].mxu1  ;;  %v3499_v14 = vmul.f32 -1.442695, %v4912_v52 }
  0xf2   :  { %v479_v53 = vpop.f32.mrb[5].mxu1  ;;  %3947 = vpow2.f32 %v3500_v13  ;;  %v4941_v13 = vadd.f32 %v3763_v48, %v4714_v4 }
  0xf3   :  { %v4914_v61 = vpop.permute.xlu0 %888  ;;  %v4916_v44 = vpop.permute.xlu1 %893  ;;  %3949 = vpow2.f32 %v3499_v14 }
  0xf5   :  { %v4920_v39 = vpop.f32.mrb[6].mxu1 }
  0xf6   :  { %v4922_v40 = vpop.f32.mrb[7].mxu1 }
  0xf7   :  { %v4924_v35 = vpop.permute.xlu0 %1211  ;;  %v4926_v60 = vpop.permute.xlu1 %1216 }
  0xf8   :  { %v3944_v59 = vpop.eup %3943 }
  0xf9   :  { %v3946_v21 = vpop.eup %3945  ;;  %v715_v22 = vadd.f32 1.0, %v3944_v59  ;;  %v4928_v36 = vpop.f32.mrb[8].mxu1 }
  0xfa   :  { %v714_v31 = vadd.f32 1.0, %v3946_v21  ;;  %v4930_v32 = vpop.f32.mrb[9].mxu1  ;;  %v4948_v21 = vadd.f32 %v479_v53, %v4712_v3 }
  0xfb   :  { %3951 = vrcp.f32 %v715_v22  ;;  %v4932_v27 = vpop.permute.xlu0 %1646  ;;  %v4934_v28 = vpop.permute.xlu1 %1651 }
  0xfc   :  { %7114 = vst [vmem:[#allocation30_spill] sm:$0xff] %v4932_v27  ;;  %7115 = vst [vmem:[#allocation31_spill] sm:$0xff] %v4934_v28  ;;  %3953 = vrcp.f32 %v714_v31  ;;  %v3948_v27 = vpop.eup %3947  ;;  %v3501_v4 = vmul.f32 -1.442695, %v4948_v21 }
  0xfd   :  { %v4936_v23 = vpop.f32.mrb[10].mxu1  ;;  %v3950_v31 = vpop.eup %3949  ;;  %v717_v6 = vadd.f32 1.0, %v3948_v27 }
  0xfe   :  { %7116 = vst [vmem:[#allocation32_spill] sm:$0xff] %v4936_v23  ;;  %v4938_v24 = vpop.f32.mrb[11].mxu1  ;;  %v3502_v23 = vmul.f32 -1.442695, %v4941_v13 }
  0xff   :  { %7117 = vst [vmem:[#allocation33_spill] sm:$0xff] %v4938_v24  ;;  %v4943_v59 = vpop.permute.xlu0 %2570  ;;  %v4945_v14 = vpop.permute.xlu1 %2575 }
 0x100   :  { %7118 = vst [vmem:[#allocation34_spill] sm:$0xff] %v4943_v59  ;;  %7119 = vst [vmem:[#allocation35_spill] sm:$0xff] %v4945_v14  ;;  %3955 = vpow2.f32 %v3502_v23 }
 0x101   :  { %v4950_v22 = vpop.f32.mrb[12].mxu1  ;;  %3957 = vpow2.f32 %v3501_v4 }
 0x102   :  { %7120 = vst [vmem:[#allocation36_spill] sm:$0xff] %v4950_v22  ;;  %v4952_v5 = vpop.f32.mrb[13].mxu1  ;;  %v716_v22 = vadd.f32 1.0, %v3950_v31  ;;  %3959 = vrcp.f32 %v717_v6 }
 0x103   :  { %7121 = vst [vmem:[#allocation37_spill] sm:$0xff] %v4952_v5  ;;  %v4955_v28 = vpop.permute.xlu0 %1566  ;;  %v4957_v24 = vpop.permute.xlu1 %1571 }
 0x104   :  { %3961 = vrcp.f32 %v716_v22 }
 0x105   :  { %v3952_v48 = vpop.eup %3951  ;;  %v4960_v29 = vpop.f32.mrb[14].mxu1 }
 0x106   :  { %7122 = vst [vmem:[#allocation38_spill] sm:$0xff] %v4960_v29  ;;  %v3954_v3 = vpop.eup %3953  ;;  %v4962_v53 = vmul.f32 %v3952_v48, %v465_v54  ;;  %v4964_v30 = vpop.f32.mrb[15].mxu1 }
 0x107   :  { %7123 = vst [vmem:[#allocation39_spill] sm:$0xff] %v4964_v30  ;;  %v4966_v5 = vmul.f32 %v3954_v3, %v460_v62  ;;  %v4968_v59 = vpop.permute.xlu0 %2490  ;;  %v4970_v14 = vpop.permute.xlu1 %2495 }
 0x108   :  { %1070 = vrot.lane.b32.xlu1 %v4962_v53, %s4268_s16 }
 0x109   :  { %v3781_v27 = vpop.f32.mrb[16].mxu1  ;;  %1068 = vrot.lane.b32.xlu0 %v4966_v5, %s4268_s16 }
 0x10a   :  { %v4977_v54 = vadd.f32 %v3781_v27, %v4672_v51  ;;  %v539_v62 = vpop.f32.mrb[17].mxu1  ;;  %v3956_v27 = vpop.eup %3955 }
 0x10b   :  { %v4980_v23 = vadd.f32 %v539_v62, %v4662_v47  ;;  %v4982_v31 = vpop.permute.xlu0 %2001  ;;  %v4984_v4 = vpop.permute.xlu1 %2006 }
 0x10c   :  { %7124 = vst [vmem:[#allocation40_spill] sm:$0xff] %v4982_v31  ;;  %7125 = vst [vmem:[#allocation41_spill] sm:$0xff] %v4984_v4  ;;  %v3514_v48 = vmul.f32 -1.442695, %v4977_v54  ;;  %1425 = vrot.lane.b32.xlu1 %v4962_v53, %s4269_s17  ;;  %v3958_v30 = vpop.eup %3957 }
 0x10d   :  { %v3513_v6 = vmul.f32 -1.442695, %v4980_v23  ;;  %v3784_v22 = vpop.f32.mrb[18].mxu1  ;;  %1423 = vrot.lane.b32.xlu0 %v4966_v5, %s4269_s17  ;;  %v3960_v31 = vpop.eup %3959  ;;  %v718_v34 = vadd.f32 1.0, %v3958_v30 }
 0x10e   :  { %v549_v51 = vpop.f32.mrb[19].mxu1  ;;  %3963 = vpow2.f32 %v3514_v48  ;;  %v3962_v42 = vpop.eup %3961  ;;  %v719_v48 = vadd.f32 1.0, %v3956_v27 }
 0x10f   :  { %v4992_v3 = vpop.permute.xlu0 %1921  ;;  %v4994_v47 = vpop.permute.xlu1 %1926  ;;  %3965 = vpow2.f32 %v3513_v6  ;;  %v5011_v6 = vmul.f32 %v3960_v31, %v4909_v43  ;;  %v5026_v49 = vadd.f32 %v549_v51, %v4682_v55 }
 0x110   :  { %1780 = vrot.lane.b32.xlu1 %v4962_v53, %s4270_s18  ;;  %3967 = vrcp.f32 %v719_v48 }
 0x111   :  { %v3787_v62 = vpop.f32.mrb[20].mxu1  ;;  %1778 = vrot.lane.b32.xlu0 %v4966_v5, %s4270_s18  ;;  %3969 = vrcp.f32 %v718_v34 }
 0x112   :  { %v559_v29 = vpop.f32.mrb[21].mxu1 }
 0x113   :  { %v5000_v4 = vpop.permute.xlu0 %2356  ;;  %v5002_v41 = vpop.permute.xlu1 %2361 }
 0x114   :  { %7126 = vst [vmem:[#allocation42_spill] sm:$0xff] %v5000_v4  ;;  %7127 = vst [vmem:[#allocation43_spill] sm:$0xff] %v5002_v41  ;;  %2135 = vrot.lane.b32.xlu1 %v4962_v53, %s4271_s19  ;;  %v5016_v4 = vmul.f32 %v3962_v42, %v4912_v52  ;;  %v5019_v41 = vadd.f32 %v3784_v22, %v4684_v56  ;;  %v3515_v22 = vmul.f32 -1.442695, %v5026_v49 }
 0x115   :  { %v5006_v33 = vpop.f32.mrb[22].mxu1  ;;  %2133 = vrot.lane.b32.xlu0 %v4966_v5, %s4271_s19 }
 0x116   :  { %v5013_v17 = vpop.f32.mrb[23].mxu1  ;;  %v3516_v52 = vmul.f32 -1.442695, %v5019_v41 }
 0x117   :  { %v5021_v18 = vpop.permute.xlu0 %2276  ;;  %v5023_v27 = vpop.permute.xlu1 %2281 }
 0x118   :  { %1074 = vrot.lane.b32.xlu1 %v5011_v6, %s4268_s16  ;;  %v3964_v42 = vpop.eup %3963  ;;  %3971 = vpow2.f32 %v3516_v52 }
 0x119   :  { %v5030_v43 = vpop.f32.mrb[24].mxu1  ;;  %1072 = vrot.lane.b32.xlu0 %v5016_v4, %s4268_s16  ;;  %v3966_v30 = vpop.eup %3965  ;;  %v731_v51 = vadd.f32 1.0, %v3964_v42  ;;  %3973 = vpow2.f32 %v3515_v22 }
 0x11a   :  { %v5034_v56 = vpop.f32.mrb[25].mxu1  ;;  %v730_v34 = vadd.f32 1.0, %v3966_v30  ;;  %v3968_v30 = vpop.eup %3967 }
 0x11b   :  { %v5037_v31 = vpop.permute.xlu0 %978  ;;  %v5039_v55 = vpop.permute.xlu1 %983  ;;  %3975 = vrcp.f32 %v731_v51  ;;  %v5073_v51 = vmul.f32 %v3968_v30, %v4941_v13 }
 0x11c   :  { %7128 = vst [vmem:[#allocation44_spill] sm:$0xff] %v5037_v31  ;;  %7129 = vst [vmem:[#allocation45_spill] sm:$0xff] %v5039_v55  ;;  %1429 = vrot.lane.b32.xlu1 %v5011_v6, %s4269_s17  ;;  %3977 = vrcp.f32 %v730_v34 }
 0x11d   :  { %v5044_v48 = vpop.f32.mrb[26].mxu1  ;;  %1427 = vrot.lane.b32.xlu0 %v5016_v4, %s4269_s17  ;;  %7139 = vst [vmem:[#allocation55_spill] sm:$0xff] %v5073_v51 }
 0x11e   :  { %7130 = vst [vmem:[#allocation46_spill] sm:$0xff] %v5044_v48  ;;  %v5048_v50 = vpop.f32.mrb[27].mxu1  ;;  %v3970_v48 = vpop.eup %3969 }
 0x11f   :  { %7131 = vst [vmem:[#allocation47_spill] sm:$0xff] %v5048_v50  ;;  %v5050_v57 = vpop.permute.xlu0 %1301  ;;  %v5052_v31 = vpop.permute.xlu1 %1306 }
 0x120   :  { %7132 = vst [vmem:[#allocation48_spill] sm:$0xff] %v5050_v57  ;;  %7133 = vst [vmem:[#allocation49_spill] sm:$0xff] %v5052_v31  ;;  %1784 = vrot.lane.b32.xlu1 %v5011_v6, %s4270_s18 }
 0x121   :  { %v5056_v55 = vpop.f32.mrb[28].mxu1  ;;  %1782 = vrot.lane.b32.xlu0 %v5016_v4, %s4270_s18 }
 0x122   :  { %7134 = vst [vmem:[#allocation50_spill] sm:$0xff] %v5056_v55  ;;  %v5060_v42 = vpop.f32.mrb[29].mxu1  ;;  %v5081_v55 = vadd.f32 %v3787_v62, %v4704_v0 }
 0x123   :  { %7135 = vst [vmem:[#allocation51_spill] sm:$0xff] %v5060_v42  ;;  %v5062_v50 = vpop.permute.xlu0 %898  ;;  %v5064_v52 = vpop.permute.xlu1 %903  ;;  %v5078_v42 = vmul.f32 %v3970_v48, %v4948_v21 }
 0x124   :  { %7136 = vst [vmem:[#allocation52_spill] sm:$0xff] %v5062_v50  ;;  %7137 = vst [vmem:[#allocation53_spill] sm:$0xff] %v5064_v52  ;;  %2139 = vrot.lane.b32.xlu1 %v5011_v6, %s4271_s19  ;;  %v5084_v50 = vadd.f32 %v559_v29, %v4702_v63  ;;  %v3972_v52 = vpop.eup %3971  ;;  %v3518_v48 = vmul.f32 -1.442695, %v5081_v55 }
 0x125   :  { %v5068_v22 = vpop.f32.mrb[30].mxu1  ;;  %2137 = vrot.lane.b32.xlu0 %v5016_v4, %s4271_s19  ;;  %7141 = vst [vmem:[#allocation57_spill] sm:$0xff] %v5078_v42  ;;  %v3974_v13 = vpop.eup %3973  ;;  %v733_v63 = vadd.f32 1.0, %v3972_v52 }
 0x126   :  { %7138 = vst [vmem:[#allocation54_spill] sm:$0xff] %v5068_v22  ;;  %v5075_v34 = vpop.f32.mrb[31].mxu1  ;;  %v3976_v21 = vpop.eup %3975  ;;  %v3517_v62 = vmul.f32 -1.442695, %v5084_v50  ;;  %v732_v30 = vadd.f32 1.0, %v3974_v13  ;;  %3979 = vpow2.f32 %v3518_v48  ;;  %v2992_v13 = vld [vmem:[%s7071_s4 + $0x88] sm:$0xff] }
 0x127   :  { %7140 = vst [vmem:[#allocation56_spill] sm:$0xff] %v5075_v34  ;;  %v5088_v22 = vpop.permute.xlu1 %1226  ;;  %v5090_v57 = vpop.permute.xlu0 %1221  ;;  %v5101_v29 = vmul.f32 %v3976_v21, %v4977_v54  ;;  %v2975_v48 = vld [vmem:[%s7071_s4] sm:$0xff] }
 0x128   :  { %1078 = vrot.lane.b32.xlu1 %v5073_v51, %s4268_s16  ;;  %7142 = vst [vmem:[#allocation58_spill] sm:$0xff] %v5088_v22  ;;  %7143 = vst [vmem:[#allocation59_spill] sm:$0xff] %v5090_v57  ;;  %v3978_v0 = vpop.eup %3977  ;;  %3981 = vpow2.f32 %v3517_v62 }
 0x129   :  { %1076 = vrot.lane.b32.xlu0 %v5078_v42, %s4268_s16  ;;  %7144 = vst [vmem:[#allocation60_spill] sm:$0xff] %v5101_v29  ;;  %v5106_v57 = vmul.f32 %v3978_v0, %v4980_v23  ;;  %3983 = vrcp.f32 %v733_v63  ;;  %v2991_v23 = vld [vmem:[%s7071_s4 + $0x80] sm:$0xff]  ;;  %v2976_v0 = vld [vmem:[%s7071_s4 + $0x8] sm:$0xff] }
 0x12a   :  { %3985 = vrcp.f32 %v732_v30  ;;  %v3851_v21 = vpack.c.bf16 %v2992_v13, %v2991_v23  ;;  %v3853_v63 = vpack.c.bf16 %v2976_v0, %v2975_v48  ;;  %v2993_v23 = vld [vmem:[%s7071_s4 + $0x90] sm:$0xff]  ;;  %v2994_v13 = vld [vmem:[%s7071_s4 + $0x98] sm:$0xff] }
 0x12b   :  { %v5103_v34 = vpop.permute.xlu1 %1661  ;;  %v5108_v22 = vpop.permute.xlu0 %1656  ;;  %v3855_v48 = vpack.c.bf16 %v2994_v13, %v2993_v23  ;;  %v2978_v0 = vld [vmem:[%s7071_s4 + $0x18] sm:$0xff]  ;;  %v2995_v13 = vld [vmem:[%s7071_s4 + $0xa0] sm:$0xff] }
 0x12c   :  { %1433 = vrot.lane.b32.xlu1 %v5073_v51, %s4269_s17  ;;  %7145 = vst [vmem:[#allocation61_spill] sm:$0xff] %v5103_v34  ;;  %7146 = vst [vmem:[#allocation62_spill] sm:$0xff] %v5108_v22  ;;  %3852 = vmatprep.subr.bf16.mxu0 %v3851_v21  ;;  %v2977_v21 = vld [vmem:[%s7071_s4 + $0x10] sm:$0xff] }
 0x12d   :  { %1431 = vrot.lane.b32.xlu0 %v5078_v42, %s4269_s17  ;;  %3854 = vmatpush3.bf16.msra.mxu0 %v3853_v63 }
 0x12e   :  { %3856 = vmatprep.subr.bf16.mxu0 %v3855_v48  ;;  %v2998_v48 = vld [vmem:[%s7071_s4 + $0xb8] sm:$0xff] }
 0x12f   :  { %v5114_v54 = vpop.permute.xlu1 %2585  ;;  %v5118_v52 = vpop.permute.xlu0 %2580 }
 0x130   :  { %1102 = vrot.lane.b32.xlu1 %v5101_v29, %s4268_s16  ;;  %7147 = vst [vmem:[#allocation63_spill] sm:$0xff] %v5114_v54  ;;  %7148 = vst [vmem:[#allocation64_spill] sm:$0xff] %v5118_v52  ;;  %v3980_v62 = vpop.eup %3979 }
 0x131   :  { %1100 = vrot.lane.b32.xlu0 %v5106_v57, %s4268_s16  ;;  %v735_v63 = vadd.f32 1.0, %v3980_v62  ;;  %v2996_v62 = vld [vmem:[%s7071_s4 + $0xa8] sm:$0xff] }
 0x132   :  { %v3982_v30 = vpop.eup %3981 }
 0x133   :  { %v5138_v22 = vpop.permute.xlu1 %1581  ;;  %v3984_v34 = vpop.eup %3983  ;;  %v734_v54 = vadd.f32 1.0, %v3982_v30  ;;  %3987 = vrcp.f32 %v735_v63  ;;  %v2997_v30 = vld [vmem:[%s7071_s4 + $0xb0] sm:$0xff] }
 0x134   :  { %1457 = vrot.lane.b32.xlu1 %v5101_v29, %s4269_s17  ;;  %7149 = vst [vmem:[#allocation65_spill] sm:$0xff] %v5138_v22  ;;  %v5140_v31 = vpop.permute.xlu0 %1576  ;;  %v3986_v52 = vpop.eup %3985  ;;  %v5159_v22 = vmul.f32 %v3984_v34, %v5019_v41  ;;  %v3859_v41 = vpack.c.bf16 %v2996_v62, %v2995_v13 }
 0x135   :  { %1455 = vrot.lane.b32.xlu0 %v5106_v57, %s4269_s17  ;;  %7150 = vst [vmem:[#allocation66_spill] sm:$0xff] %v5140_v31  ;;  %v3857_v31 = vpack.c.bf16 %v2978_v0, %v2977_v21  ;;  %v5162_v23 = vmul.f32 %v3986_v52, %v5026_v49  ;;  %v2979_v49 = vld [vmem:[%s7071_s4 + $0x20] sm:$0xff]  ;;  %3989 = vrcp.f32 %v734_v54  ;;  %v3863_v21 = vpack.c.bf16 %v2998_v48, %v2997_v30  ;;  %v2981_v0 = vld [vmem:[%s7071_s4 + $0x30] sm:$0xff]  ;;  %v2982_v54 = vld [vmem:[%s7071_s4 + $0x38] sm:$0xff] }
 0x136   :  { %v3865_v63 = vpack.c.bf16 %v2982_v54, %v2981_v0  ;;  %v2984_v30 = vld [vmem:[%s7071_s4 + $0x48] sm:$0xff]  ;;  %v3001_v0 = vld [vmem:[%s7071_s4 + $0xd0] sm:$0xff]  ;;  %v3002_v54 = vld [vmem:[%s7071_s4 + $0xd8] sm:$0xff] }
 0x137   :  { %3858 = vmatpush3.bf16.msra.mxu0 %v3857_v31  ;;  %v2980_v31 = vld [vmem:[%s7071_s4 + $0x28] sm:$0xff] }
 0x138   :  { %1812 = vrot.lane.b32.xlu1 %v5101_v29, %s4270_s18  ;;  %v5180_v34 = vpop.permute.xlu0 %2500  ;;  %v3861_v52 = vpack.c.bf16 %v2980_v31, %v2979_v49  ;;  %3860 = vmatprep.subr.bf16.mxu0 %v3859_v41  ;;  %v2999_v41 = vld [vmem:[%s7071_s4 + $0xc0] sm:$0xff]  ;;  %v3000_v49 = vld [vmem:[%s7071_s4 + $0xc8] sm:$0xff] }
 0x139   :  { %1810 = vrot.lane.b32.xlu0 %v5106_v57, %s4270_s18  ;;  %v3867_v31 = vpack.c.bf16 %v3000_v49, %v2999_v41  ;;  %v3871_v49 = vpack.c.bf16 %v3002_v54, %v3001_v0  ;;  %v3003_v54 = vld [vmem:[%s7071_s4 + $0xe0] sm:$0xff] }
 0x13b   :  { %3862 = vmatpush3.bf16.msra.mxu0 %v3861_v52  ;;  %v2983_v52 = vld [vmem:[%s7071_s4 + $0x40] sm:$0xff] }
 0x13c   :  { %2167 = vrot.lane.b32.xlu1 %v5101_v29, %s4271_s19  ;;  %v5170_v29 = vpop.permute.xlu1 %2505  ;;  %3864 = vmatprep.subr.bf16.mxu0 %v3863_v21  ;;  %v5202_v62 = vpop.permute.xlu0 %2011  ;;  %v3869_v48 = vpack.c.bf16 %v2984_v30, %v2983_v52  ;;  %v2986_v52 = vld [vmem:[%s7071_s4 + $0x58] sm:$0xff] }
 0x13d   :  { %2165 = vrot.lane.b32.xlu0 %v5106_v57, %s4271_s19  ;;  %v3988_v21 = vpop.eup %3987 }
 0x13f   :  { %3866 = vmatpush3.bf16.msra.mxu0 %v3865_v63  ;;  %v3990_v63 = vpop.eup %3989 }
 0x140   :  { %1106 = vrot.lane.b32.xlu1 %v5159_v22, %s4268_s16  ;;  %v5200_v13 = vpop.permute.xlu1 %2016  ;;  %3868 = vmatprep.subr.bf16.mxu0 %v3867_v31  ;;  %v2985_v31 = vld [vmem:[%s7071_s4 + $0x50] sm:$0xff]  ;;  %v5236_v30 = vpop.permute.xlu0 %1931  ;;  %v5244_v0 = vmul.f32 %v3990_v63, %v5084_v50  ;;  %v2988_v50 = vld [vmem:[%s7071_s4 + $0x68] sm:$0xff] }
 0x141   :  { %1104 = vrot.lane.b32.xlu0 %v5162_v23, %s4268_s16  ;;  %7152 = vst [vmem:[#allocation68_spill] sm:$0xff] %v5236_v30  ;;  %v3004_v30 = vld [vmem:[%s7071_s4 + $0xe8] sm:$0xff] }
 0x143   :  { %3870 = vmatpush3.bf16.msra.mxu0 %v3869_v48  ;;  %v3873_v48 = vpack.c.bf16 %v2986_v52, %v2985_v31  ;;  %v3875_v31 = vpack.c.bf16 %v3004_v30, %v3003_v54  ;;  %v3005_v52 = vld [vmem:[%s7071_s4 + $0xf0] sm:$0xff]  ;;  %v3006_v30 = vld [vmem:[%s7071_s4 + $0xf8] sm:$0xff] }
 0x144   :  { %1461 = vrot.lane.b32.xlu1 %v5159_v22, %s4269_s17  ;;  %v5226_v41 = vpop.permute.xlu1 %1936  ;;  %3872 = vmatprep.subr.bf16.mxu0 %v3871_v49  ;;  %v5264_v49 = vpop.permute.xlu0 %2366  ;;  %v3879_v54 = vpack.c.bf16 %v3006_v30, %v3005_v52 }
 0x145   :  { %1459 = vrot.lane.b32.xlu0 %v5162_v23, %s4269_s17  ;;  %7151 = vst [vmem:[#allocation67_spill] sm:$0xff] %v5226_v41  ;;  %v5241_v41 = vmul.f32 %v3988_v21, %v5081_v55  ;;  %v2987_v55 = vld [vmem:[%s7071_s4 + $0x60] sm:$0xff]  ;;  %7154 = vst [vmem:[#allocation70_spill] sm:$0xff] %v5264_v49  ;;  %v1037_v49 = vmul.f32 %v4844_v2, %v4962_v53  ;;  %v2238_v53 = vld [vmem:[%s7070_s3 + $0x670] sm:$0xff] }
 0x146   :  { %v3877_v21 = vpack.c.bf16 %v2988_v50, %v2987_v55  ;;  %v2990_v55 = vld [vmem:[%s7071_s4 + $0x78] sm:$0xff]  ;;  %v5286_v50 = vadd.f32 %v5013_v17, %v4722_v7  ;;  %v77_v7 = vld [vmem:[%s7070_s3 + $0x1a8] sm:$0xff]  ;;  %v76_v17 = vld [vmem:[%s7070_s3 + $0x1a0] sm:$0xff] }
 0x147   :  { %3874 = vmatpush3.bf16.msra.mxu0 %v3873_v48  ;;  %v5274_v48 = vadd.f32 %v5006_v33, %v4724_v8 }
 0x148   :  { %1816 = vrot.lane.b32.xlu1 %v5159_v22, %s4270_s18  ;;  %v5262_v63 = vpop.permute.xlu1 %2371  ;;  %3876 = vmatprep.subr.bf16.mxu0 %v3875_v31  ;;  %v2989_v31 = vld [vmem:[%s7071_s4 + $0x70] sm:$0xff]  ;;  %v3519_v52 = vmul.f32 -1.442695, %v5286_v50  ;;  %v5296_v30 = vpop.permute.xlu0 %2286 }
 0x149   :  { %1814 = vrot.lane.b32.xlu0 %v5162_v23, %s4270_s18  ;;  %7153 = vst [vmem:[#allocation69_spill] sm:$0xff] %v5262_v63  ;;  %v3881_v8 = vpack.c.bf16 %v2990_v55, %v2989_v31  ;;  %v3520_v33 = vmul.f32 -1.442695, %v5274_v48  ;;  %7156 = vst [vmem:[#allocation72_spill] sm:$0xff] %v5296_v30  ;;  %v5312_v31 = vadd.f32 %v4922_v40, %v4732_v11  ;;  %v1529_v55 = vld [vmem:[%s7070_s3 + $0x378] sm:$0xff]  ;;  %v1528_v30 = vld [vmem:[%s7070_s3 + $0x370] sm:$0xff] }
 0x14b   :  { %3878 = vmatpush3.bf16.msra.mxu0 %v3877_v21  ;;  %3991 = vpow2.f32 %v3520_v33  ;;  %v3503_v11 = vmul.f32 -1.442695, %v5312_v31 }
 0x14c   :  { %2171 = vrot.lane.b32.xlu1 %v5159_v22, %s4271_s19  ;;  %3880 = vmatprep.subr.bf16.mxu0 %v3879_v54  ;;  %v5291_v21 = vpop.permute.xlu1 %2291  ;;  %v5308_v54 = vadd.f32 %v4920_v39, %v4734_v12  ;;  %3993 = vpow2.f32 %v3519_v52  ;;  %v5322_v12 = vpop.permute.xlu0 %988  ;;  %v61_v52 = vld [vmem:[%s7070_s3 + $0x128] sm:$0xff] }
 0x14d   :  { %2169 = vrot.lane.b32.xlu0 %v5162_v23, %s4271_s19  ;;  %7155 = vst [vmem:[#allocation71_spill] sm:$0xff] %v5291_v21  ;;  %7158 = vst [vmem:[#allocation74_spill] sm:$0xff] %v5322_v12 }
 0x14e   :  { %v3504_v39 = vmul.f32 -1.442695, %v5308_v54 }
 0x14f   :  { %3882 = vmatpush3.bf16.msra.mxu0 %v3881_v8 }
 0x150   :  { %1110 = vrot.lane.b32.xlu1 %v5241_v41, %s4268_s16  ;;  %v5317_v8 = vpop.permute.xlu1 %993  ;;  %3995 = vpow2.f32 %v3504_v39  ;;  %v5330_v33 = vpop.permute.xlu0 %1311  ;;  %v1900_v39 = vld [vmem:[%s7070_s3 + $0x5f8] sm:$0xff] }
 0x151   :  { %1108 = vrot.lane.b32.xlu0 %v5244_v0, %s4268_s16  ;;  %7157 = vst [vmem:[#allocation73_spill] sm:$0xff] %v5317_v8  ;;  %3997 = vpow2.f32 %v3503_v11  ;;  %7160 = vst [vmem:[#allocation76_spill] sm:$0xff] %v5330_v33  ;;  %v1899_v8 = vld [vmem:[%s7070_s3 + $0x5f0] sm:$0xff] }
 0x154   :  { %1465 = vrot.lane.b32.xlu1 %v5241_v41, %s4269_s17  ;;  %v5326_v40 = vpop.permute.xlu1 %1316  ;;  %v5348_v33 = vpop.permute.xlu0 %908 }
 0x155   :  { %1463 = vrot.lane.b32.xlu0 %v5244_v0, %s4269_s17  ;;  %7159 = vst [vmem:[#allocation75_spill] sm:$0xff] %v5326_v40  ;;  %7162 = vst [vmem:[#allocation78_spill] sm:$0xff] %v5348_v33 }
 0x158   :  { %1820 = vrot.lane.b32.xlu1 %v5241_v41, %s4270_s18  ;;  %v5343_v12 = vpop.permute.xlu1 %913 }
 0x159   :  { %1818 = vrot.lane.b32.xlu0 %v5244_v0, %s4270_s18  ;;  %7161 = vst [vmem:[#allocation77_spill] sm:$0xff] %v5343_v12 }
 0x15c   :  { %2595 = vperm.xlu1 %3942, %v77_v7   ;;  %v3992_v7 = vpop.eup %3991 }
 0x15d   :  { %2590 = vperm.xlu0 %3941, %v76_v17   ;;  %v3994_v17 = vpop.eup %3993 }
 0x15e   :  { %v736_v11 = vadd.f32 1.0, %v3994_v17  ;;  %v3996_v40 = vpop.eup %3995  ;;  %v5354_v17 = vpop.permute.xlu0 %1231 }
 0x15f   :  { %7164 = vst [vmem:[#allocation80_spill] sm:$0xff] %v5354_v17 }
 0x160   :  { %1591 = vperm.xlu1 %3942, %v1529_v55   ;;  %v737_v55 = vadd.f32 1.0, %v3992_v7  ;;  %v5350_v7 = vpop.permute.xlu1 %1236 }
 0x161   :  { %1586 = vperm.xlu0 %3941, %v1528_v30   ;;  %v60_v30 = vld [vmem:[%s7070_s3 + $0x120] sm:$0xff]  ;;  %7163 = vst [vmem:[#allocation79_spill] sm:$0xff] %v5350_v7 }
 0x162   :  { %3999 = vrcp.f32 %v737_v55  ;;  %v5369_v17 = vpop.permute.xlu0 %1666 }
 0x163   :  { %4001 = vrcp.f32 %v736_v11  ;;  %v7075_v11 = vlaneseq  ;;  %7166 = vst [vmem:[#allocation82_spill] sm:$0xff] %v5369_v17 }
 0x164   :  { %1788 = vrot.lane.b32.xlu1 %v5073_v51, %s4270_s18 }
 0x165   :  { %1786 = vrot.lane.b32.xlu0 %v5078_v42, %s4270_s18  ;;  %v5367_v33 = vand.u32 127, %v7075_v11 }
 0x167   :  { %vm1132_vm1 = vcmp.ge.s32.totalorder %v5367_v33, 2  ;;  %vm1487_vm2 = vcmp.ge.s32.totalorder %v5367_v33, 1  ;;  %vm1842_vm3 = vcmp.lt.s32.totalorder %v5367_v33, 127  ;;  %vm2197_vm4 = vcmp.lt.s32.totalorder %v5367_v33, 126 }
 0x168   :  { %2515 = vperm.xlu1 %3942, %v61_v52   ;;  %v3998_v52 = vpop.eup %3997 }
 0x169   :  { %2510 = vperm.xlu0 %3941, %v60_v30   ;;  %v721_v30 = vadd.f32 1.0, %v3996_v40  ;;  %v720_v55 = vadd.f32 1.0, %v3998_v52  ;;  %v5364_v40 = vpop.permute.xlu1 %1671 }
 0x16a   :  { %7165 = vst [vmem:[#allocation81_spill] sm:$0xff] %v5364_v40 }
 0x16b   :  { %4003 = vrcp.f32 %v721_v30 }
 0x16c   :  { %2026 = vperm.xlu1 %3942, %v1900_v39   ;;  %v1884_v39 = vld [vmem:[%s7070_s3 + $0x578] sm:$0xff]  ;;  %4005 = vrcp.f32 %v720_v55  ;;  %v4000_v12 = vpop.eup %3999 }
 0x16d   :  { %2021 = vperm.xlu0 %3941, %v1899_v8   ;;  %v1883_v8 = vld [vmem:[%s7070_s3 + $0x570] sm:$0xff]  ;;  %v4002_v7 = vpop.eup %4001  ;;  %v5376_v52 = vmul.f32 %v4000_v12, %v5274_v48  ;;  %v2255_v48 = vld [vmem:[%s7070_s3 + $0x6f8] sm:$0xff] }
 0x170   :  { %2175 = vrot.lane.b32.xlu1 %v5241_v41, %s4271_s19 }
 0x171   :  { %2173 = vrot.lane.b32.xlu0 %v5244_v0, %s4271_s19 }
 0x174   :  { %1946 = vperm.xlu1 %3942, %v1884_v39   ;;  %v5380_v39 = vmul.f32 %v4002_v7, %v5286_v50  ;;  %v2254_v7 = vld [vmem:[%s7070_s3 + $0x6f0] sm:$0xff] }
 0x175   :  { %1941 = vperm.xlu0 %3941, %v1883_v8   ;;  %v4004_v11 = vpop.eup %4003 }
 0x176   :  { %v4006_v40 = vpop.eup %4005 }
 0x178   :  { %2143 = vrot.lane.b32.xlu1 %v5073_v51, %s4271_s19  ;;  %v5405_v51 = vmul.f32 %v4004_v11, %v5308_v54 }
 0x179   :  { %2141 = vrot.lane.b32.xlu0 %v5078_v42, %s4271_s19 }
 0x17a   :  { %v1071_v30 = vpop.permute.xlu1 %1070 }
 0x17b   :  { %v1069_v55 = vpop.permute.xlu0 %1068  ;;  %v1136_v8 = vsel %vm1132_vm1, %v1071_v30, 0.0 }
 0x17c   :  { %1114 = vrot.lane.b32.xlu1 %v5376_v52, %s4268_s16  ;;  %v1135_v50 = vsel %vm1132_vm1, %v1069_v55, 0.0  ;;  %v1360_v21 = vmul.f32 %v4854_v10, %v1136_v8  ;;  %v5411_v10 = vmul.f32 %v4006_v40, %v5312_v31  ;;  %v1036_v8 = vmul.f32 %v4842_v1, %v4966_v5 }
 0x17d   :  { %1112 = vrot.lane.b32.xlu0 %v5380_v39, %s4268_s16  ;;  %v1359_v55 = vmul.f32 %v4852_v9, %v1135_v50 }
 0x17e   :  { %v1426_v12 = vpop.permute.xlu1 %1425  ;;  %v1392_v54 = vadd.f32 %v1360_v21, %v1037_v49 }
 0x17f   :  { %v1491_v17 = vsel %vm1487_vm2, %v1426_v12, 0.0  ;;  %v1424_v30 = vpop.permute.xlu0 %1423 }
 0x180   :  { %v1490_v42 = vsel %vm1487_vm2, %v1424_v30, 0.0  ;;  %2381 = vperm.xlu1 %3942, %v2255_v48   ;;  %v1715_v12 = vmul.f32 %v4874_v26, %v1491_v17  ;;  %v1391_v26 = vadd.f32 %v1359_v55, %v1036_v8 }
 0x181   :  { %2376 = vperm.xlu0 %3941, %v2254_v7   ;;  %v1714_v48 = vmul.f32 %v4872_v25, %v1490_v42  ;;  %v2239_v25 = vld [vmem:[%s7070_s3 + $0x678] sm:$0xff]  ;;  %v869_v7 = vld [vmem:[%s7070_s3 + $0x508] sm:$0xff] }
 0x182   :  { %v1781_v63 = vpop.permute.xlu1 %1780  ;;  %v1747_v5 = vadd.f32 %v1715_v12, %v1392_v54  ;;  %v868_v12 = vld [vmem:[%s7070_s3 + $0x500] sm:$0xff] }
 0x183   :  { %v1846_v9 = vsel %vm1842_vm3, %v1781_v63, 0.0  ;;  %v1779_v50 = vpop.permute.xlu0 %1778  ;;  %v1746_v42 = vadd.f32 %v1714_v48, %v1391_v26 }
 0x184   :  { %v2070_v11 = vmul.f32 %v4888_v38, %v1846_v9  ;;  %v1845_v2 = vsel %vm1842_vm3, %v1779_v50, 0.0  ;;  %1082 = vrot.lane.b32.xlu1 %v5405_v51, %s4268_s16  ;;  %v1192_v50 = vld [vmem:[%s7070_s3 + $0x308] sm:$0xff] }
 0x185   :  { %v2069_v1 = vmul.f32 %v4886_v37, %v1845_v2  ;;  %1080 = vrot.lane.b32.xlu0 %v5411_v10, %s4268_s16 }
 0x186   :  { %v2136_v38 = vpop.permute.xlu1 %2135  ;;  %v2102_v21 = vadd.f32 %v2070_v11, %v1747_v5 }
 0x187   :  { %v2201_v63 = vsel %vm2197_vm4, %v2136_v38, 0.0  ;;  %v2134_v49 = vpop.permute.xlu0 %2133  ;;  %v2101_v17 = vadd.f32 %v2069_v1, %v1746_v42 }
 0x188   :  { %v2425_v37 = vmul.f32 %v4896_v46, %v2201_v63  ;;  %v2200_v31 = vsel %vm2197_vm4, %v2134_v49, 0.0  ;;  %2301 = vperm.xlu1 %3942, %v2239_v25   ;;  %v1038_v49 = vmul.f32 %v4914_v61, %v5016_v4 }
 0x189   :  { %v2424_v40 = vmul.f32 %v4894_v45, %v2200_v31  ;;  %2296 = vperm.xlu0 %3941, %v2238_v53   ;;  %v1039_v53 = vmul.f32 %v4916_v44, %v5011_v6 }
 0x18a   :  { %v2457_v30 = vadd.f32 %v2425_v37, %v2102_v21  ;;  %v1075_v55 = vpop.permute.xlu1 %1074 }
 0x18b   :  { %v2456_v8 = vadd.f32 %v2424_v40, %v2101_v17  ;;  %v1073_v46 = vpop.permute.xlu0 %1072  ;;  %v1138_v45 = vsel %vm1132_vm1, %v1075_v55, 0.0 }
 0x18c   :  { %v5446_v48 = vadd.f32 %v4970_v14, %v2457_v30  ;;  %1003 = vperm.xlu1 %3942, %v869_v7   ;;  %v1137_v11 = vsel %vm1132_vm1, %v1073_v46, 0.0  ;;  %v1191_v14 = vld [vmem:[%s7070_s3 + $0x300] sm:$0xff]  ;;  %v1362_v25 = vmul.f32 %v4926_v60, %v1138_v45  ;;  %v1176_v46 = vld [vmem:[%s7070_s3 + $0x288] sm:$0xff] }
 0x18d   :  { %v5449_v9 = vadd.f32 %v4968_v59, %v2456_v8  ;;  %998 = vperm.xlu0 %3941, %v868_v12   ;;  %v1361_v38 = vmul.f32 %v4924_v35, %v1137_v11 }
 0x18e   :  { %v3530_v54 = vmul.f32 -1.442695, %v5446_v48  ;;  %v1430_v2 = vpop.permute.xlu1 %1429  ;;  %v1394_v31 = vadd.f32 %v1362_v25, %v1039_v53 }
 0x18f   :  { %v3529_v59 = vmul.f32 -1.442695, %v5449_v9  ;;  %v1493_v26 = vsel %vm1487_vm2, %v1430_v2, 0.0  ;;  %v1428_v1 = vpop.permute.xlu0 %1427 }
 0x190   :  { %4007 = vpow2.f32 %v3530_v54  ;;  %v1492_v5 = vsel %vm1487_vm2, %v1428_v1, 0.0  ;;  %1326 = vperm.xlu1 %3942, %v1192_v50   ;;  %v1717_v42 = vmul.f32 %v4957_v24, %v1493_v26  ;;  %v1393_v24 = vadd.f32 %v1361_v38, %v1038_v49  ;;  %v1546_v49 = vld [vmem:[%s7070_s3 + $0x400] sm:$0xff] }
 0x191   :  { %4009 = vpow2.f32 %v3529_v59  ;;  %1321 = vperm.xlu0 %3941, %v1191_v14   ;;  %v1716_v21 = vmul.f32 %v4955_v28, %v1492_v5  ;;  %v853_v28 = vld [vmem:[%s7070_s3 + $0x488] sm:$0xff] }
 0x192   :  { %v1785_v63 = vpop.permute.xlu1 %1784  ;;  %v1749_v61 = vadd.f32 %v1717_v42, %v1394_v31  ;;  %v5532_v42 = vadd.f32 %v5034_v56, %v4742_v15 }
 0x193   :  { %v1848_v60 = vsel %vm1842_vm3, %v1785_v63, 0.0  ;;  %v1783_v37 = vpop.permute.xlu0 %1782  ;;  %v1748_v6 = vadd.f32 %v1716_v21, %v1393_v24  ;;  %v5547_v24 = vadd.f32 %v4928_v36, %v4754_v20  ;;  %v79_v36 = vld [vmem:[%s7070_s3 + $0x1b8] sm:$0xff] }
 0x194   :  { %v2072_v17 = vmul.f32 %v4994_v47, %v1848_v60  ;;  %v1847_v35 = vsel %vm1842_vm3, %v1783_v37, 0.0  ;;  %1469 = vrot.lane.b32.xlu1 %v5376_v52, %s4269_s17  ;;  %v852_v47 = vld [vmem:[%s7070_s3 + $0x480] sm:$0xff]  ;;  %v3521_v60 = vmul.f32 -1.442695, %v5532_v42 }
 0x195   :  { %v2071_v44 = vmul.f32 %v4992_v3, %v1847_v35  ;;  %1467 = vrot.lane.b32.xlu0 %v5380_v39, %s4269_s17 }
 0x196   :  { %v2140_v4 = vpop.permute.xlu1 %2139  ;;  %v2104_v30 = vadd.f32 %v2072_v17, %v1749_v61 }
 0x197   :  { %v2203_v40 = vsel %vm2197_vm4, %v2140_v4, 0.0  ;;  %v2138_v7 = vpop.permute.xlu0 %2137  ;;  %v2103_v12 = vadd.f32 %v2071_v44, %v1748_v6  ;;  %v5557_v4 = vadd.f32 %v4930_v32, %v4752_v19  ;;  %v7167_v6 = vld [vmem:[#allocation19_spill] sm:$0xff]  ;;  %v7170_v19 = vld [vmem:[#allocation17_spill] sm:$0xff] }
 0x198   :  { %v2427_v3 = vmul.f32 %v5023_v27, %v2203_v40  ;;  %v2202_v55 = vsel %vm2197_vm4, %v2138_v7, 0.0  ;;  %923 = vperm.xlu1 %3942, %v853_v28   ;;  %v1175_v27 = vld [vmem:[%s7070_s3 + $0x280] sm:$0xff]  ;;  %v7169_v40 = vld [vmem:[#allocation18_spill] sm:$0xff]  ;;  %v1052_v32 = vmul.f32 %v7170_v19, %v5106_v57  ;;  %v7174_v57 = vld [vmem:[#allocation23_spill] sm:$0xff] }
 0x199   :  { %v2426_v8 = vmul.f32 %v5021_v18, %v2202_v55  ;;  %918 = vperm.xlu0 %3941, %v852_v47   ;;  %v78_v55 = vld [vmem:[%s7070_s3 + $0x1b0] sm:$0xff] }
 0x19a   :  { %v4008_v45 = vpop.eup %4007  ;;  %v2459_v50 = vadd.f32 %v2427_v3, %v2104_v30  ;;  %v5500_v54 = vpop.permute.xlu1 %1078  ;;  %v7171_v30 = vld [vmem:[#allocation21_spill] sm:$0xff]  ;;  %v7178_v19 = vld [vmem:[#allocation35_spill] sm:$0xff] }
 0x19b   :  { %v4010_v11 = vpop.eup %4009  ;;  %v2777_v2 = vadd.f32 1.0, %v4008_v45  ;;  %v2458_v14 = vadd.f32 %v2426_v8, %v2103_v12  ;;  %v5505_v59 = vpop.permute.xlu0 %1076 }
 0x19c   :  { %v2776_v26 = vadd.f32 1.0, %v4010_v11  ;;  %v5508_v18 = vadd.f32 %v5170_v29, %v2459_v50  ;;  %1246 = vperm.xlu1 %3942, %v1176_v46   ;;  %v5523_v29 = vadd.f32 %v5030_v43, %v4744_v16  ;;  %v7172_v46 = vld [vmem:[#allocation20_spill] sm:$0xff] }
 0x19d   :  { %4011 = vrcp.f32 %v2777_v2  ;;  %v5511_v1 = vadd.f32 %v5180_v34, %v2458_v14  ;;  %1241 = vperm.xlu0 %3941, %v1175_v27   ;;  %v1547_v34 = vld [vmem:[%s7070_s3 + $0x408] sm:$0xff] }
 0x19e   :  { %4013 = vrcp.f32 %v2776_v26  ;;  %v3532_v25 = vmul.f32 -1.442695, %v5508_v18  ;;  %v5514_v5 = vpop.permute.xlu1 %1433  ;;  %v3522_v16 = vmul.f32 -1.442695, %v5523_v29 }
 0x19f   :  { %v3531_v38 = vmul.f32 -1.442695, %v5511_v1  ;;  %v5517_v53 = vpop.permute.xlu0 %1431 }
 0x1a0   :  { %4015 = vpow2.f32 %v3532_v25  ;;  %1437 = vrot.lane.b32.xlu1 %v5405_v51, %s4269_s17 }
 0x1a1   :  { %4017 = vpow2.f32 %v3531_v38  ;;  %1435 = vrot.lane.b32.xlu0 %v5411_v10, %s4269_s17 }
 0x1a2   :  { %v1103_v63 = vpop.permute.xlu1 %1102  ;;  %4019 = vpow2.f32 %v3522_v16 }
 0x1a3   :  { %v1101_v21 = vpop.permute.xlu0 %1100  ;;  %v1152_v43 = vsel %vm1132_vm1, %v1103_v63, 0.0  ;;  %4021 = vpow2.f32 %v3521_v60  ;;  %v1530_v60 = vld [vmem:[%s7070_s3 + $0x380] sm:$0xff] }
 0x1a4   :  { %1681 = vperm.xlu1 %3942, %v1547_v34   ;;  %v1151_v37 = vsel %vm1132_vm1, %v1101_v21, 0.0  ;;  %v1376_v28 = vmul.f32 %v4834_v58, %v1152_v43  ;;  %v7175_v34 = vld [vmem:[#allocation22_spill] sm:$0xff]  ;;  %v3506_v21 = vmul.f32 -1.442695, %v5547_v24 }
 0x1a5   :  { %1676 = vperm.xlu0 %3941, %v1546_v49   ;;  %v1375_v20 = vmul.f32 %v7167_v6, %v1151_v37  ;;  %v1531_v49 = vld [vmem:[%s7070_s3 + $0x388] sm:$0xff]  ;;  %v3505_v37 = vmul.f32 -1.442695, %v5557_v4 }
 0x1a6   :  { %v1458_v15 = vpop.permute.xlu1 %1457 }
 0x1a7   :  { %v4012_v56 = vpop.eup %4011  ;;  %v1507_v31 = vsel %vm1487_vm2, %v1458_v15, 0.0  ;;  %v1456_v17 = vpop.permute.xlu0 %1455  ;;  %v1407_v38 = vadd.f32 %v1375_v20, %v1052_v32 }
 0x1a8   :  { %v4014_v35 = vpop.eup %4013  ;;  %v2873_v44 = vmul.f32 %v4012_v56, %v5446_v48  ;;  %v1506_v61 = vsel %vm1487_vm2, %v1456_v17, 0.0  ;;  %1824 = vrot.lane.b32.xlu1 %v5376_v52, %s4270_s18  ;;  %v7168_v48 = vld [vmem:[#allocation60_spill] sm:$0xff]  ;;  %v1731_v3 = vmul.f32 %v7171_v30, %v1507_v31  ;;  %v7179_v30 = vld [vmem:[#allocation34_spill] sm:$0xff] }
 0x1a9   :  { %v2872_v47 = vmul.f32 %v4014_v35, %v5449_v9  ;;  %1822 = vrot.lane.b32.xlu0 %v5380_v39, %s4270_s18  ;;  %v1053_v7 = vmul.f32 %v7169_v40, %v7168_v48  ;;  %v1730_v45 = vmul.f32 %v7172_v46, %v1506_v61  ;;  %v7176_v35 = vld [vmem:[#allocation25_spill] sm:$0xff] }
 0x1aa   :  { %v4016_v58 = vpop.eup %4015  ;;  %v1813_v9 = vpop.permute.xlu1 %1812 }
 0x1ab   :  { %v4018_v12 = vpop.eup %4017  ;;  %v2779_v8 = vadd.f32 1.0, %v4016_v58  ;;  %v1862_v50 = vsel %vm1842_vm3, %v1813_v9, 0.0  ;;  %v1811_v27 = vpop.permute.xlu0 %1810  ;;  %v5577_v11 = vpack.c.bf16 %v2873_v44, %v2872_v47  ;;  %v1408_v14 = vadd.f32 %v1376_v28, %v1053_v7  ;;  %v7177_v47 = vld [vmem:[#allocation24_spill] sm:$0xff] }
 0x1ac   :  { %v2778_v2 = vadd.f32 1.0, %v4018_v12  ;;  %v2086_v26 = vmul.f32 %v7174_v57, %v1862_v50  ;;  %v1861_v25 = vsel %vm1842_vm3, %v1811_v27, 0.0  ;;  %2605 = vperm.xlu1 %3942, %v79_v36   ;;  %v1762_v15 = vadd.f32 %v1730_v45, %v1407_v38  ;;  %v4020_v58 = vpop.eup %4019  ;;  %v62_v45 = vld [vmem:[%s7070_s3 + $0x130] sm:$0xff] }
 0x1ad   :  { %7173 = vst [vmem:[#allocation19_spill] sm:$0xff] %v5577_v11  ;;  %4023 = vrcp.f32 %v2779_v8  ;;  %v2085_v63 = vmul.f32 %v7175_v34, %v1861_v25  ;;  %2600 = vperm.xlu0 %3941, %v78_v55   ;;  %v1763_v16 = vadd.f32 %v1731_v3, %v1408_v14  ;;  %v4022_v7 = vpop.eup %4021  ;;  %v63_v55 = vld [vmem:[%s7070_s3 + $0x138] sm:$0xff]  ;;  %v7180_v25 = vld [vmem:[#allocation29_spill] sm:$0xff] }
 0x1ae   :  { %4025 = vrcp.f32 %v2778_v2  ;;  %v2168_v43 = vpop.permute.xlu1 %2167 }
 0x1af   :  { %v2217_v56 = vsel %vm2197_vm4, %v2168_v43, 0.0  ;;  %v2166_v31 = vpop.permute.xlu0 %2165  ;;  %v2118_v17 = vadd.f32 %v2086_v26, %v1763_v16  ;;  %v2117_v61 = vadd.f32 %v2085_v63, %v1762_v15  ;;  %4027 = vpow2.f32 %v3506_v21  ;;  %v7181_v21 = vld [vmem:[#allocation28_spill] sm:$0xff]  ;;  %v1902_v43 = vld [vmem:[%s7070_s3 + $0x608] sm:$0xff]  ;;  %v7183_v15 = vld [vmem:[#allocation31_spill] sm:$0xff] }
 0x1b0   :  { %v2441_v44 = vmul.f32 %v7176_v35, %v2217_v56  ;;  %v2216_v28 = vsel %vm2197_vm4, %v2166_v31, 0.0  ;;  %1601 = vperm.xlu1 %3942, %v1531_v49   ;;  %4029 = vpow2.f32 %v3505_v37  ;;  %v739_v63 = vadd.f32 1.0, %v4020_v58 }
 0x1b1   :  { %v2440_v6 = vmul.f32 %v7177_v47, %v2216_v28  ;;  %1596 = vperm.xlu0 %3941, %v1530_v60   ;;  %v738_v60 = vadd.f32 1.0, %v4022_v7 }
 0x1b2   :  { %v2473_v20 = vadd.f32 %v2441_v44, %v2118_v17  ;;  %v1107_v36 = vpop.permute.xlu1 %1106  ;;  %v1901_v17 = vld [vmem:[%s7070_s3 + $0x600] sm:$0xff]  ;;  %v7185_v44 = vld [vmem:[#allocation30_spill] sm:$0xff] }
 0x1b3   :  { %v2472_v48 = vadd.f32 %v2440_v6, %v2117_v61  ;;  %v1105_v40 = vpop.permute.xlu0 %1104  ;;  %v1154_v9 = vsel %vm1132_vm1, %v1107_v36, 0.0  ;;  %v7187_v36 = vld [vmem:[#allocation41_spill] sm:$0xff] }
 0x1b4   :  { %v5598_v32 = vadd.f32 %v7178_v19, %v2473_v20  ;;  %1792 = vrot.lane.b32.xlu1 %v5405_v51, %s4270_s18  ;;  %v1153_v8 = vsel %vm1132_vm1, %v1105_v40, 0.0  ;;  %v1378_v38 = vmul.f32 %v7180_v25, %v1154_v9 }
 0x1b5   :  { %v5603_v3 = vadd.f32 %v7179_v30, %v2472_v48  ;;  %1790 = vrot.lane.b32.xlu0 %v5411_v10, %s4270_s18  ;;  %v1377_v16 = vmul.f32 %v7181_v21, %v1153_v8 }
 0x1b6   :  { %v3546_v12 = vmul.f32 -1.442695, %v5598_v32  ;;  %v1462_v46 = vpop.permute.xlu1 %1461 }
 0x1b7   :  { %v4024_v50 = vpop.eup %4023  ;;  %v3545_v27 = vmul.f32 -1.442695, %v5603_v3  ;;  %v1509_v2 = vsel %vm1487_vm2, %v1462_v46, 0.0  ;;  %v1460_v14 = vpop.permute.xlu0 %1459 }
 0x1b8   :  { %v4026_v57 = vpop.eup %4025  ;;  %v2875_v26 = vmul.f32 %v4024_v50, %v5508_v18  ;;  %4031 = vpow2.f32 %v3546_v12  ;;  %v1508_v34 = vsel %vm1487_vm2, %v1460_v14, 0.0  ;;  %2525 = vperm.xlu1 %3942, %v63_v55   ;;  %v7182_v18 = vld [vmem:[#allocation27_spill] sm:$0xff]  ;;  %v1733_v56 = vmul.f32 %v7183_v15, %v1509_v2  ;;  %v7192_v15 = vld [vmem:[#allocation64_spill] sm:$0xff] }
 0x1b9   :  { %v2874_v49 = vmul.f32 %v4026_v57, %v5511_v1  ;;  %4033 = vpow2.f32 %v3545_v27  ;;  %2520 = vperm.xlu0 %3941, %v62_v45   ;;  %v1055_v37 = vmul.f32 %v7182_v18, %v5159_v22  ;;  %v7184_v1 = vld [vmem:[#allocation26_spill] sm:$0xff]  ;;  %v1732_v28 = vmul.f32 %v7185_v44, %v1508_v34  ;;  %v4028_v20 = vpop.eup %4027  ;;  %v7189_v27 = vld [vmem:[#allocation43_spill] sm:$0xff] }
 0x1ba   :  { %v1817_v31 = vpop.permute.xlu1 %1816  ;;  %v1054_v35 = vmul.f32 %v7184_v1, %v5162_v23  ;;  %v4030_v40 = vpop.eup %4029  ;;  %4035 = vrcp.f32 %v739_v63  ;;  %v7188_v23 = vld [vmem:[#allocation40_spill] sm:$0xff]  ;;  %v723_v55 = vadd.f32 1.0, %v4028_v20  ;;  %v7191_v18 = vld [vmem:[#allocation63_spill] sm:$0xff] }
 0x1bb   :  { %v1864_v61 = vsel %vm1842_vm3, %v1817_v31, 0.0  ;;  %v1815_v47 = vpop.permute.xlu0 %1814  ;;  %v5641_v6 = vpack.c.bf16 %v2875_v26, %v2874_v49  ;;  %v1410_v22 = vadd.f32 %v1378_v38, %v1055_v37  ;;  %4037 = vrcp.f32 %v738_v60  ;;  %v7190_v26 = vld [vmem:[#allocation42_spill] sm:$0xff]  ;;  %v1885_v49 = vld [vmem:[%s7070_s3 + $0x580] sm:$0xff] }
 0x1bc   :  { %v2088_v58 = vmul.f32 %v7187_v36, %v1864_v61  ;;  %v1863_v48 = vsel %vm1842_vm3, %v1815_v47, 0.0  ;;  %2036 = vperm.xlu1 %3942, %v1902_v43   ;;  %v1409_v7 = vadd.f32 %v1377_v16, %v1054_v35  ;;  %v722_v45 = vadd.f32 1.0, %v4030_v40  ;;  %v1886_v38 = vld [vmem:[%s7070_s3 + $0x588] sm:$0xff] }
 0x1bd   :  { %7186 = vst [vmem:[#allocation60_spill] sm:$0xff] %v5641_v6  ;;  %v2087_v19 = vmul.f32 %v7188_v23, %v1863_v48  ;;  %2031 = vperm.xlu0 %3941, %v1901_v17   ;;  %v1765_v30 = vadd.f32 %v1733_v56, %v1410_v22  ;;  %4039 = vrcp.f32 %v723_v55  ;;  %v2257_v22 = vld [vmem:[%s7070_s3 + $0x708] sm:$0xff] }
 0x1be   :  { %v2172_v9 = vpop.permute.xlu1 %2171  ;;  %v1764_v12 = vadd.f32 %v1732_v28, %v1409_v7  ;;  %4041 = vrcp.f32 %v722_v45  ;;  %v871_v45 = vld [vmem:[%s7070_s3 + $0x518] sm:$0xff] }
 0x1bf   :  { %v2219_v8 = vsel %vm2197_vm4, %v2172_v9, 0.0  ;;  %v2170_v46 = vpop.permute.xlu0 %2169  ;;  %v2120_v50 = vadd.f32 %v2088_v58, %v1765_v30 }
 0x1c0   :  { %v2443_v2 = vmul.f32 %v7189_v27, %v2219_v8  ;;  %v2218_v14 = vsel %vm2197_vm4, %v2170_v46, 0.0  ;;  %2179 = vrot.lane.b32.xlu1 %v5376_v52, %s4271_s19  ;;  %v2119_v57 = vadd.f32 %v2087_v19, %v1764_v12 }
 0x1c1   :  { %v2442_v25 = vmul.f32 %v7190_v26, %v2218_v14  ;;  %2177 = vrot.lane.b32.xlu0 %v5380_v39, %s4271_s19  ;;  %v1194_v14 = vld [vmem:[%s7070_s3 + $0x318] sm:$0xff] }
 0x1c2   :  { %v4032_v34 = vpop.eup %4031  ;;  %v2475_v63 = vadd.f32 %v2443_v2, %v2120_v50  ;;  %v1111_v61 = vpop.permute.xlu1 %1110  ;;  %v870_v50 = vld [vmem:[%s7070_s3 + $0x510] sm:$0xff] }
 0x1c3   :  { %v4034_v21 = vpop.eup %4033  ;;  %v2793_v16 = vadd.f32 1.0, %v4032_v34  ;;  %v2474_v43 = vadd.f32 %v2442_v25, %v2119_v57  ;;  %v1109_v47 = vpop.permute.xlu0 %1108  ;;  %v1193_v57 = vld [vmem:[%s7070_s3 + $0x310] sm:$0xff] }
 0x1c4   :  { %v2792_v60 = vadd.f32 1.0, %v4034_v21  ;;  %v5664_v37 = vadd.f32 %v7191_v18, %v2475_v63  ;;  %1956 = vperm.xlu1 %3942, %v1886_v38   ;;  %v4036_v17 = vpop.eup %4035  ;;  %v1156_v18 = vsel %vm1132_vm1, %v1111_v61, 0.0 }
 0x1c5   :  { %4043 = vrcp.f32 %v2793_v16  ;;  %v5667_v56 = vadd.f32 %v7192_v15, %v2474_v43  ;;  %1951 = vperm.xlu0 %3941, %v1885_v49   ;;  %v4038_v35 = vpop.eup %4037  ;;  %v5676_v44 = vmul.f32 %v4036_v17, %v5523_v29  ;;  %v2256_v29 = vld [vmem:[%s7070_s3 + $0x700] sm:$0xff]  ;;  %v1155_v15 = vsel %vm1132_vm1, %v1109_v47, 0.0 }
 0x1c6   :  { %4045 = vrcp.f32 %v2792_v60  ;;  %v3548_v31 = vmul.f32 -1.442695, %v5664_v37  ;;  %v5679_v28 = vmul.f32 %v4038_v35, %v5532_v42  ;;  %v1466_v40 = vpop.permute.xlu1 %1465  ;;  %v855_v60 = vld [vmem:[%s7070_s3 + $0x498] sm:$0xff] }
 0x1c7   :  { %v3547_v1 = vmul.f32 -1.442695, %v5667_v56  ;;  %v4040_v20 = vpop.eup %4039  ;;  %v1464_v30 = vpop.permute.xlu0 %1463 }
 0x1c8   :  { %4047 = vpow2.f32 %v3548_v31  ;;  %2147 = vrot.lane.b32.xlu1 %v5405_v51, %s4271_s19  ;;  %v4042_v36 = vpop.eup %4041  ;;  %v5694_v19 = vmul.f32 %v4040_v20, %v5547_v24  ;;  %v2241_v24 = vld [vmem:[%s7070_s3 + $0x688] sm:$0xff]  ;;  %v1511_v31 = vsel %vm1487_vm2, %v1466_v40, 0.0  ;;  %v1510_v61 = vsel %vm1487_vm2, %v1464_v30, 0.0  ;;  %v1178_v20 = vld [vmem:[%s7070_s3 + $0x298] sm:$0xff] }
 0x1c9   :  { %4049 = vpow2.f32 %v3547_v1  ;;  %2145 = vrot.lane.b32.xlu0 %v5411_v10, %s4271_s19  ;;  %v5697_v55 = vmul.f32 %v4042_v36, %v5557_v4  ;;  %v2240_v4 = vld [vmem:[%s7070_s3 + $0x680] sm:$0xff]  ;;  %v7199_v30 = vld [vmem:[#allocation44_spill] sm:$0xff] }
 0x1ca   :  { %v7195_v1 = vld [vmem:[#allocation49_spill] sm:$0xff] }
 0x1cb   :  { %7193 = vst [vmem:[#allocation18_spill] sm:$0xff] %v5697_v55  ;;  %v1380_v35 = vmul.f32 %v7195_v1, %v1156_v18  ;;  %v7204_v18 = vld [vmem:[#allocation69_spill] sm:$0xff] }
 0x1cc   :  { %1118 = vrot.lane.b32.xlu1 %v5676_v44, %s4268_s16 }
 0x1cd   :  { %1116 = vrot.lane.b32.xlu0 %v5679_v28, %s4268_s16 }
 0x1cf   :  { %v4044_v42 = vpop.eup %4043 }
 0x1d0   :  { %v4046_v58 = vpop.eup %4045  ;;  %2391 = vperm.xlu1 %3942, %v2257_v22   ;;  %v2889_v48 = vmul.f32 %v4044_v42, %v5598_v32  ;;  %v1821_v32 = vpop.permute.xlu1 %1820  ;;  %v7196_v22 = vld [vmem:[#allocation48_spill] sm:$0xff]  ;;  %v7197_v42 = vld [vmem:[#allocation45_spill] sm:$0xff] }
 0x1d1   :  { %2386 = vperm.xlu0 %3941, %v2256_v29   ;;  %v2888_v7 = vmul.f32 %v4046_v58, %v5603_v3  ;;  %v1819_v3 = vpop.permute.xlu0 %1818  ;;  %v1379_v47 = vmul.f32 %v7196_v22, %v1155_v15  ;;  %v1866_v36 = vsel %vm1842_vm3, %v1821_v32, 0.0  ;;  %v1177_v29 = vld [vmem:[%s7070_s3 + $0x290] sm:$0xff]  ;;  %v1057_v58 = vmul.f32 %v7197_v42, %v5241_v41  ;;  %v7209_v42 = vld [vmem:[#allocation65_spill] sm:$0xff] }
 0x1d2   :  { %v4048_v23 = vpop.eup %4047  ;;  %v1548_v22 = vld [vmem:[%s7070_s3 + $0x410] sm:$0xff] }
 0x1d3   :  { %v4050_v9 = vpop.eup %4049  ;;  %v2795_v12 = vadd.f32 1.0, %v4048_v23  ;;  %v3819_v8 = vpack.c.bf16 %v2889_v48, %v2888_v7  ;;  %v7198_v48 = vld [vmem:[#allocation61_spill] sm:$0xff]  ;;  %v1865_v7 = vsel %vm1842_vm3, %v1819_v3, 0.0  ;;  %v1412_v41 = vadd.f32 %v1380_v35, %v1057_v58 }
 0x1d4   :  { %v2794_v46 = vadd.f32 1.0, %v4050_v9  ;;  %1086 = vrot.lane.b32.xlu1 %v5694_v19, %s4268_s16  ;;  %v1735_v40 = vmul.f32 %v7198_v48, %v1511_v31  ;;  %v1056_v9 = vmul.f32 %v7199_v30, %v5244_v0  ;;  %v2089_v3 = vmul.f32 %v5202_v62, %v1865_v7  ;;  %v7205_v31 = vld [vmem:[#allocation59_spill] sm:$0xff]  ;;  %v7210_v30 = vld [vmem:[#allocation5_spill] sm:$0xff] }
 0x1d5   :  { %4051 = vrcp.f32 %v2795_v12  ;;  %1084 = vrot.lane.b32.xlu0 %v5697_v55, %s4268_s16  ;;  %3820 = vmatprep.subr.bf16.mxu1 %v3819_v8  ;;  %v7200_v12 = vld [vmem:[#allocation62_spill] sm:$0xff]  ;;  %v1139_v0 = vsel %vm1132_vm1, %v5505_v59, 0.0  ;;  %v1494_v59 = vsel %vm1487_vm2, %v5517_v53, 0.0 }
 0x1d6   :  { %4053 = vrcp.f32 %v2794_v46  ;;  %3900 = vmatprep.subr.bf16.mxu0 %v3819_v8  ;;  %3822 = vmatpush3.bf16.xpose.msra.mxu1 %v5577_v11  ;;  %v1734_v8 = vmul.f32 %v7200_v12, %v1510_v61  ;;  %v1411_v32 = vadd.f32 %v1379_v47, %v1056_v9  ;;  %v1363_v1 = vmul.f32 %v7205_v31, %v1139_v0  ;;  %v7206_v53 = vld [vmem:[#allocation70_spill] sm:$0xff]  ;;  %v7207_v47 = vld [vmem:[#allocation55_spill] sm:$0xff]  ;;  %v7212_v12 = vld [vmem:[#allocation57_spill] sm:$0xff] }
 0x1d7   :  { %v7211_v9 = vld [vmem:[#allocation47_spill] sm:$0xff] }
 0x1d8   :  { %2311 = vperm.xlu1 %3942, %v2241_v24   ;;  %v1140_v24 = vsel %vm1132_vm1, %v5500_v54, 0.0  ;;  %v1766_v54 = vadd.f32 %v1734_v8, %v1411_v32  ;;  %v7213_v8 = vld [vmem:[#allocation52_spill] sm:$0xff] }
 0x1d9   :  { %2306 = vperm.xlu0 %3941, %v2240_v4   ;;  %v2090_v4 = vmul.f32 %v5200_v13, %v1866_v36  ;;  %v1495_v13 = vsel %vm1487_vm2, %v5514_v5, 0.0  ;;  %v1549_v5 = vld [vmem:[%s7070_s3 + $0x418] sm:$0xff]  ;;  %v7208_v36 = vld [vmem:[#allocation53_spill] sm:$0xff] }
 0x1da   :  { %v2121_v35 = vadd.f32 %v2089_v3, %v1766_v54  ;;  %v1719_v58 = vmul.f32 %v7209_v42, %v1495_v13 }
 0x1db   :  { %v5716_v27 = vpop.permute.xlu1 %2595 }
 0x1dc   :  { %v5718_v2 = vpop.permute.xlu0 %2590  ;;  %1013 = vperm.xlu1 %3942, %v871_v45   ;;  %v7201_v45 = vld [vmem:[#allocation6_spill] sm:$0xff] }
 0x1dd   :  { %1008 = vperm.xlu0 %3941, %v870_v50   ;;  %v7202_v50 = vld [vmem:[#allocation46_spill] sm:$0xff] }
 0x1df   :  { %v4052_v26 = vpop.eup %4051  ;;  %v5726_v25 = vpop.permute.xlu1 %1591 }
 0x1e0   :  { %v4054_v38 = vpop.eup %4053  ;;  %v5728_v34 = vpop.permute.xlu0 %1586  ;;  %1336 = vperm.xlu1 %3942, %v1194_v14   ;;  %v2891_v63 = vmul.f32 %v4052_v26, %v5664_v37  ;;  %v854_v37 = vld [vmem:[%s7070_s3 + $0x490] sm:$0xff]  ;;  %v5787_v14 = vadd.f32 %v7202_v50, %v7201_v45 }
 0x1e1   :  { %1331 = vperm.xlu0 %3941, %v1193_v57   ;;  %v2890_v49 = vmul.f32 %v4054_v38, %v5667_v56  ;;  %v1767_v57 = vadd.f32 %v1735_v40, %v1412_v41  ;;  %v7203_v38 = vld [vmem:[#allocation58_spill] sm:$0xff]  ;;  %v7215_v50 = vld [vmem:[#allocation67_spill] sm:$0xff] }
 0x1e2   :  { %v7214_v41 = vld [vmem:[#allocation66_spill] sm:$0xff]  ;;  %v3524_v54 = vmul.f32 -1.442695, %v5787_v14 }
 0x1e3   :  { %v1789_v21 = vpop.permute.xlu1 %1788  ;;  %v5732_v16 = vpack.c.bf16 %v2891_v63, %v2890_v49  ;;  %v1364_v63 = vmul.f32 %v7203_v38, %v1140_v24  ;;  %v1040_v24 = vmul.f32 %v7213_v8, %v7212_v12  ;;  %v1533_v8 = vld [vmem:[%s7070_s3 + $0x398] sm:$0xff] }
 0x1e4   :  { %v1787_v43 = vpop.permute.xlu0 %1786  ;;  %1473 = vrot.lane.b32.xlu1 %v5676_v44, %s4269_s17  ;;  %v1850_v61 = vsel %vm1842_vm3, %v1789_v21, 0.0  ;;  %v5827_v21 = vadd.f32 %v7211_v9, %v7210_v30  ;;  %v7222_v30 = vld [vmem:[#allocation33_spill] sm:$0xff] }
 0x1e5   :  { %7194 = vst [vmem:[#allocation17_spill] sm:$0xff] %v5732_v16  ;;  %1471 = vrot.lane.b32.xlu0 %v5679_v28, %s4269_s17  ;;  %3824 = vmatprep.subr.bf16.mxu1 %v5732_v16  ;;  %v1849_v48 = vsel %vm1842_vm3, %v1787_v43, 0.0  ;;  %v2074_v0 = vmul.f32 %v7215_v50, %v1850_v61  ;;  %v7218_v61 = vld [vmem:[#allocation72_spill] sm:$0xff]  ;;  %v7232_v16 = vld [vmem:[#allocation74_spill] sm:$0xff] }
 0x1e6   :  { %3826 = vmatpush3.bf16.xpose.msra.mxu1 %v5641_v6 }
 0x1e7   :  { %v5750_v56 = vpop.permute.xlu1 %2515 }
 0x1e8   :  { %v5754_v17 = vpop.permute.xlu0 %2510  ;;  %933 = vperm.xlu1 %3942, %v855_v60   ;;  %v2122_v60 = vadd.f32 %v2090_v4, %v1767_v57  ;;  %v1718_v4 = vmul.f32 %v7214_v41, %v1494_v59  ;;  %v1395_v57 = vadd.f32 %v1363_v1, %v1040_v24  ;;  %v81_v1 = vld [vmem:[%s7070_s3 + $0x1c8] sm:$0xff]  ;;  %v1532_v41 = vld [vmem:[%s7070_s3 + $0x390] sm:$0xff] }
 0x1e9   :  { %928 = vperm.xlu0 %3941, %v854_v37  }
 0x1eb   :  { %v5773_v23 = vpop.permute.xlu1 %2026 }
 0x1ec   :  { %v5778_v46 = vpop.permute.xlu0 %2021  ;;  %1256 = vperm.xlu1 %3942, %v1178_v20  }
 0x1ed   :  { %1251 = vperm.xlu0 %3941, %v1177_v29   ;;  %v1041_v29 = vmul.f32 %v7208_v36, %v7207_v47  ;;  %v7219_v36 = vld [vmem:[#allocation8_spill] sm:$0xff] }
 0x1ef   :  { %v2176_v26 = vpop.permute.xlu1 %2175  ;;  %v1396_v45 = vadd.f32 %v1364_v63, %v1041_v29  ;;  %v3523_v63 = vmul.f32 -1.442695, %v5827_v21  ;;  %v7220_v29 = vld [vmem:[#allocation32_spill] sm:$0xff] }
 0x1f0   :  { %v2221_v62 = vsel %vm2197_vm4, %v2176_v26, 0.0  ;;  %v2174_v49 = vpop.permute.xlu0 %2173  ;;  %1441 = vrot.lane.b32.xlu1 %v5694_v19, %s4269_s17  ;;  %v7216_v26 = vld [vmem:[#allocation68_spill] sm:$0xff]  ;;  %v5866_v42 = vadd.f32 %v7220_v29, %v7219_v36 }
 0x1f1   :  { %v2445_v37 = vmul.f32 %v7204_v18, %v2221_v62  ;;  %v2220_v15 = vsel %vm2197_vm4, %v2174_v49, 0.0  ;;  %1439 = vrot.lane.b32.xlu0 %v5697_v55, %s4269_s17  ;;  %v2073_v38 = vmul.f32 %v7216_v26, %v1849_v48  ;;  %v1751_v62 = vadd.f32 %v1719_v58, %v1396_v45 }
 0x1f2   :  { %v2444_v20 = vmul.f32 %v7206_v53, %v2220_v15  ;;  %v7217_v15 = vld [vmem:[#allocation71_spill] sm:$0xff]  ;;  %v3508_v45 = vmul.f32 -1.442695, %v5866_v42 }
 0x1f3   :  { %v2477_v40 = vadd.f32 %v2445_v37, %v2122_v60  ;;  %v5823_v7 = vpop.permute.xlu1 %1946  ;;  %v1750_v60 = vadd.f32 %v1718_v4, %v1395_v57 }
 0x1f4   :  { %v2476_v32 = vadd.f32 %v2444_v20, %v2121_v35  ;;  %v5832_v3 = vpop.permute.xlu0 %1941  ;;  %1691 = vperm.xlu1 %3942, %v1549_v5   ;;  %v80_v20 = vld [vmem:[%s7070_s3 + $0x1c0] sm:$0xff] }
 0x1f5   :  { %v5836_v43 = vadd.f32 %v5716_v27, %v2477_v40  ;;  %1686 = vperm.xlu0 %3941, %v1548_v22   ;;  %v2105_v35 = vadd.f32 %v2073_v38, %v1750_v60  ;;  %v7221_v40 = vld [vmem:[#allocation7_spill] sm:$0xff]  ;;  %v64_v60 = vld [vmem:[%s7070_s3 + $0x140] sm:$0xff] }
 0x1f6   :  { %v5840_v13 = vadd.f32 %v5718_v2, %v2476_v32  ;;  %v2106_v2 = vadd.f32 %v2074_v0, %v1751_v62  ;;  %v5872_v9 = vadd.f32 %v7222_v30, %v7221_v40 }
 0x1f7   :  { %v3550_v49 = vmul.f32 -1.442695, %v5836_v43  ;;  %v2144_v59 = vpop.permute.xlu1 %2143 }
 0x1f8   :  { %v3549_v18 = vmul.f32 -1.442695, %v5840_v13  ;;  %v2205_v27 = vsel %vm2197_vm4, %v2144_v59, 0.0  ;;  %v2142_v37 = vpop.permute.xlu0 %2141  ;;  %1828 = vrot.lane.b32.xlu1 %v5676_v44, %s4270_s18  ;;  %v3507_v0 = vmul.f32 -1.442695, %v5872_v9  ;;  %v65_v59 = vld [vmem:[%s7070_s3 + $0x148] sm:$0xff] }
 0x1f9   :  { %4055 = vpow2.f32 %v3550_v49  ;;  %v2429_v5 = vmul.f32 %v7217_v15, %v2205_v27  ;;  %v2204_v31 = vsel %vm2197_vm4, %v2142_v37, 0.0  ;;  %1826 = vrot.lane.b32.xlu0 %v5679_v28, %s4270_s18  ;;  %v1904_v15 = vld [vmem:[%s7070_s3 + $0x618] sm:$0xff] }
 0x1fa   :  { %4057 = vpow2.f32 %v3549_v18  ;;  %v2428_v53 = vmul.f32 %v7218_v61, %v2204_v31 }
 0x1fb   :  { %4059 = vpow2.f32 %v3524_v54  ;;  %v2461_v22 = vadd.f32 %v2429_v5, %v2106_v2  ;;  %v5862_v47 = vpop.permute.xlu1 %1114  ;;  %v1903_v5 = vld [vmem:[%s7070_s3 + $0x610] sm:$0xff] }
 0x1fc   :  { %4061 = vpow2.f32 %v3523_v63  ;;  %v2460_v58 = vadd.f32 %v2428_v53, %v2105_v35  ;;  %v5868_v48 = vpop.permute.xlu0 %1112  ;;  %2615 = vperm.xlu1 %3942, %v81_v1  }
 0x1fd   :  { %v5875_v12 = vadd.f32 %v5750_v56, %v2461_v22  ;;  %2610 = vperm.xlu0 %3941, %v80_v20  }
 0x1fe   :  { %v5881_v24 = vadd.f32 %v5754_v17, %v2460_v58 }
 0x1ff   :  { %v3534_v4 = vmul.f32 -1.442695, %v5875_v12  ;;  %v5887_v32 = vpop.permute.xlu1 %2381 }
 0x200   :  { %v3533_v56 = vmul.f32 -1.442695, %v5881_v24  ;;  %v5891_v50 = vpop.permute.xlu0 %2376  ;;  %1611 = vperm.xlu1 %3942, %v1533_v8  }
 0x201   :  { %4063 = vpow2.f32 %v3534_v4  ;;  %1606 = vperm.xlu0 %3941, %v1532_v41   ;;  %v1888_v41 = vld [vmem:[%s7070_s3 + $0x598] sm:$0xff] }
 0x202   :  { %4065 = vpow2.f32 %v3533_v56  ;;  %v1887_v56 = vld [vmem:[%s7070_s3 + $0x590] sm:$0xff] }
 0x203   :  { %v4056_v17 = vpop.eup %4055  ;;  %v5894_v57 = vpop.permute.xlu1 %1082  ;;  %4067 = vpow2.f32 %v3508_v45 }
 0x204   :  { %v4058_v26 = vpop.eup %4057  ;;  %v2797_v38 = vadd.f32 1.0, %v4056_v17  ;;  %v5896_v54 = vpop.permute.xlu0 %1080  ;;  %1796 = vrot.lane.b32.xlu1 %v5694_v19, %s4270_s18  ;;  %4069 = vpow2.f32 %v3507_v0 }
 0x205   :  { %v4060_v62 = vpop.eup %4059  ;;  %v2796_v49 = vadd.f32 1.0, %v4058_v26  ;;  %1794 = vrot.lane.b32.xlu0 %v5697_v55, %s4270_s18 }
 0x206   :  { %v4062_v63 = vpop.eup %4061  ;;  %4071 = vrcp.f32 %v2797_v38  ;;  %v741_v27 = vadd.f32 1.0, %v4060_v62 }
 0x207   :  { %4073 = vrcp.f32 %v2796_v49  ;;  %v5908_v18 = vpop.permute.xlu1 %2301  ;;  %v740_v2 = vadd.f32 1.0, %v4062_v63 }
 0x208   :  { %v5910_v37 = vpop.permute.xlu0 %2296  ;;  %2535 = vperm.xlu1 %3942, %v65_v59   ;;  %4075 = vrcp.f32 %v741_v27 }
 0x209   :  { %2530 = vperm.xlu0 %3941, %v64_v60   ;;  %4077 = vrcp.f32 %v740_v2 }
 0x20b   :  { %v4064_v31 = vpop.eup %4063  ;;  %v5918_v1 = vpop.permute.xlu1 %1003 }
 0x20c   :  { %v4066_v35 = vpop.eup %4065  ;;  %v2781_v61 = vadd.f32 1.0, %v4064_v31  ;;  %v5920_v53 = vpop.permute.xlu0 %998  ;;  %2046 = vperm.xlu1 %3942, %v1904_v15  }
 0x20d   :  { %v2780_v20 = vadd.f32 1.0, %v4066_v35  ;;  %2041 = vperm.xlu0 %3941, %v1903_v5   ;;  %v4068_v22 = vpop.eup %4067 }
 0x20e   :  { %4079 = vrcp.f32 %v2781_v61  ;;  %v4070_v36 = vpop.eup %4069  ;;  %v725_v8 = vadd.f32 1.0, %v4068_v22 }
 0x20f   :  { %4081 = vrcp.f32 %v2780_v20  ;;  %v5922_v29 = vpop.permute.xlu1 %1326  ;;  %v724_v45 = vadd.f32 1.0, %v4070_v36 }
 0x210   :  { %v4072_v58 = vpop.eup %4071  ;;  %v5924_v40 = vpop.permute.xlu0 %1321  ;;  %2183 = vrot.lane.b32.xlu1 %v5676_v44, %s4271_s19  ;;  %4083 = vrcp.f32 %v725_v8  ;;  %v2243_v8 = vld [vmem:[%s7070_s3 + $0x698] sm:$0xff] }
 0x211   :  { %v4074_v30 = vpop.eup %4073  ;;  %2181 = vrot.lane.b32.xlu0 %v5679_v28, %s4271_s19  ;;  %v2893_v4 = vmul.f32 %v4072_v58, %v5836_v43  ;;  %4085 = vrcp.f32 %v724_v45  ;;  %v872_v45 = vld [vmem:[%s7070_s3 + $0x520] sm:$0xff] }
 0x212   :  { %v2892_v0 = vmul.f32 %v4074_v30, %v5840_v13  ;;  %v4076_v62 = vpop.eup %4075 }
 0x213   :  { %v5938_v17 = vpop.permute.xlu1 %1469  ;;  %v4078_v43 = vpop.eup %4077  ;;  %v5955_v27 = vmul.f32 %v4076_v62, %v5787_v14  ;;  %v2259_v14 = vld [vmem:[%s7070_s3 + $0x718] sm:$0xff]  ;;  %v1196_v62 = vld [vmem:[%s7070_s3 + $0x328] sm:$0xff] }
 0x214   :  { %v5940_v26 = vpop.permute.xlu0 %1467  ;;  %1966 = vperm.xlu1 %3942, %v1888_v41   ;;  %v5942_v38 = vpack.c.bf16 %v2893_v4, %v2892_v0  ;;  %v5959_v15 = vmul.f32 %v4078_v43, %v5827_v21  ;;  %v2258_v21 = vld [vmem:[%s7070_s3 + $0x710] sm:$0xff]  ;;  %v873_v4 = vld [vmem:[%s7070_s3 + $0x528] sm:$0xff]  ;;  %v1195_v43 = vld [vmem:[%s7070_s3 + $0x320] sm:$0xff] }
 0x215   :  { %1961 = vperm.xlu0 %3941, %v1887_v56  }
 0x216   :  { %7223 = vst [vmem:[#allocation21_spill] sm:$0xff] %v5942_v38  ;;  %3828 = vmatprep.subr.bf16.mxu1 %v5942_v38 }
 0x217   :  { %v5945_v49 = vpop.permute.xlu1 %923 }
 0x218   :  { %v4080_v59 = vpop.eup %4079  ;;  %v5947_v63 = vpop.permute.xlu0 %918  ;;  %2151 = vrot.lane.b32.xlu1 %v5694_v19, %s4271_s19 }
 0x219   :  { %7224 = vst [vmem:[#allocation20_spill] sm:$0xff] %v5947_v63  ;;  %v4082_v13 = vpop.eup %4081  ;;  %v2877_v60 = vmul.f32 %v4080_v59, %v5875_v12  ;;  %2149 = vrot.lane.b32.xlu0 %v5697_v55, %s4271_s19  ;;  %v7235_v63 = vld [vmem:[#allocation50_spill] sm:$0xff] }
 0x21a   :  { %v2876_v2 = vmul.f32 %v4082_v13, %v5881_v24  ;;  %v4084_v12 = vpop.eup %4083 }
 0x21b   :  { %v5961_v5 = vpop.permute.xlu1 %1246  ;;  %v4086_v61 = vpop.eup %4085  ;;  %v5983_v22 = vmul.f32 %v4084_v12, %v5866_v42  ;;  %v2242_v42 = vld [vmem:[%s7070_s3 + $0x690] sm:$0xff]  ;;  %v856_v12 = vld [vmem:[%s7070_s3 + $0x4a0] sm:$0xff] }
 0x21c   :  { %v5963_v31 = vpop.permute.xlu0 %1241  ;;  %1122 = vrot.lane.b32.xlu1 %v5955_v27, %s4268_s16  ;;  %v5967_v35 = vpack.c.bf16 %v2877_v60, %v2876_v2  ;;  %v5986_v36 = vmul.f32 %v4086_v61, %v5872_v9  ;;  %v1157_v61 = vsel %vm1132_vm1, %v5868_v48, 0.0  ;;  %v1180_v48 = vld [vmem:[%s7070_s3 + $0x2a8] sm:$0xff] }
 0x21d   :  { %1120 = vrot.lane.b32.xlu0 %v5959_v15, %s4268_s16 }
 0x21e   :  { %7225 = vst [vmem:[#allocation23_spill] sm:$0xff] %v5967_v35  ;;  %3830 = vmatpush3.bf16.xpose.msra.mxu1 %v5967_v35  ;;  %7226 = vst [vmem:[#allocation22_spill] sm:$0xff] %v5986_v36 }
 0x21f   :  { %v5978_v24 = vpop.permute.xlu1 %1437 }
 0x220   :  { %v5980_v20 = vpop.permute.xlu0 %1435  ;;  %2401 = vperm.xlu1 %3942, %v2259_v14   ;;  %v857_v14 = vld [vmem:[%s7070_s3 + $0x4a8] sm:$0xff] }
 0x221   :  { %2396 = vperm.xlu0 %3941, %v2258_v21   ;;  %v1158_v21 = vsel %vm1132_vm1, %v5862_v47, 0.0  ;;  %v1512_v47 = vsel %vm1487_vm2, %v5940_v26, 0.0 }
 0x223   :  { %v5988_v58 = vpop.permute.xlu1 %1681 }
 0x224   :  { %v5990_v30 = vpop.permute.xlu0 %1676  ;;  %1090 = vrot.lane.b32.xlu1 %v5983_v22, %s4268_s16 }
 0x225   :  { %1088 = vrot.lane.b32.xlu0 %v5986_v36, %s4268_s16 }
 0x227   :  { %v1825_v9 = vpop.permute.xlu1 %1824 }
 0x228   :  { %v1823_v41 = vpop.permute.xlu0 %1822  ;;  %2321 = vperm.xlu1 %3942, %v2243_v8   ;;  %v1868_v38 = vsel %vm1842_vm3, %v1825_v9, 0.0 }
 0x229   :  { %2316 = vperm.xlu0 %3941, %v2242_v42   ;;  %v1513_v42 = vsel %vm1487_vm2, %v5938_v17, 0.0  ;;  %v1179_v17 = vld [vmem:[%s7070_s3 + $0x2a0] sm:$0xff]  ;;  %v1867_v26 = vsel %vm1842_vm3, %v1823_v41, 0.0 }
 0x22a   :  { %v2091_v41 = vmul.f32 %v5778_v46, %v1867_v26  ;;  %v7238_v26 = vld [vmem:[#allocation77_spill] sm:$0xff] }
 0x22b   :  { %v6008_v56 = vpop.permute.xlu1 %2605 }
 0x22c   :  { %v6010_v0 = vpop.permute.xlu0 %2600  ;;  %1023 = vperm.xlu1 %3942, %v873_v4  }
 0x22d   :  { %1018 = vperm.xlu0 %3941, %v872_v45   ;;  %v7228_v45 = vld [vmem:[#allocation75_spill] sm:$0xff] }
 0x22f   :  { %v6018_v59 = vpop.permute.xlu1 %1601 }
 0x230   :  { %v6020_v13 = vpop.permute.xlu0 %1596  ;;  %1346 = vperm.xlu1 %3942, %v1196_v62   ;;  %v1382_v62 = vmul.f32 %v7228_v45, %v1158_v21  ;;  %v7231_v45 = vld [vmem:[#allocation81_spill] sm:$0xff] }
 0x231   :  { %7227 = vst [vmem:[#allocation25_spill] sm:$0xff] %v6020_v13  ;;  %1341 = vperm.xlu0 %3941, %v1195_v43   ;;  %v7229_v43 = vld [vmem:[#allocation76_spill] sm:$0xff]  ;;  %v1737_v6 = vmul.f32 %v7231_v45, %v1513_v42  ;;  %v2092_v42 = vmul.f32 %v5773_v23, %v1868_v38  ;;  %v7234_v45 = vld [vmem:[#allocation10_spill] sm:$0xff]  ;;  %v1497_v23 = vsel %vm1487_vm2, %v5978_v24, 0.0 }
 0x232   :  { %v1381_v35 = vmul.f32 %v7229_v43, %v1157_v61  ;;  %v1058_v61 = vmul.f32 %v7232_v16, %v5380_v39  ;;  %v7233_v43 = vld [vmem:[#allocation82_spill] sm:$0xff]  ;;  %v6077_v55 = vadd.f32 %v7235_v63, %v7234_v45  ;;  %v1141_v39 = vsel %vm1132_vm1, %v5896_v54, 0.0  ;;  %v7240_v45 = vld [vmem:[#allocation51_spill] sm:$0xff] }
 0x233   :  { %v1793_v60 = vpop.permute.xlu1 %1792  ;;  %v1736_v11 = vmul.f32 %v7233_v43, %v1512_v47  ;;  %v7236_v47 = vld [vmem:[#allocation79_spill] sm:$0xff]  ;;  %v1496_v54 = vsel %vm1487_vm2, %v5980_v20, 0.0  ;;  %v1551_v63 = vld [vmem:[%s7070_s3 + $0x428] sm:$0xff]  ;;  %v1721_v43 = vmul.f32 %v5726_v25, %v1497_v23 }
 0x234   :  { %v1791_v2 = vpop.permute.xlu0 %1790  ;;  %1477 = vrot.lane.b32.xlu1 %v5955_v27, %s4269_s17 }
 0x235   :  { %1475 = vrot.lane.b32.xlu0 %v5959_v15, %s4269_s17 }
 0x237   :  { %v6038_v8 = vpop.permute.xlu1 %2525 }
 0x238   :  { %v6043_v4 = vpop.permute.xlu0 %2520  ;;  %943 = vperm.xlu1 %3942, %v857_v14   ;;  %v7230_v14 = vld [vmem:[#allocation73_spill] sm:$0xff] }
 0x239   :  { %938 = vperm.xlu0 %3941, %v856_v12   ;;  %v1059_v21 = vmul.f32 %v7230_v14, %v5376_v52  ;;  %v1142_v52 = vsel %vm1132_vm1, %v5894_v57, 0.0  ;;  %v1413_v14 = vadd.f32 %v1381_v35, %v1058_v61  ;;  %v7237_v35 = vld [vmem:[#allocation80_spill] sm:$0xff]  ;;  %v1043_v61 = vmul.f32 %v7238_v26, %v5405_v51 }
 0x23a   :  { %v1365_v24 = vmul.f32 %v7237_v35, %v1141_v39 }
 0x23b   :  { %v6063_v12 = vpop.permute.xlu1 %2036  ;;  %v1414_v13 = vadd.f32 %v1382_v62, %v1059_v21  ;;  %v1768_v21 = vadd.f32 %v1736_v11, %v1413_v14 }
 0x23c   :  { %v6068_v9 = vpop.permute.xlu0 %2031  ;;  %1266 = vperm.xlu1 %3942, %v1180_v48   ;;  %v1366_v48 = vmul.f32 %v7236_v47, %v1142_v52  ;;  %v1851_v52 = vsel %vm1842_vm3, %v1791_v2, 0.0 }
 0x23d   :  { %1261 = vperm.xlu0 %3941, %v1179_v17   ;;  %v1769_v16 = vadd.f32 %v1737_v6, %v1414_v13  ;;  %v2123_v13 = vadd.f32 %v2091_v41, %v1768_v21  ;;  %v1852_v17 = vsel %vm1842_vm3, %v1793_v60, 0.0  ;;  %v7239_v41 = vld [vmem:[#allocation9_spill] sm:$0xff]  ;;  %v2075_v23 = vmul.f32 %v5832_v3, %v1851_v52  ;;  %v7244_v52 = vld [vmem:[#allocation11_spill] sm:$0xff] }
 0x23e   :  { %v6117_v60 = vadd.f32 %v7240_v45, %v7239_v41  ;;  %v1398_v51 = vadd.f32 %v1366_v48, %v1043_v61  ;;  %v2076_v25 = vmul.f32 %v5823_v7, %v1852_v17  ;;  %v1535_v45 = vld [vmem:[%s7070_s3 + $0x3a8] sm:$0xff] }
 0x23f   :  { %v2180_v62 = vpop.permute.xlu1 %2179  ;;  %v2124_v6 = vadd.f32 %v2092_v42, %v1769_v16  ;;  %v1720_v16 = vmul.f32 %v5728_v34, %v1496_v54 }
 0x240   :  { %v2223_v46 = vsel %vm2197_vm4, %v2180_v62, 0.0  ;;  %v2178_v57 = vpop.permute.xlu0 %2177  ;;  %1445 = vrot.lane.b32.xlu1 %v5983_v22, %s4269_s17  ;;  %v1753_v34 = vadd.f32 %v1721_v43, %v1398_v51  ;;  %v3525_v48 = vmul.f32 -1.442695, %v6117_v60 }
 0x241   :  { %v2447_v38 = vmul.f32 %v5887_v32, %v2223_v46  ;;  %v2222_v11 = vsel %vm2197_vm4, %v2178_v57, 0.0  ;;  %1443 = vrot.lane.b32.xlu0 %v5986_v36, %s4269_s17  ;;  %v1550_v32 = vld [vmem:[%s7070_s3 + $0x420] sm:$0xff] }
 0x242   :  { %v2446_v20 = vmul.f32 %v5891_v50, %v2222_v11  ;;  %v7241_v50 = vld [vmem:[#allocation78_spill] sm:$0xff]  ;;  %v2108_v3 = vadd.f32 %v2076_v25, %v1753_v34 }
 0x243   :  { %v2479_v42 = vadd.f32 %v2447_v38, %v2124_v6  ;;  %v6113_v14 = vpop.permute.xlu1 %1956  ;;  %v1042_v39 = vmul.f32 %v7241_v50, %v5411_v10  ;;  %v3526_v10 = vmul.f32 -1.442695, %v6077_v55 }
 0x244   :  { %v2478_v62 = vadd.f32 %v2446_v20, %v2123_v13  ;;  %v6122_v47 = vpop.permute.xlu0 %1951  ;;  %1701 = vperm.xlu1 %3942, %v1551_v63   ;;  %v83_v63 = vld [vmem:[%s7070_s3 + $0x1d8] sm:$0xff]  ;;  %v82_v13 = vld [vmem:[%s7070_s3 + $0x1d0] sm:$0xff] }
 0x245   :  { %v6126_v2 = vadd.f32 %v6008_v56, %v2479_v42  ;;  %1696 = vperm.xlu0 %3941, %v1550_v32   ;;  %v1397_v21 = vadd.f32 %v1365_v24, %v1042_v39  ;;  %v7242_v20 = vld [vmem:[#allocation12_spill] sm:$0xff]  ;;  %v7245_v42 = vld [vmem:[#allocation37_spill] sm:$0xff] }
 0x246   :  { %v6130_v46 = vadd.f32 %v6010_v0, %v2478_v62  ;;  %v7243_v32 = vld [vmem:[#allocation36_spill] sm:$0xff]  ;;  %v1534_v39 = vld [vmem:[%s7070_s3 + $0x3a0] sm:$0xff] }
 0x247   :  { %v3552_v57 = vmul.f32 -1.442695, %v6126_v2  ;;  %v2148_v54 = vpop.permute.xlu1 %2147  ;;  %v1752_v6 = vadd.f32 %v1720_v16, %v1397_v21  ;;  %v6156_v26 = vadd.f32 %v7243_v32, %v7242_v20 }
 0x248   :  { %v3551_v7 = vmul.f32 -1.442695, %v6130_v46  ;;  %v2207_v56 = vsel %vm2197_vm4, %v2148_v54, 0.0  ;;  %v2146_v38 = vpop.permute.xlu0 %2145  ;;  %1832 = vrot.lane.b32.xlu1 %v5955_v27, %s4270_s18 }
 0x249   :  { %4087 = vpow2.f32 %v3552_v57  ;;  %v2431_v0 = vmul.f32 %v5908_v18, %v2207_v56  ;;  %v2206_v11 = vsel %vm2197_vm4, %v2146_v38, 0.0  ;;  %1830 = vrot.lane.b32.xlu0 %v5959_v15, %s4270_s18  ;;  %v2107_v35 = vadd.f32 %v2075_v23, %v1752_v6  ;;  %v67_v6 = vld [vmem:[%s7070_s3 + $0x158] sm:$0xff]  ;;  %v66_v56 = vld [vmem:[%s7070_s3 + $0x150] sm:$0xff] }
 0x24a   :  { %4089 = vpow2.f32 %v3551_v7  ;;  %v2430_v24 = vmul.f32 %v5910_v37, %v2206_v11  ;;  %v6162_v37 = vadd.f32 %v7245_v42, %v7244_v52  ;;  %v3510_v51 = vmul.f32 -1.442695, %v6156_v26 }
 0x24b   :  { %4091 = vpow2.f32 %v3526_v10  ;;  %v2463_v18 = vadd.f32 %v2431_v0, %v2108_v3  ;;  %v6152_v17 = vpop.permute.xlu1 %1118 }
 0x24c   :  { %4093 = vpow2.f32 %v3525_v48  ;;  %v2462_v61 = vadd.f32 %v2430_v24, %v2107_v35  ;;  %v6158_v43 = vpop.permute.xlu0 %1116  ;;  %2625 = vperm.xlu1 %3942, %v83_v63   ;;  %v3509_v21 = vmul.f32 -1.442695, %v6162_v37  ;;  %v1906_v63 = vld [vmem:[%s7070_s3 + $0x628] sm:$0xff]  ;;  %v1905_v35 = vld [vmem:[%s7070_s3 + $0x620] sm:$0xff] }
 0x24d   :  { %v6165_v41 = vadd.f32 %v6038_v8, %v2463_v18  ;;  %2620 = vperm.xlu0 %3941, %v82_v13  }
 0x24e   :  { %v6171_v50 = vadd.f32 %v6043_v4, %v2462_v61 }
 0x24f   :  { %v3536_v16 = vmul.f32 -1.442695, %v6165_v41  ;;  %v6177_v62 = vpop.permute.xlu1 %2391 }
 0x250   :  { %v3535_v8 = vmul.f32 -1.442695, %v6171_v50  ;;  %v6181_v25 = vpop.permute.xlu0 %2386  ;;  %1621 = vperm.xlu1 %3942, %v1535_v45  }
 0x251   :  { %4095 = vpow2.f32 %v3536_v16  ;;  %1616 = vperm.xlu0 %3941, %v1534_v39  }
 0x252   :  { %4097 = vpow2.f32 %v3535_v8 }
 0x253   :  { %v4088_v4 = vpop.eup %4087  ;;  %v6184_v23 = vpop.permute.xlu1 %1086  ;;  %4099 = vpow2.f32 %v3510_v51 }
 0x254   :  { %v4090_v10 = vpop.eup %4089  ;;  %v2799_v34 = vadd.f32 1.0, %v4088_v4  ;;  %v6186_v57 = vpop.permute.xlu0 %1084  ;;  %1800 = vrot.lane.b32.xlu1 %v5983_v22, %s4270_s18  ;;  %4101 = vpow2.f32 %v3509_v21  ;;  %v1890_v21 = vld [vmem:[%s7070_s3 + $0x5a8] sm:$0xff] }
 0x255   :  { %v4092_v54 = vpop.eup %4091  ;;  %v2798_v48 = vadd.f32 1.0, %v4090_v10  ;;  %1798 = vrot.lane.b32.xlu0 %v5986_v36, %s4270_s18 }
 0x256   :  { %v4094_v7 = vpop.eup %4093  ;;  %4103 = vrcp.f32 %v2799_v34  ;;  %v743_v3 = vadd.f32 1.0, %v4092_v54  ;;  %v1889_v34 = vld [vmem:[%s7070_s3 + $0x5a0] sm:$0xff] }
 0x257   :  { %4105 = vrcp.f32 %v2798_v48  ;;  %v6198_v38 = vpop.permute.xlu1 %2311  ;;  %v742_v11 = vadd.f32 1.0, %v4094_v7 }
 0x258   :  { %v6200_v0 = vpop.permute.xlu0 %2306  ;;  %2545 = vperm.xlu1 %3942, %v67_v6   ;;  %4107 = vrcp.f32 %v743_v3 }
 0x259   :  { %2540 = vperm.xlu0 %3941, %v66_v56   ;;  %4109 = vrcp.f32 %v742_v11 }
 0x25b   :  { %v4096_v24 = vpop.eup %4095  ;;  %v6208_v13 = vpop.permute.xlu1 %1013 }
 0x25c   :  { %v4098_v18 = vpop.eup %4097  ;;  %v2783_v20 = vadd.f32 1.0, %v4096_v24  ;;  %v6210_v32 = vpop.permute.xlu0 %1008  ;;  %2056 = vperm.xlu1 %3942, %v1906_v63  }
 0x25d   :  { %v2782_v61 = vadd.f32 1.0, %v4098_v18  ;;  %2051 = vperm.xlu0 %3941, %v1905_v35   ;;  %v4100_v52 = vpop.eup %4099 }
 0x25e   :  { %4111 = vrcp.f32 %v2783_v20  ;;  %v4102_v42 = vpop.eup %4101  ;;  %v727_v8 = vadd.f32 1.0, %v4100_v52 }
 0x25f   :  { %4113 = vrcp.f32 %v2782_v61  ;;  %v6212_v45 = vpop.permute.xlu1 %1336  ;;  %v726_v10 = vadd.f32 1.0, %v4102_v42 }
 0x260   :  { %v4104_v39 = vpop.eup %4103  ;;  %v6214_v16 = vpop.permute.xlu0 %1331  ;;  %2187 = vrot.lane.b32.xlu1 %v5955_v27, %s4271_s19  ;;  %4115 = vrcp.f32 %v727_v8 }
 0x261   :  { %v4106_v51 = vpop.eup %4105  ;;  %2185 = vrot.lane.b32.xlu0 %v5959_v15, %s4271_s19  ;;  %v2895_v4 = vmul.f32 %v4104_v39, %v6126_v2  ;;  %4117 = vrcp.f32 %v726_v10 }
 0x262   :  { %v2894_v54 = vmul.f32 %v4106_v51, %v6130_v46  ;;  %v4108_v56 = vpop.eup %4107 }
 0x263   :  { %v6228_v48 = vpop.permute.xlu1 %1473  ;;  %v4110_v2 = vpop.eup %4109  ;;  %v6245_v24 = vmul.f32 %v4108_v56, %v6077_v55  ;;  %v2261_v55 = vld [vmem:[%s7070_s3 + $0x728] sm:$0xff]  ;;  %v875_v56 = vld [vmem:[%s7070_s3 + $0x538] sm:$0xff] }
 0x264   :  { %v6230_v6 = vpop.permute.xlu0 %1471  ;;  %1976 = vperm.xlu1 %3942, %v1890_v21   ;;  %v6232_v7 = vpack.c.bf16 %v2895_v4, %v2894_v54  ;;  %v6249_v20 = vmul.f32 %v4110_v2, %v6117_v60  ;;  %v2260_v60 = vld [vmem:[%s7070_s3 + $0x720] sm:$0xff]  ;;  %v874_v2 = vld [vmem:[%s7070_s3 + $0x530] sm:$0xff] }
 0x265   :  { %1971 = vperm.xlu0 %3941, %v1889_v34   ;;  %v2245_v34 = vld [vmem:[%s7070_s3 + $0x6a8] sm:$0xff] }
 0x266   :  { %7246 = vst [vmem:[#allocation24_spill] sm:$0xff] %v6232_v7  ;;  %3832 = vmatprep.subr.bf16.mxu1 %v6232_v7 }
 0x267   :  { %v6235_v3 = vpop.permute.xlu1 %933 }
 0x268   :  { %v4112_v11 = vpop.eup %4111  ;;  %v6237_v63 = vpop.permute.xlu0 %928  ;;  %2155 = vrot.lane.b32.xlu1 %v5983_v22, %s4271_s19 }
 0x269   :  { %7247 = vst [vmem:[#allocation35_spill] sm:$0xff] %v6237_v63  ;;  %v4114_v46 = vpop.eup %4113  ;;  %v2879_v35 = vmul.f32 %v4112_v11, %v6165_v41  ;;  %2153 = vrot.lane.b32.xlu0 %v5986_v36, %s4271_s19  ;;  %v7252_v36 = vld [vmem:[#allocation54_spill] sm:$0xff] }
 0x26a   :  { %v2878_v18 = vmul.f32 %v4114_v46, %v6171_v50  ;;  %v4116_v41 = vpop.eup %4115 }
 0x26b   :  { %v6251_v61 = vpop.permute.xlu1 %1256  ;;  %v4118_v39 = vpop.eup %4117  ;;  %v6273_v8 = vmul.f32 %v4116_v41, %v6156_v26  ;;  %v2244_v26 = vld [vmem:[%s7070_s3 + $0x6a0] sm:$0xff] }
 0x26c   :  { %v6253_v52 = vpop.permute.xlu0 %1251  ;;  %1126 = vrot.lane.b32.xlu1 %v6245_v24, %s4268_s16  ;;  %v6257_v42 = vpack.c.bf16 %v2879_v35, %v2878_v18  ;;  %v6276_v21 = vmul.f32 %v4118_v39, %v6162_v37  ;;  %v1198_v35 = vld [vmem:[%s7070_s3 + $0x338] sm:$0xff]  ;;  %v1197_v18 = vld [vmem:[%s7070_s3 + $0x330] sm:$0xff] }
 0x26d   :  { %1124 = vrot.lane.b32.xlu0 %v6249_v20, %s4268_s16 }
 0x26e   :  { %7248 = vst [vmem:[#allocation34_spill] sm:$0xff] %v6257_v42  ;;  %3834 = vmatpush3.bf16.xpose.msra.mxu1 %v6257_v42 }
 0x26f   :  { %v6268_v50 = vpop.permute.xlu1 %1441 }
 0x270   :  { %v6270_v51 = vpop.permute.xlu0 %1439  ;;  %2411 = vperm.xlu1 %3942, %v2261_v55  }
 0x271   :  { %2406 = vperm.xlu0 %3941, %v2260_v60  }
 0x273   :  { %v6278_v4 = vpop.permute.xlu1 %1691 }
 0x274   :  { %v6280_v10 = vpop.permute.xlu0 %1686  ;;  %1094 = vrot.lane.b32.xlu1 %v6273_v8, %s4268_s16 }
 0x275   :  { %1092 = vrot.lane.b32.xlu0 %v6276_v21, %s4268_s16 }
 0x277   :  { %v1829_v37 = vpop.permute.xlu1 %1828 }
 0x278   :  { %v1827_v54 = vpop.permute.xlu0 %1826  ;;  %2331 = vperm.xlu1 %3942, %v2245_v34   ;;  %v859_v34 = vld [vmem:[%s7070_s3 + $0x4b8] sm:$0xff]  ;;  %v1870_v63 = vsel %vm1842_vm3, %v1829_v37, 0.0 }
 0x279   :  { %2326 = vperm.xlu0 %3941, %v2244_v26   ;;  %v1160_v26 = vsel %vm1132_vm1, %v6152_v17, 0.0  ;;  %v1514_v17 = vsel %vm1487_vm2, %v6230_v6, 0.0  ;;  %v1869_v6 = vsel %vm1842_vm3, %v1827_v54, 0.0 }
 0x27a   :  { %v1384_v7 = vmul.f32 %v5922_v29, %v1160_v26  ;;  %v1061_v29 = vmul.f32 %v5918_v1, %v5676_v44  ;;  %v1144_v44 = vsel %vm1132_vm1, %v6184_v23, 0.0  ;;  %v2094_v1 = vmul.f32 %v6063_v12, %v1870_v63 }
 0x27b   :  { %v6298_v11 = vpop.permute.xlu1 %2615  ;;  %v2093_v54 = vmul.f32 %v6068_v9, %v1869_v6  ;;  %v1499_v12 = vsel %vm1487_vm2, %v6268_v50, 0.0  ;;  %v1553_v50 = vld [vmem:[%s7070_s3 + $0x438] sm:$0xff] }
 0x27c   :  { %v6300_v46 = vpop.permute.xlu0 %2610  ;;  %1033 = vperm.xlu1 %3942, %v875_v56   ;;  %v858_v56 = vld [vmem:[%s7070_s3 + $0x4b0] sm:$0xff] }
 0x27d   :  { %1028 = vperm.xlu0 %3941, %v874_v2   ;;  %v1159_v2 = vsel %vm1132_vm1, %v6158_v43, 0.0  ;;  %v1182_v43 = vld [vmem:[%s7070_s3 + $0x2b8] sm:$0xff] }
 0x27f   :  { %v6308_v55 = vpop.permute.xlu1 %1611 }
 0x280   :  { %7249 = vst [vmem:[#allocation29_spill] sm:$0xff] %v6308_v55  ;;  %v6310_v60 = vpop.permute.xlu0 %1606  ;;  %1356 = vperm.xlu1 %3942, %v1198_v35  }
 0x281   :  { %7250 = vst [vmem:[#allocation28_spill] sm:$0xff] %v6310_v60  ;;  %1351 = vperm.xlu0 %3941, %v1197_v18   ;;  %v1515_v18 = vsel %vm1487_vm2, %v6228_v48, 0.0  ;;  %v1383_v60 = vmul.f32 %v5924_v40, %v1159_v2  ;;  %v1181_v48 = vld [vmem:[%s7070_s3 + $0x2b0] sm:$0xff]  ;;  %v1060_v40 = vmul.f32 %v5920_v53, %v5679_v28  ;;  %v1416_v2 = vadd.f32 %v1384_v7, %v1061_v29 }
 0x282   :  { %v1143_v28 = vsel %vm1132_vm1, %v6186_v57, 0.0  ;;  %v1368_v7 = vmul.f32 %v5961_v5, %v1144_v44  ;;  %v1045_v29 = vmul.f32 %v5945_v49, %v5694_v19  ;;  %v7256_v44 = vld [vmem:[#allocation20_spill] sm:$0xff] }
 0x283   :  { %v1797_v41 = vpop.permute.xlu1 %1796 }
 0x284   :  { %v1795_v39 = vpop.permute.xlu0 %1794  ;;  %1481 = vrot.lane.b32.xlu1 %v6245_v24, %s4269_s17  ;;  %v1400_v19 = vadd.f32 %v1368_v7, %v1045_v29 }
 0x285   :  { %1479 = vrot.lane.b32.xlu0 %v6249_v20, %s4269_s17  ;;  %v1853_v6 = vsel %vm1842_vm3, %v1795_v39, 0.0 }
 0x287   :  { %v6328_v35 = vpop.permute.xlu1 %2535 }
 0x288   :  { %v6333_v42 = vpop.permute.xlu0 %2530  ;;  %953 = vperm.xlu1 %3942, %v859_v34   ;;  %v1739_v34 = vmul.f32 %v5988_v58, %v1515_v18  ;;  %v1415_v58 = vadd.f32 %v1383_v60, %v1060_v40  ;;  %v7251_v18 = vld [vmem:[#allocation14_spill] sm:$0xff]  ;;  %v1367_v60 = vmul.f32 %v5963_v31, %v1143_v28 }
 0x289   :  { %948 = vperm.xlu0 %3941, %v858_v56   ;;  %v1738_v56 = vmul.f32 %v5990_v30, %v1514_v17  ;;  %v6367_v55 = vadd.f32 %v7252_v36, %v7251_v18  ;;  %v1498_v36 = vsel %vm1487_vm2, %v6270_v51, 0.0 }
 0x28a   :  { %v1771_v53 = vadd.f32 %v1739_v34, %v1416_v2  ;;  %v1723_v34 = vmul.f32 %v6018_v59, %v1499_v12  ;;  %v7254_v2 = vld [vmem:[#allocation56_spill] sm:$0xff] }
 0x28b   :  { %v6353_v26 = vpop.permute.xlu1 %2046  ;;  %v1770_v17 = vadd.f32 %v1738_v56, %v1415_v58  ;;  %v7253_v56 = vld [vmem:[#allocation13_spill] sm:$0xff] }
 0x28c   :  { %v6358_v37 = vpop.permute.xlu0 %2041  ;;  %1276 = vperm.xlu1 %3942, %v1182_v43   ;;  %v2126_v57 = vadd.f32 %v2094_v1, %v1771_v53  ;;  %v7257_v58 = vld [vmem:[#allocation25_spill] sm:$0xff]  ;;  %v2077_v53 = vmul.f32 %v6122_v47, %v1853_v6  ;;  %v1755_v12 = vadd.f32 %v1723_v34, %v1400_v19 }
 0x28d   :  { %1271 = vperm.xlu0 %3941, %v1181_v48   ;;  %v2125_v43 = vadd.f32 %v2093_v54, %v1770_v17  ;;  %v1854_v48 = vsel %vm1842_vm3, %v1797_v41, 0.0  ;;  %v6407_v41 = vadd.f32 %v7254_v2, %v7253_v56  ;;  %v1722_v54 = vmul.f32 %v7257_v58, %v1498_v36  ;;  %v7261_v56 = vld [vmem:[#allocation39_spill] sm:$0xff] }
 0x28e   :  { %v2078_v49 = vmul.f32 %v6113_v14, %v1854_v48  ;;  %v3528_v17 = vmul.f32 -1.442695, %v6367_v55 }
 0x28f   :  { %v2184_v30 = vpop.permute.xlu1 %2183  ;;  %v3527_v7 = vmul.f32 -1.442695, %v6407_v41 }
 0x290   :  { %v2225_v9 = vsel %vm2197_vm4, %v2184_v30, 0.0  ;;  %v2182_v23 = vpop.permute.xlu0 %2181  ;;  %1449 = vrot.lane.b32.xlu1 %v6273_v8, %s4269_s17  ;;  %v2110_v47 = vadd.f32 %v2078_v49, %v1755_v12 }
 0x291   :  { %v2449_v63 = vmul.f32 %v6177_v62, %v2225_v9  ;;  %v2224_v5 = vsel %vm2197_vm4, %v2182_v23, 0.0  ;;  %1447 = vrot.lane.b32.xlu0 %v6276_v21, %s4269_s17  ;;  %v1552_v62 = vld [vmem:[%s7070_s3 + $0x430] sm:$0xff] }
 0x292   :  { %v2448_v51 = vmul.f32 %v6181_v25, %v2224_v5  ;;  %v7255_v25 = vld [vmem:[#allocation18_spill] sm:$0xff] }
 0x293   :  { %v2481_v40 = vadd.f32 %v2449_v63, %v2126_v57  ;;  %v6403_v31 = vpop.permute.xlu1 %1966  ;;  %v1044_v1 = vmul.f32 %v7256_v44, %v7255_v25  ;;  %v85_v5 = vld [vmem:[%s7070_s3 + $0x1e8] sm:$0xff]  ;;  %v1537_v25 = vld [vmem:[%s7070_s3 + $0x3b8] sm:$0xff] }
 0x294   :  { %v2480_v18 = vadd.f32 %v2448_v51, %v2125_v43  ;;  %v6412_v28 = vpop.permute.xlu0 %1961  ;;  %1711 = vperm.xlu1 %3942, %v1553_v50   ;;  %v84_v43 = vld [vmem:[%s7070_s3 + $0x1e0] sm:$0xff]  ;;  %v7258_v51 = vld [vmem:[#allocation16_spill] sm:$0xff] }
 0x295   :  { %v6416_v59 = vadd.f32 %v6298_v11, %v2481_v40  ;;  %1706 = vperm.xlu0 %3941, %v1552_v62   ;;  %v1399_v39 = vadd.f32 %v1367_v60, %v1044_v1  ;;  %v7259_v62 = vld [vmem:[#allocation38_spill] sm:$0xff]  ;;  %v7260_v40 = vld [vmem:[#allocation15_spill] sm:$0xff] }
 0x296   :  { %v6420_v30 = vadd.f32 %v6300_v46, %v2480_v18  ;;  %v6446_v29 = vadd.f32 %v7259_v62, %v7258_v51  ;;  %v1536_v1 = vld [vmem:[%s7070_s3 + $0x3b0] sm:$0xff] }
 0x297   :  { %v3554_v9 = vmul.f32 -1.442695, %v6416_v59  ;;  %v2152_v23 = vpop.permute.xlu1 %2151  ;;  %v1754_v36 = vadd.f32 %v1722_v54, %v1399_v39 }
 0x298   :  { %v3553_v14 = vmul.f32 -1.442695, %v6420_v30  ;;  %v2209_v11 = vsel %vm2197_vm4, %v2152_v23, 0.0  ;;  %v2150_v57 = vpop.permute.xlu0 %2149  ;;  %1836 = vrot.lane.b32.xlu1 %v6245_v24, %s4270_s18  ;;  %v3512_v18 = vmul.f32 -1.442695, %v6446_v29 }
 0x299   :  { %4119 = vpow2.f32 %v3554_v9  ;;  %v2433_v46 = vmul.f32 %v6198_v38, %v2209_v11  ;;  %v2208_v63 = vsel %vm2197_vm4, %v2150_v57, 0.0  ;;  %1834 = vrot.lane.b32.xlu0 %v6249_v20, %s4270_s18  ;;  %v2109_v50 = vadd.f32 %v2077_v53, %v1754_v36 }
 0x29a   :  { %4121 = vpow2.f32 %v3553_v14  ;;  %v2432_v60 = vmul.f32 %v6200_v0, %v2208_v63  ;;  %v6452_v0 = vadd.f32 %v7261_v56, %v7260_v40  ;;  %v68_v14 = vld [vmem:[%s7070_s3 + $0x160] sm:$0xff]  ;;  %v1908_v63 = vld [vmem:[%s7070_s3 + $0x638] sm:$0xff] }
 0x29b   :  { %4123 = vpow2.f32 %v3528_v17  ;;  %v2465_v38 = vadd.f32 %v2433_v46, %v2110_v47  ;;  %v6442_v48 = vpop.permute.xlu1 %1122 }
 0x29c   :  { %4125 = vpow2.f32 %v3527_v7  ;;  %v2464_v34 = vadd.f32 %v2432_v60, %v2109_v50  ;;  %v6448_v6 = vpop.permute.xlu0 %1120  ;;  %2635 = vperm.xlu1 %3942, %v85_v5   ;;  %v3511_v49 = vmul.f32 -1.442695, %v6452_v0  ;;  %v69_v7 = vld [vmem:[%s7070_s3 + $0x168] sm:$0xff]  ;;  %v1907_v5 = vld [vmem:[%s7070_s3 + $0x630] sm:$0xff] }
 0x29d   :  { %v6455_v2 = vadd.f32 %v6328_v35, %v2465_v38  ;;  %2630 = vperm.xlu0 %3941, %v84_v43  }
 0x29e   :  { %v6461_v44 = vadd.f32 %v6333_v42, %v2464_v34 }
 0x29f   :  { %v3538_v58 = vmul.f32 -1.442695, %v6455_v2  ;;  %v6467_v54 = vpop.permute.xlu1 %2401 }
 0x2a0   :  { %v3537_v35 = vmul.f32 -1.442695, %v6461_v44  ;;  %v6471_v19 = vpop.permute.xlu0 %2396  ;;  %1631 = vperm.xlu1 %3942, %v1537_v25  }
 0x2a1   :  { %4127 = vpow2.f32 %v3538_v58  ;;  %1626 = vperm.xlu0 %3941, %v1536_v1  }
 0x2a2   :  { %4129 = vpow2.f32 %v3537_v35  ;;  %v1892_v35 = vld [vmem:[%s7070_s3 + $0x5b8] sm:$0xff] }
 0x2a3   :  { %v4120_v42 = vpop.eup %4119  ;;  %v6474_v39 = vpop.permute.xlu1 %1090  ;;  %4131 = vpow2.f32 %v3512_v18 }
 0x2a4   :  { %v4122_v53 = vpop.eup %4121  ;;  %v2801_v17 = vadd.f32 1.0, %v4120_v42  ;;  %v6476_v12 = vpop.permute.xlu0 %1088  ;;  %1804 = vrot.lane.b32.xlu1 %v6273_v8, %s4270_s18  ;;  %4133 = vpow2.f32 %v3511_v49 }
 0x2a5   :  { %v4124_v9 = vpop.eup %4123  ;;  %v2800_v23 = vadd.f32 1.0, %v4122_v53  ;;  %1802 = vrot.lane.b32.xlu0 %v6276_v21, %s4270_s18  ;;  %v1891_v53 = vld [vmem:[%s7070_s3 + $0x5b0] sm:$0xff] }
 0x2a6   :  { %v4126_v36 = vpop.eup %4125  ;;  %4135 = vrcp.f32 %v2801_v17  ;;  %v745_v57 = vadd.f32 1.0, %v4124_v9 }
 0x2a7   :  { %4137 = vrcp.f32 %v2800_v23  ;;  %v6488_v11 = vpop.permute.xlu1 %2321  ;;  %v744_v46 = vadd.f32 1.0, %v4126_v36 }
 0x2a8   :  { %v6490_v47 = vpop.permute.xlu0 %2316  ;;  %2555 = vperm.xlu1 %3942, %v69_v7   ;;  %4139 = vrcp.f32 %v745_v57 }
 0x2a9   :  { %2550 = vperm.xlu0 %3941, %v68_v14   ;;  %4141 = vrcp.f32 %v744_v46 }
 0x2ab   :  { %v4128_v50 = vpop.eup %4127  ;;  %v6498_v60 = vpop.permute.xlu1 %1023 }
 0x2ac   :  { %v4130_v43 = vpop.eup %4129  ;;  %v2785_v38 = vadd.f32 1.0, %v4128_v50  ;;  %v6500_v51 = vpop.permute.xlu0 %1018  ;;  %2066 = vperm.xlu1 %3942, %v1908_v63  }
 0x2ad   :  { %7262 = vst [vmem:[#allocation27_spill] sm:$0xff] %v6500_v51  ;;  %v2784_v62 = vadd.f32 1.0, %v4130_v43  ;;  %2061 = vperm.xlu0 %3941, %v1907_v5   ;;  %v4132_v34 = vpop.eup %4131 }
 0x2ae   :  { %4143 = vrcp.f32 %v2785_v38  ;;  %v4134_v40 = vpop.eup %4133  ;;  %v729_v18 = vadd.f32 1.0, %v4132_v34 }
 0x2af   :  { %4145 = vrcp.f32 %v2784_v62  ;;  %v6502_v56 = vpop.permute.xlu1 %1346  ;;  %v728_v42 = vadd.f32 1.0, %v4134_v40 }
 0x2b0   :  { %v4136_v25 = vpop.eup %4135  ;;  %v6504_v1 = vpop.permute.xlu0 %1341  ;;  %2191 = vrot.lane.b32.xlu1 %v6245_v24, %s4271_s19  ;;  %4147 = vrcp.f32 %v729_v18 }
 0x2b1   :  { %v4138_v58 = vpop.eup %4137  ;;  %2189 = vrot.lane.b32.xlu0 %v6249_v20, %s4271_s19  ;;  %v2897_v49 = vmul.f32 %v4136_v25, %v6416_v59  ;;  %4149 = vrcp.f32 %v728_v42  ;;  %v2247_v42 = vld [vmem:[%s7070_s3 + $0x6b8] sm:$0xff] }
 0x2b2   :  { %v2896_v17 = vmul.f32 %v4138_v58, %v6420_v30  ;;  %v4140_v36 = vpop.eup %4139 }
 0x2b3   :  { %v6518_v9 = vpop.permute.xlu1 %1477  ;;  %v4142_v59 = vpop.eup %4141  ;;  %v6535_v5 = vmul.f32 %v4140_v36, %v6367_v55  ;;  %v2263_v55 = vld [vmem:[%s7070_s3 + $0x738] sm:$0xff] }
 0x2b4   :  { %v6520_v23 = vpop.permute.xlu0 %1475  ;;  %1986 = vperm.xlu1 %3942, %v1892_v35   ;;  %v6522_v7 = vpack.c.bf16 %v2897_v49, %v2896_v17  ;;  %v6539_v43 = vmul.f32 %v4142_v59, %v6407_v41  ;;  %v2262_v41 = vld [vmem:[%s7070_s3 + $0x730] sm:$0xff] }
 0x2b5   :  { %1981 = vperm.xlu0 %3941, %v1891_v53  }
 0x2b6   :  { %7263 = vst [vmem:[#allocation31_spill] sm:$0xff] %v6522_v7  ;;  %3836 = vmatprep.subr.bf16.mxu1 %v6522_v7 }
 0x2b7   :  { %v6525_v14 = vpop.permute.xlu1 %943 }
 0x2b8   :  { %v4144_v57 = vpop.eup %4143  ;;  %v6527_v46 = vpop.permute.xlu0 %938  ;;  %2159 = vrot.lane.b32.xlu1 %v6273_v8, %s4271_s19 }
 0x2b9   :  { %v4146_v30 = vpop.eup %4145  ;;  %v2881_v63 = vmul.f32 %v4144_v57, %v6455_v2  ;;  %2157 = vrot.lane.b32.xlu0 %v6276_v21, %s4271_s19 }
 0x2ba   :  { %v2880_v50 = vmul.f32 %v4146_v30, %v6461_v44  ;;  %v4148_v2 = vpop.eup %4147 }
 0x2bb   :  { %v6541_v38 = vpop.permute.xlu1 %1266  ;;  %v4150_v40 = vpop.eup %4149  ;;  %v6563_v58 = vmul.f32 %v4148_v2, %v6446_v29  ;;  %v2246_v29 = vld [vmem:[%s7070_s3 + $0x6b0] sm:$0xff]  ;;  %v1161_v2 = vsel %vm1132_vm1, %v6448_v6, 0.0 }
 0x2bc   :  { %v6543_v62 = vpop.permute.xlu0 %1261  ;;  %1130 = vrot.lane.b32.xlu1 %v6535_v5, %s4268_s16  ;;  %v6547_v34 = vpack.c.bf16 %v2881_v63, %v2880_v50  ;;  %v6566_v18 = vmul.f32 %v4150_v40, %v6452_v0  ;;  %v87_v50 = vld [vmem:[%s7070_s3 + $0x1f8] sm:$0xff]  ;;  %v1385_v7 = vmul.f32 %v6214_v16, %v1161_v2 }
 0x2bd   :  { %1128 = vrot.lane.b32.xlu0 %v6539_v43, %s4268_s16 }
 0x2be   :  { %7264 = vst [vmem:[#allocation26_spill] sm:$0xff] %v6547_v34  ;;  %3838 = vmatpush3.bf16.xpose.msra.mxu1 %v6547_v34 }
 0x2bf   :  { %v6558_v44 = vpop.permute.xlu1 %1445 }
 0x2c0   :  { %v6560_v25 = vpop.permute.xlu0 %1443  ;;  %2421 = vperm.xlu1 %3942, %v2263_v55   ;;  %v1162_v55 = vsel %vm1132_vm1, %v6442_v48, 0.0  ;;  %v1516_v48 = vsel %vm1487_vm2, %v6520_v23, 0.0 }
 0x2c1   :  { %2416 = vperm.xlu0 %3941, %v2262_v41   ;;  %v86_v41 = vld [vmem:[%s7070_s3 + $0x1f0] sm:$0xff]  ;;  %v1386_v34 = vmul.f32 %v6212_v45, %v1162_v55  ;;  %v1062_v45 = vmul.f32 %v6210_v32, %v5959_v15  ;;  %v1740_v23 = vmul.f32 %v6280_v10, %v1516_v48  ;;  %v71_v15 = vld [vmem:[%s7070_s3 + $0x178] sm:$0xff] }
 0x2c2   :  { %v70_v10 = vld [vmem:[%s7070_s3 + $0x170] sm:$0xff] }
 0x2c3   :  { %v6568_v35 = vpop.permute.xlu1 %1701  ;;  %v1417_v32 = vadd.f32 %v1385_v7, %v1062_v45 }
 0x2c4   :  { %v6570_v49 = vpop.permute.xlu0 %1696  ;;  %1098 = vrot.lane.b32.xlu1 %v6563_v58, %s4268_s16 }
 0x2c5   :  { %7265 = vst [vmem:[#allocation30_spill] sm:$0xff] %v6570_v49  ;;  %1096 = vrot.lane.b32.xlu0 %v6566_v18, %s4268_s16  ;;  %v1063_v49 = vmul.f32 %v6208_v13, %v5955_v27  ;;  %v1146_v27 = vsel %vm1132_vm1, %v6474_v39, 0.0  ;;  %v1145_v39 = vsel %vm1132_vm1, %v6476_v12, 0.0 }
 0x2c7   :  { %v1833_v0 = vpop.permute.xlu1 %1832  ;;  %v1418_v16 = vadd.f32 %v1386_v34, %v1063_v49  ;;  %v1370_v49 = vmul.f32 %v6251_v61, %v1146_v27  ;;  %v7268_v27 = vld [vmem:[#allocation35_spill] sm:$0xff] }
 0x2c8   :  { %v1831_v53 = vpop.permute.xlu0 %1830  ;;  %2341 = vperm.xlu1 %3942, %v2247_v42   ;;  %v1517_v42 = vsel %vm1487_vm2, %v6518_v9, 0.0  ;;  %v1872_v6 = vsel %vm1842_vm3, %v1833_v0, 0.0  ;;  %v1772_v0 = vadd.f32 %v1740_v23, %v1417_v32 }
 0x2c9   :  { %2336 = vperm.xlu0 %3941, %v2246_v29   ;;  %v1741_v9 = vmul.f32 %v6278_v4, %v1517_v42  ;;  %v2096_v13 = vmul.f32 %v6353_v26, %v1872_v6  ;;  %v1369_v42 = vmul.f32 %v6253_v52, %v1145_v39 }
 0x2cb   :  { %v6582_v17 = vpop.permute.xlu1 %2625  ;;  %v1773_v34 = vadd.f32 %v1741_v9, %v1418_v16  ;;  %v1047_v9 = vmul.f32 %v6235_v3, %v5983_v22  ;;  %v7267_v16 = vld [vmem:[#allocation22_spill] sm:$0xff] }
 0x2cc   :  { %v6584_v36 = vpop.permute.xlu0 %2620  ;;  %1485 = vrot.lane.b32.xlu1 %v6535_v5, %s4269_s17  ;;  %v1046_v52 = vmul.f32 %v7268_v27, %v7267_v16 }
 0x2cd   :  { %1483 = vrot.lane.b32.xlu0 %v6539_v43, %s4269_s17  ;;  %v2128_v2 = vadd.f32 %v2096_v13, %v1773_v34  ;;  %v7269_v13 = vld [vmem:[#allocation28_spill] sm:$0xff]  ;;  %v1402_v22 = vadd.f32 %v1370_v49, %v1047_v9 }
 0x2cf   :  { %v6590_v59 = vpop.permute.xlu1 %1621 }
 0x2d0   :  { %v6592_v57 = vpop.permute.xlu0 %1616  ;;  %1453 = vrot.lane.b32.xlu1 %v6563_v58, %s4269_s17 }
 0x2d1   :  { %1451 = vrot.lane.b32.xlu0 %v6566_v18, %s4269_s17 }
 0x2d3   :  { %v1801_v30 = vpop.permute.xlu1 %1800 }
 0x2d4   :  { %v1799_v63 = vpop.permute.xlu0 %1798  ;;  %1840 = vrot.lane.b32.xlu1 %v6535_v5, %s4270_s18 }
 0x2d5   :  { %1838 = vrot.lane.b32.xlu0 %v6539_v43, %s4270_s18 }
 0x2d7   :  { %v6614_v40 = vpop.permute.xlu1 %2545 }
 0x2d8   :  { %v6619_v29 = vpop.permute.xlu0 %2540  ;;  %2645 = vperm.xlu1 %3942, %v87_v50   ;;  %v1871_v50 = vsel %vm1842_vm3, %v1831_v53, 0.0  ;;  %v1501_v53 = vsel %vm1487_vm2, %v6558_v44, 0.0  ;;  %v1856_v44 = vsel %vm1842_vm3, %v1801_v30, 0.0 }
 0x2d9   :  { %2640 = vperm.xlu0 %3941, %v86_v41   ;;  %v2095_v4 = vmul.f32 %v6358_v37, %v1871_v50  ;;  %v1500_v41 = vsel %vm1487_vm2, %v6560_v25, 0.0  ;;  %v7266_v50 = vld [vmem:[#allocation29_spill] sm:$0xff]  ;;  %v2080_v3 = vmul.f32 %v6403_v31, %v1856_v44  ;;  %v91_v44 = vld [vmem:[%s7070_s3 + $0x218] sm:$0xff] }
 0x2da   :  { %v1725_v25 = vmul.f32 %v7266_v50, %v1501_v53 }
 0x2db   :  { %v6633_v51 = vpop.permute.xlu1 %2056  ;;  %v2127_v48 = vadd.f32 %v2095_v4, %v1772_v0 }
 0x2dc   :  { %v6638_v55 = vpop.permute.xlu0 %2051  ;;  %1808 = vrot.lane.b32.xlu1 %v6563_v58, %s4270_s18  ;;  %v1757_v39 = vadd.f32 %v1725_v25, %v1402_v22 }
 0x2dd   :  { %1806 = vrot.lane.b32.xlu0 %v6566_v18, %s4270_s18 }
 0x2de   :  { %v2112_v53 = vadd.f32 %v2080_v3, %v1757_v39  ;;  %v1048_v39 = vmul.f32 %v6527_v46, %v6276_v21 }
 0x2df   :  { %v2188_v26 = vpop.permute.xlu1 %2187 }
 0x2e0   :  { %v2227_v37 = vsel %vm2197_vm4, %v2188_v26, 0.0  ;;  %v2186_v7 = vpop.permute.xlu0 %2185  ;;  %2565 = vperm.xlu1 %3942, %v71_v15   ;;  %v1724_v15 = vmul.f32 %v7269_v13, %v1500_v41 }
 0x2e1   :  { %v2451_v12 = vmul.f32 %v6467_v54, %v2227_v37  ;;  %v2226_v61 = vsel %vm2197_vm4, %v2186_v7, 0.0  ;;  %2560 = vperm.xlu0 %3941, %v70_v10   ;;  %v1855_v54 = vsel %vm1842_vm3, %v1799_v63, 0.0  ;;  %v1401_v63 = vadd.f32 %v1369_v42, %v1046_v52  ;;  %v89_v37 = vld [vmem:[%s7070_s3 + $0x208] sm:$0xff] }
 0x2e2   :  { %v2450_v6 = vmul.f32 %v6471_v19, %v2226_v61  ;;  %v2079_v4 = vmul.f32 %v6412_v28, %v1855_v54 }
 0x2e3   :  { %v2483_v45 = vadd.f32 %v2451_v12, %v2128_v2  ;;  %v6679_v23 = vpop.permute.xlu1 %1976  ;;  %v1756_v0 = vadd.f32 %v1724_v15, %v1401_v63  ;;  %v88_v2 = vld [vmem:[%s7070_s3 + $0x200] sm:$0xff] }
 0x2e4   :  { %v2482_v32 = vadd.f32 %v2450_v6, %v2127_v48  ;;  %v6684_v30 = vpop.permute.xlu0 %1971  ;;  %2195 = vrot.lane.b32.xlu1 %v6535_v5, %s4271_s19  ;;  %v90_v6 = vld [vmem:[%s7070_s3 + $0x210] sm:$0xff] }
 0x2e5   :  { %v6690_v19 = vadd.f32 %v6582_v17, %v2483_v45  ;;  %2193 = vrot.lane.b32.xlu0 %v6539_v43, %s4271_s19  ;;  %v2111_v7 = vadd.f32 %v2079_v4, %v1756_v0  ;;  %v95_v4 = vld [vmem:[%s7070_s3 + $0x238] sm:$0xff] }
 0x2e6   :  { %v6696_v10 = vadd.f32 %v6584_v36, %v2482_v32  ;;  %v1049_v32 = vmul.f32 %v6525_v14, %v6273_v8  ;;  %v94_v8 = vld [vmem:[%s7070_s3 + $0x230] sm:$0xff] }
 0x2e7   :  { %v3556_v34 = vmul.f32 -1.442695, %v6690_v19  ;;  %v2156_v26 = vpop.permute.xlu1 %2155 }
 0x2e8   :  { %v3555_v49 = vmul.f32 -1.442695, %v6696_v10  ;;  %v2211_v31 = vsel %vm2197_vm4, %v2156_v26, 0.0  ;;  %v2154_v17 = vpop.permute.xlu0 %2153  ;;  %2163 = vrot.lane.b32.xlu1 %v6563_v58, %s4271_s19 }
 0x2e9   :  { %4151 = vpow2.f32 %v3556_v34  ;;  %v2435_v28 = vmul.f32 %v6488_v11, %v2211_v31  ;;  %v2210_v36 = vsel %vm2197_vm4, %v2154_v17, 0.0  ;;  %2161 = vrot.lane.b32.xlu0 %v6566_v18, %s4271_s19 }
 0x2ea   :  { %4153 = vpow2.f32 %v3555_v49  ;;  %v2434_v41 = vmul.f32 %v6490_v47, %v2210_v36 }
 0x2eb   :  { %v2467_v12 = vadd.f32 %v2435_v28, %v2112_v53  ;;  %v6716_v11 = vpop.permute.xlu1 %1126 }
 0x2ec   :  { %v2466_v61 = vadd.f32 %v2434_v41, %v2111_v7  ;;  %v6718_v42 = vpop.permute.xlu0 %1124  ;;  %3247 = vperm.xlu1 %3942, %v89_v37  }
 0x2ed   :  { %v6721_v48 = vadd.f32 %v6614_v40, %v2467_v12  ;;  %3242 = vperm.xlu0 %3941, %v88_v2   ;;  %v93_v40 = vld [vmem:[%s7070_s3 + $0x228] sm:$0xff] }
 0x2ee   :  { %v2658_v47 = vadd.f32 %v6619_v29, %v2466_v61  ;;  %v92_v29 = vld [vmem:[%s7070_s3 + $0x220] sm:$0xff] }
 0x2ef   :  { %v3540_v9 = vmul.f32 -1.442695, %v6721_v48  ;;  %v6731_v50 = vpop.permute.xlu1 %2411 }
 0x2f0   :  { %v3539_v25 = vmul.f32 -1.442695, %v2658_v47  ;;  %v6733_v54 = vpop.permute.xlu0 %2406  ;;  %3257 = vperm.xlu1 %3942, %v91_v44  }
 0x2f1   :  { %4155 = vpow2.f32 %v3540_v9  ;;  %3252 = vperm.xlu0 %3941, %v90_v6  }
 0x2f2   :  { %4157 = vpow2.f32 %v3539_v25 }
 0x2f3   :  { %v4152_v45 = vpop.eup %4151  ;;  %v1095_v16 = vpop.permute.xlu1 %1094 }
 0x2f4   :  { %v4154_v27 = vpop.eup %4153  ;;  %v2803_v52 = vadd.f32 1.0, %v4152_v45  ;;  %v1148_v13 = vsel %vm1132_vm1, %v1095_v16, 0.0  ;;  %v1093_v15 = vpop.permute.xlu0 %1092  ;;  %3267 = vperm.xlu1 %3942, %v93_v40  }
 0x2f5   :  { %v2802_v22 = vadd.f32 1.0, %v4154_v27  ;;  %v1372_v3 = vmul.f32 %v6541_v38, %v1148_v13  ;;  %v1147_v63 = vsel %vm1132_vm1, %v1093_v15, 0.0  ;;  %3262 = vperm.xlu0 %3941, %v92_v29   ;;  %v4272_v27 = vmov 0.0078125  }
 0x2f6   :  { %4159 = vrcp.f32 %v2803_v52  ;;  %v1371_v34 = vmul.f32 %v6543_v62, %v1147_v63  ;;  %3646 = vmatprep.mubr.f32.mxu1 %v4272_v27  ;;  %v1164_v52 = vsel %vm1132_vm1, %v6716_v11, 0.0  ;;  %v1163_v13 = vsel %vm1132_vm1, %v6718_v42, 0.0 }
 0x2f7   :  { %4161 = vrcp.f32 %v2802_v22  ;;  %v1404_v14 = vadd.f32 %v1372_v3, %v1049_v32  ;;  %v6757_v38 = vpop.permute.xlu1 %2331  ;;  %v1388_v11 = vmul.f32 %v6502_v56, %v1164_v52  ;;  %v1387_v42 = vmul.f32 %v6504_v1, %v1163_v13  ;;  %v7271_v56 = vld [vmem:[#allocation30_spill] sm:$0xff] }
 0x2f8   :  { %v1403_v26 = vadd.f32 %v1371_v34, %v1048_v39  ;;  %v6759_v0 = vpop.permute.xlu0 %2326  ;;  %3277 = vperm.xlu1 %3942, %v95_v4  }
 0x2f9   :  { %3272 = vperm.xlu0 %3941, %v94_v8   ;;  %v1065_v8 = vmul.f32 %v6498_v60, %v6245_v24 }
 0x2fb   :  { %v4156_v49 = vpop.eup %4155  ;;  %v1034_v31 = vpop.permute.xlu1 %1033 }
 0x2fc   :  { %v4158_v17 = vpop.eup %4157  ;;  %v2787_v21 = vadd.f32 1.0, %v4156_v49  ;;  %v6762_v46 = vmul.f32 %v1034_v31, %v6535_v5  ;;  %v1029_v62 = vpop.permute.xlu0 %1028 }
 0x2fd   :  { %v2786_v53 = vadd.f32 1.0, %v4158_v17  ;;  %v6765_v28 = vmul.f32 %v1029_v62, %v6539_v43 }
 0x2fe   :  { %4163 = vrcp.f32 %v2787_v21  ;;  %v1420_v21 = vadd.f32 %v1388_v11, %v1065_v8 }
 0x2ff   :  { %4165 = vrcp.f32 %v2786_v53  ;;  %v6767_v36 = vpop.permute.xlu1 %1356 }
 0x300   :  { %v4160_v37 = vpop.eup %4159  ;;  %v6769_v7 = vpop.permute.xlu0 %1351 }
 0x301   :  { %v4162_v41 = vpop.eup %4161  ;;  %v2899_v2 = vmul.f32 %v4160_v37, %v6690_v19 }
 0x302   :  { %v2898_v12 = vmul.f32 %v4162_v41, %v6696_v10 }
 0x303   :  { %v1482_v61 = vpop.permute.xlu1 %1481 }
 0x304   :  { %v1480_v5 = vpop.permute.xlu0 %1479  ;;  %v6773_v44 = vpack.c.bf16 %v2899_v2, %v2898_v12  ;;  %v1519_v22 = vsel %vm1487_vm2, %v1482_v61, 0.0 }
 0x305   :  { %v1518_v63 = vsel %vm1487_vm2, %v1480_v5, 0.0  ;;  %v1743_v49 = vmul.f32 %v6568_v35, %v1519_v22 }
 0x306   :  { %3840 = vmatprep.subr.bf16.mxu1 %v6773_v44  ;;  %v1742_v17 = vmul.f32 %v7271_v56, %v1518_v63 }
 0x307   :  { %v6776_v43 = vpop.permute.xlu1 %953 }
 0x308   :  { %v4164_v6 = vpop.eup %4163  ;;  %v6778_v9 = vpop.permute.xlu0 %948 }
 0x309   :  { %v4166_v25 = vpop.eup %4165  ;;  %v2883_v40 = vmul.f32 %v4164_v6, %v6721_v48 }
 0x30a   :  { %v2882_v29 = vmul.f32 %v4166_v25, %v2658_v47 }
 0x30b   :  { %v6781_v45 = vpop.permute.xlu1 %1276 }
 0x30c   :  { %v6783_v19 = vpop.permute.xlu0 %1271  ;;  %v6785_v10 = vpack.c.bf16 %v2883_v40, %v2882_v29 }
 0x30e   :  { %3842 = vmatpush3.bf16.xpose.msra.mxu1 %v6785_v10 }
 0x30f   :  { %v1450_v16 = vpop.permute.xlu1 %1449 }
 0x310   :  { %v1503_v48 = vsel %vm1487_vm2, %v1450_v16, 0.0  ;;  %v1448_v47 = vpop.permute.xlu0 %1447 }
 0x311   :  { %v1727_v15 = vmul.f32 %v6590_v59, %v1503_v48  ;;  %v1502_v32 = vsel %vm1487_vm2, %v1448_v47, 0.0 }
 0x312   :  { %v1726_v3 = vmul.f32 %v6592_v57, %v1502_v32  ;;  %v7270_v57 = vld [vmem:[#allocation27_spill] sm:$0xff] }
 0x313   :  { %v1759_v4 = vadd.f32 %v1727_v15, %v1404_v14  ;;  %v6806_v39 = vpop.permute.xlu1 %1711  ;;  %v1064_v31 = vmul.f32 %v7270_v57, %v6249_v20 }
 0x314   :  { %v1758_v34 = vadd.f32 %v1726_v3, %v1403_v26  ;;  %v6809_v59 = vpop.permute.xlu0 %1706  ;;  %v1775_v26 = vadd.f32 %v1743_v49, %v1420_v21 }
 0x315   :  { %v1419_v14 = vadd.f32 %v1387_v42, %v1064_v31 }
 0x317   :  { %v1837_v62 = vpop.permute.xlu1 %1836  ;;  %v1774_v60 = vadd.f32 %v1742_v17, %v1419_v14 }
 0x318   :  { %v1874_v53 = vsel %vm1842_vm3, %v1837_v62, 0.0  ;;  %v1835_v1 = vpop.permute.xlu0 %1834 }
 0x319   :  { %v2098_v37 = vmul.f32 %v6633_v51, %v1874_v53  ;;  %v1873_v24 = vsel %vm1842_vm3, %v1835_v1, 0.0 }
 0x31a   :  { %v2097_v35 = vmul.f32 %v6638_v55, %v1873_v24 }
 0x31b   :  { %v2130_v41 = vadd.f32 %v2098_v37, %v1775_v26  ;;  %v2636_v20 = vpop.permute.xlu1 %2635 }
 0x31c   :  { %v2129_v2 = vadd.f32 %v2097_v35, %v1774_v60  ;;  %v2631_v12 = vpop.permute.xlu0 %2630 }
 0x31f   :  { %v6823_v61 = vpop.permute.xlu1 %1631 }
 0x320   :  { %v6825_v5 = vpop.permute.xlu0 %1626 }
 0x323   :  { %v1805_v6 = vpop.permute.xlu1 %1804 }
 0x324   :  { %v1858_v25 = vsel %vm1842_vm3, %v1805_v6, 0.0  ;;  %v1803_v40 = vpop.permute.xlu0 %1802 }
 0x325   :  { %v2082_v51 = vmul.f32 %v6679_v23, %v1858_v25  ;;  %v1857_v29 = vsel %vm1842_vm3, %v1803_v40, 0.0 }
 0x326   :  { %v2081_v55 = vmul.f32 %v6684_v30, %v1857_v29 }
 0x327   :  { %v2114_v16 = vadd.f32 %v2082_v51, %v1759_v4  ;;  %v2556_v52 = vpop.permute.xlu1 %2555 }
 0x328   :  { %v2113_v48 = vadd.f32 %v2081_v55, %v1758_v34  ;;  %v2551_v47 = vpop.permute.xlu0 %2550 }
 0x32b   :  { %v6833_v13 = vpop.permute.xlu1 %2066 }
 0x32c   :  { %v6835_v15 = vpop.permute.xlu0 %2061 }
 0x32f   :  { %v2192_v32 = vpop.permute.xlu1 %2191 }
 0x330   :  { %v2229_v22 = vsel %vm2197_vm4, %v2192_v32, 0.0  ;;  %v2190_v3 = vpop.permute.xlu0 %2189 }
 0x331   :  { %v2453_v23 = vmul.f32 %v6731_v50, %v2229_v22  ;;  %v2228_v11 = vsel %vm2197_vm4, %v2190_v3, 0.0 }
 0x332   :  { %v2452_v30 = vmul.f32 %v6733_v54, %v2228_v11 }
 0x333   :  { %v2485_v63 = vadd.f32 %v2453_v23, %v2130_v41  ;;  %v6843_v4 = vpop.permute.xlu1 %1986 }
 0x334   :  { %v2484_v42 = vadd.f32 %v2452_v30, %v2129_v2  ;;  %v6845_v34 = vpop.permute.xlu0 %1981 }
 0x335   :  { %v6847_v8 = vadd.f32 %v2636_v20, %v2485_v63 }
 0x336   :  { %v6849_v49 = vadd.f32 %v2631_v12, %v2484_v42 }
 0x337   :  { %v3558_v57 = vmul.f32 -1.442695, %v6847_v8  ;;  %v2160_v31 = vpop.permute.xlu1 %2159 }
 0x338   :  { %v3557_v50 = vmul.f32 -1.442695, %v6849_v49  ;;  %v2213_v56 = vsel %vm2197_vm4, %v2160_v31, 0.0  ;;  %v2158_v17 = vpop.permute.xlu0 %2157 }
 0x339   :  { %4167 = vpow2.f32 %v3558_v57  ;;  %v2437_v54 = vmul.f32 %v6757_v38, %v2213_v56  ;;  %v2212_v21 = vsel %vm2197_vm4, %v2158_v17, 0.0 }
 0x33a   :  { %4169 = vpow2.f32 %v3557_v50  ;;  %v2436_v62 = vmul.f32 %v6759_v0, %v2212_v21 }
 0x33b   :  { %v2469_v14 = vadd.f32 %v2437_v54, %v2114_v16  ;;  %v1131_v53 = vpop.permute.xlu1 %1130 }
 0x33c   :  { %v2468_v1 = vadd.f32 %v2436_v62, %v2113_v48  ;;  %v1166_v26 = vsel %vm1132_vm1, %v1131_v53, 0.0  ;;  %v1129_v37 = vpop.permute.xlu0 %1128  ;;  %v1050_v48 = vmul.f32 %v6778_v9, %v6566_v18 }
 0x33d   :  { %v6861_v24 = vadd.f32 %v2556_v52, %v2469_v14  ;;  %v1390_v60 = vmul.f32 %v6767_v36, %v1166_v26  ;;  %v1165_v38 = vsel %vm1132_vm1, %v1129_v37, 0.0 }
 0x33e   :  { %v6866_v35 = vadd.f32 %v2551_v47, %v2468_v1  ;;  %v1389_v41 = vmul.f32 %v6769_v7, %v1165_v38 }
 0x33f   :  { %v3542_v0 = vmul.f32 -1.442695, %v6861_v24  ;;  %v1422_v20 = vadd.f32 %v1390_v60, %v6762_v46  ;;  %v6871_v2 = vpop.permute.xlu1 %2421  ;;  %v1051_v46 = vmul.f32 %v6776_v43, %v6563_v58 }
 0x340   :  { %v3541_v12 = vmul.f32 -1.442695, %v6866_v35  ;;  %v1421_v6 = vadd.f32 %v1389_v41, %v6765_v28  ;;  %v6875_v25 = vpop.permute.xlu0 %2416 }
 0x341   :  { %4171 = vpow2.f32 %v3542_v0 }
 0x342   :  { %4173 = vpow2.f32 %v3541_v12 }
 0x343   :  { %v4168_v36 = vpop.eup %4167  ;;  %v1099_v40 = vpop.permute.xlu1 %1098 }
 0x344   :  { %v4170_v51 = vpop.eup %4169  ;;  %v2805_v29 = vadd.f32 1.0, %v4168_v36  ;;  %v1150_v7 = vsel %vm1132_vm1, %v1099_v40, 0.0  ;;  %v1097_v55 = vpop.permute.xlu0 %1096 }
 0x345   :  { %v2804_v16 = vadd.f32 1.0, %v4170_v51  ;;  %v1374_v52 = vmul.f32 %v6781_v45, %v1150_v7  ;;  %v1149_v28 = vsel %vm1132_vm1, %v1097_v55, 0.0 }
 0x346   :  { %4175 = vrcp.f32 %v2805_v29  ;;  %v1373_v47 = vmul.f32 %v6783_v19, %v1149_v28 }
 0x347   :  { %4177 = vrcp.f32 %v2804_v16  ;;  %v1406_v32 = vadd.f32 %v1374_v52, %v1051_v46  ;;  %v6887_v22 = vpop.permute.xlu1 %2341 }
 0x348   :  { %v1405_v3 = vadd.f32 %v1373_v47, %v1050_v48  ;;  %v6889_v23 = vpop.permute.xlu0 %2336 }
 0x34b   :  { %v4172_v58 = vpop.eup %4171  ;;  %v1486_v43 = vpop.permute.xlu1 %1485 }
 0x34c   :  { %v4174_v11 = vpop.eup %4173  ;;  %v2789_v45 = vadd.f32 1.0, %v4172_v58  ;;  %v1521_v30 = vsel %vm1487_vm2, %v1486_v43, 0.0  ;;  %v1484_v63 = vpop.permute.xlu0 %1483 }
 0x34d   :  { %v2788_v42 = vadd.f32 1.0, %v4174_v11  ;;  %v1745_v18 = vmul.f32 %v6806_v39, %v1521_v30  ;;  %v1520_v9 = vsel %vm1487_vm2, %v1484_v63, 0.0 }
 0x34e   :  { %4179 = vrcp.f32 %v2789_v45  ;;  %v1744_v19 = vmul.f32 %v6809_v59, %v1520_v9 }
 0x34f   :  { %4181 = vrcp.f32 %v2788_v42  ;;  %v1777_v57 = vadd.f32 %v1745_v18, %v1422_v20  ;;  %v1454_v31 = vpop.permute.xlu1 %1453 }
 0x350   :  { %v4176_v50 = vpop.eup %4175  ;;  %v1776_v56 = vadd.f32 %v1744_v19, %v1421_v6  ;;  %v1505_v17 = vsel %vm1487_vm2, %v1454_v31, 0.0  ;;  %v1452_v54 = vpop.permute.xlu0 %1451 }
 0x351   :  { %v4178_v21 = vpop.eup %4177  ;;  %v1729_v62 = vmul.f32 %v6823_v61, %v1505_v17  ;;  %v1504_v39 = vsel %vm1487_vm2, %v1452_v54, 0.0  ;;  %v2901_v14 = vmul.f32 %v4176_v50, %v6847_v8 }
 0x352   :  { %v1728_v53 = vmul.f32 %v6825_v5, %v1504_v39  ;;  %v2900_v59 = vmul.f32 %v4178_v21, %v6849_v49 }
 0x353   :  { %v1761_v1 = vadd.f32 %v1729_v62, %v1406_v32  ;;  %v1841_v26 = vpop.permute.xlu1 %1840 }
 0x354   :  { %v1760_v37 = vadd.f32 %v1728_v53, %v1405_v3  ;;  %v1839_v60 = vpop.permute.xlu0 %1838  ;;  %v6905_v38 = vpack.c.bf16 %v2901_v14, %v2900_v59  ;;  %v1876_v49 = vsel %vm1842_vm3, %v1841_v26, 0.0 }
 0x355   :  { %v1875_v40 = vsel %vm1842_vm3, %v1839_v60, 0.0  ;;  %v2100_v7 = vmul.f32 %v6833_v13, %v1876_v49  ;;  %v7273_v49 = vld [vmem:[#allocation17_spill] sm:$0xff] }
 0x356   :  { %3844 = vmatprep.subr.bf16.mxu1 %v6905_v38 }
 0x357   :  { %v2646_v41 = vpop.permute.xlu1 %2645  ;;  %v2132_v28 = vadd.f32 %v2100_v7, %v1777_v57  ;;  %v7277_v7 = vld [vmem:[#allocation24_spill] sm:$0xff] }
 0x358   :  { %v4180_v0 = vpop.eup %4179  ;;  %v2641_v61 = vpop.permute.xlu0 %2640 }
 0x359   :  { %v4182_v20 = vpop.eup %4181  ;;  %v2885_v12 = vmul.f32 %v4180_v0, %v6861_v24  ;;  %v2099_v24 = vmul.f32 %v6835_v15, %v1875_v40  ;;  %v7274_v40 = vld [vmem:[#allocation60_spill] sm:$0xff] }
 0x35a   :  { %v2884_v8 = vmul.f32 %v4182_v20, %v6866_v35 }
 0x35b   :  { %v1809_v6 = vpop.permute.xlu1 %1808  ;;  %v2131_v15 = vadd.f32 %v2099_v24, %v1776_v56  ;;  %v7278_v24 = vld [vmem:[#allocation34_spill] sm:$0xff] }
 0x35c   :  { %v1807_v5 = vpop.permute.xlu0 %1806  ;;  %v6910_v36 = vpack.c.bf16 %v2885_v12, %v2884_v8  ;;  %v1860_v35 = vsel %vm1842_vm3, %v1809_v6, 0.0 }
 0x35d   :  { %v1859_v55 = vsel %vm1842_vm3, %v1807_v5, 0.0  ;;  %v2084_v48 = vmul.f32 %v6843_v4, %v1860_v35  ;;  %v7272_v5 = vld [vmem:[#allocation19_spill] sm:$0xff] }
 0x35e   :  { %3846 = vmatpush3.bf16.xpose.msra.mxu1 %v6910_v36  ;;  %v2083_v32 = vmul.f32 %v6845_v34, %v1859_v55  ;;  %v7279_v35 = vld [vmem:[#allocation31_spill] sm:$0xff]  ;;  %v3086_v55 = vld [vmem:[%s7072_s5 + $0x8] sm:$0xff] }
 0x35f   :  { %v2566_v51 = vpop.permute.xlu1 %2565  ;;  %v2116_v63 = vadd.f32 %v2084_v48, %v1761_v1  ;;  %v3089_v48 = vld [vmem:[%s7072_s5 + $0x20] sm:$0xff] }
 0x360   :  { %v2561_v29 = vpop.permute.xlu0 %2560  ;;  %v2115_v18 = vadd.f32 %v2083_v32, %v1760_v37  ;;  %v3096_v32 = vld [vmem:[%s7072_s5 + $0x58] sm:$0xff] }
 0x363   :  { %v2196_v46 = vpop.permute.xlu1 %2195 }
 0x364   :  { %v2231_v16 = vsel %vm2197_vm4, %v2196_v46, 0.0  ;;  %v2194_v52 = vpop.permute.xlu0 %2193  ;;  %v3088_v46 = vld [vmem:[%s7072_s5 + $0x18] sm:$0xff] }
 0x365   :  { %v2455_v47 = vmul.f32 %v6871_v2, %v2231_v16  ;;  %v2230_v13 = vsel %vm2197_vm4, %v2194_v52, 0.0  ;;  %v3883_v16 = vpack.c.bf16 %v3088_v46, %v3086_v55  ;;  %v3092_v52 = vld [vmem:[%s7072_s5 + $0x38] sm:$0xff] }
 0x366   :  { %v2454_v3 = vmul.f32 %v6875_v25, %v2230_v13 }
 0x367   :  { %v2487_v58 = vadd.f32 %v2455_v47, %v2132_v28  ;;  %v2164_v43 = vpop.permute.xlu1 %2163  ;;  %v3091_v47 = vld [vmem:[%s7072_s5 + $0x30] sm:$0xff] }
 0x368   :  { %v2486_v11 = vadd.f32 %v2454_v3, %v2131_v15  ;;  %v2215_v45 = vsel %vm2197_vm4, %v2164_v43, 0.0  ;;  %v2162_v30 = vpop.permute.xlu0 %2161  ;;  %v3889_v13 = vpack.c.bf16 %v3091_v47, %v3089_v48  ;;  %v3094_v15 = vld [vmem:[%s7072_s5 + $0x48] sm:$0xff]  ;;  %v3095_v43 = vld [vmem:[%s7072_s5 + $0x50] sm:$0xff]  ;;  %v3208_v47 = vld [vmem:[%s7069_s2 + $0x40] sm:$0xff] }
 0x369   :  { %v2679_v42 = vadd.f32 %v2646_v41, %v2487_v58  ;;  %v2439_v4 = vmul.f32 %v6887_v22, %v2215_v45  ;;  %v2214_v2 = vsel %vm2197_vm4, %v2162_v30, 0.0  ;;  %v3891_v3 = vpack.c.bf16 %v3096_v32, %v3094_v15  ;;  %v3093_v58 = vld [vmem:[%s7072_s5 + $0x40] sm:$0xff]  ;;  %v3098_v45 = vld [vmem:[%s7072_s5 + $0x68] sm:$0xff]  ;;  %v3100_v30 = vld [vmem:[%s7072_s5 + $0x78] sm:$0xff] }
 0x36a   :  { %v2678_v9 = vadd.f32 %v2641_v61, %v2486_v11  ;;  %v2438_v34 = vmul.f32 %v6889_v23, %v2214_v2  ;;  %v3893_v11 = vpack.c.bf16 %v3095_v43, %v3093_v58  ;;  %v3213_v58 = vld [vmem:[%s7069_s2 + $0x68] sm:$0xff] }
 0x36b   :  { %v3560_v19 = vmul.f32 -1.442695, %v2679_v42  ;;  %v2471_v25 = vadd.f32 %v2439_v4, %v2116_v63  ;;  %v3895_v63 = vpack.c.bf16 %v3100_v30, %v3098_v45  ;;  %v3099_v4 = vld [vmem:[%s7072_s5 + $0x70] sm:$0xff]  ;;  %v3212_v45 = vld [vmem:[%s7069_s2 + $0x60] sm:$0xff]  ;;  %v3215_v30 = vld [vmem:[%s7069_s2 + $0x78] sm:$0xff] }
 0x36c   :  { %v3559_v57 = vmul.f32 -1.442695, %v2678_v9  ;;  %v2470_v31 = vadd.f32 %v2438_v34, %v2115_v18  ;;  %v4273_v18 = vmov 0.0   ;;  %v3007_v34 = vld [vmem:[%s7071_s4 + $0x100] sm:$0x1] }
 0x36d   :  { %4183 = vpow2.f32 %v3560_v19  ;;  %v2663_v50 = vadd.f32 %v2566_v51, %v2471_v25  ;;  %v7275_v51 = vld [vmem:[#allocation21_spill] sm:$0xff] }
 0x36e   :  { %4185 = vpow2.f32 %v3559_v57  ;;  %v2662_v56 = vadd.f32 %v2561_v29, %v2470_v31  ;;  %v7276_v29 = vld [vmem:[#allocation23_spill] sm:$0xff] }
 0x36f   :  { %v3544_v17 = vmul.f32 -1.442695, %v2663_v50 }
 0x370   :  { %v3543_v54 = vmul.f32 -1.442695, %v2662_v56 }
 0x371   :  { %4187 = vpow2.f32 %v3544_v17 }
 0x372   :  { %4189 = vpow2.f32 %v3543_v54 }
 0x377   :  { %v4184_v22 = vpop.eup %4183 }
 0x378   :  { %v4186_v21 = vpop.eup %4185  ;;  %v2807_v33 = vadd.f32 1.0, %v4184_v22  ;;  %v7281_v22 = vlaneseq }
 0x379   :  { %v2806_v62 = vadd.f32 1.0, %v4186_v21 }
 0x37a   :  { %4191 = vrcp.f32 %v2807_v33  ;;  %v3105_v21 = vshrl.u32 %v7281_v22, 7 }
 0x37b   :  { %v4188_v39 = vpop.eup %4187  ;;  %4193 = vrcp.f32 %v2806_v62  ;;  %v3562_v62 = vld [vmem:[%s7072_s5 + $0x80] ss:$8 sm:$0x3] }
 0x37c   :  { %v4190_v23 = vpop.eup %4189  ;;  %v2791_v14 = vadd.f32 1.0, %v4188_v39  ;;  %v3106_v33 = vsub.s32 0, %v3105_v21  ;;  %v3110_v39 = vsub.s32 1, %v3105_v21 }
 0x37d   :  { %v2790_v53 = vadd.f32 1.0, %v4190_v23 }
 0x37e   :  { %4195 = vrcp.f32 %v2791_v14  ;;  %v3107_v23 = vrot.slane %v3562_v62, %v3106_v33  ;;  %v3111_v14 = vrot.slane %v3562_v62, %v3110_v39 }
 0x37f   :  { %4197 = vrcp.f32 %v2790_v53 }
 0x384   :  { %v4192_v59 = vpop.eup %4191 }
 0x385   :  { %v4194_v1 = vpop.eup %4193  ;;  %v2903_v26 = vmul.f32 %v4192_v59, %v2679_v42  ;;  %v3097_v42 = vld [vmem:[%s7072_s5 + $0x60] sm:$0xff] }
 0x386   :  { %v2902_v37 = vmul.f32 %v4194_v1, %v2678_v9  ;;  %v3897_v2 = vpack.c.bf16 %v3099_v4, %v3097_v42  ;;  %v3214_v4 = vld [vmem:[%s7069_s2 + $0x70] sm:$0xff] }
 0x388   :  { %v4196_v60 = vpop.eup %4195  ;;  %v3847_v41 = vpack.c.bf16 %v2903_v26, %v2902_v37 }
 0x389   :  { %v4198_v0 = vpop.eup %4197  ;;  %v2887_v61 = vmul.f32 %v4196_v60, %v2663_v50 }
 0x38a   :  { %v2886_v20 = vmul.f32 %v4198_v0, %v2662_v56  ;;  %3848 = vmatprep.subr.bf16.mxu1 %v3847_v41 }
 0x38c   :  { %v3849_v12 = vpack.c.bf16 %v2887_v61, %v2886_v20 }
 0x38e   :  { %3850 = vmatpush3.bf16.xpose.msra.mxu1 %v3849_v12 }
 0x38f   :  { %3884 = vmatprep.subr.bf16.mxu1 %v3883_v16  ;;  %v3204_v16 = vld [vmem:[%s7069_s2 + $0x20] sm:$0xff] }
 0x395   :  { %3647 = vmatmul.mubr.f32.vlgmr.msra.gmra.mrb[32].mxu1 %v4272_v27  ;;  %v7280_v27 = vld [vmem:[#allocation26_spill] sm:$0xff] }
 0x396   :  { %3181 = vmatprep.mubr.f32.mxu1 %v4273_v18 }
 0x468   :  { %v2970_v8 = vpop.f32.mrb[32].mxu1 }
 0x469   :  { %v2972_v6 = vpop.f32.mrb[33].mxu1 }
 0x46a   :  { %3072 = vmatprep.mubr.f32.mxu0 %v2972_v6 }
 0x46b   :  { %3073 = vmatmul.mubr.f32.vlgmr.msra.gmra.mrb[0].mxu0 %v2970_v8 }
 0x46c   :  { %3902 = vmatpush3.bf16.msra.mxu0 %v7272_v5  ;;  %v3201_v5 = vld [vmem:[%s7069_s2 + $0x8] sm:$0xff] }
 0x46d   :  { %3904 = vmatprep.subr.bf16.mxu0 %v7273_v49 }
 0x470   :  { %3906 = vmatpush3.bf16.msra.mxu0 %v7274_v40  ;;  %v3200_v40 = vld [vmem:[%s7069_s2] sm:$0xff] }
 0x471   :  { %3908 = vmatprep.subr.bf16.mxu0 %v7275_v51  ;;  %v3203_v51 = vld [vmem:[%s7069_s2 + $0x18] sm:$0xff] }
 0x474   :  { %3910 = vmatpush3.bf16.msra.mxu0 %v7276_v29 }
 0x475   :  { %3912 = vmatprep.subr.bf16.mxu0 %v7277_v7 }
 0x478   :  { %3914 = vmatpush3.bf16.msra.mxu0 %v7278_v24 }
 0x479   :  { %3916 = vmatprep.subr.bf16.mxu0 %v7279_v35  ;;  %v3202_v35 = vld [vmem:[%s7069_s2 + $0x10] sm:$0xff] }
 0x47c   :  { %3918 = vmatpush3.bf16.msra.mxu0 %v7280_v27  ;;  %v3205_v27 = vld [vmem:[%s7069_s2 + $0x28] sm:$0xff] }
 0x47d   :  { %3920 = vmatprep.subr.bf16.mxu0 %v6773_v44  ;;  %v3085_v44 = vld [vmem:[%s7072_s5] sm:$0xff] }
 0x480   :  { %3922 = vmatpush3.bf16.msra.mxu0 %v6785_v10  ;;  %v3087_v10 = vld [vmem:[%s7072_s5 + $0x10] sm:$0xff] }
 0x481   :  { %3924 = vmatprep.subr.bf16.mxu0 %v6905_v38  ;;  %v3885_v38 = vpack.c.bf16 %v3087_v10, %v3085_v44  ;;  %v3207_v44 = vld [vmem:[%s7069_s2 + $0x38] sm:$0xff] }
 0x483   :  { %3886 = vmatpush1.bf16.msra.mxu1 %v3885_v38 }
 0x484   :  { %3926 = vmatpush3.bf16.msra.mxu0 %v6910_v36  ;;  %v3090_v36 = vld [vmem:[%s7072_s5 + $0x28] sm:$0xff] }
 0x485   :  { %3928 = vmatprep.subr.bf16.mxu0 %v3847_v41  ;;  %v3887_v28 = vpack.c.bf16 %v3092_v52, %v3090_v36  ;;  %v3206_v36 = vld [vmem:[%s7069_s2 + $0x30] sm:$0xff]  ;;  %v3209_v52 = vld [vmem:[%s7069_s2 + $0x48] sm:$0xff] }
 0x487   :  { %3888 = vmatprep.subr.bf16.mxu1 %v3887_v28 }
 0x488   :  { %3930 = vmatpush3.bf16.msra.mxu0 %v3849_v12  ;;  %3890 = vmatpush1.bf16.msra.mxu1 %v3889_v13  ;;  %v3211_v13 = vld [vmem:[%s7069_s2 + $0x58] sm:$0xff] }
 0x489   :  { %3892 = vmatprep.subr.bf16.mxu1 %v3891_v3  ;;  %v3210_v3 = vld [vmem:[%s7069_s2 + $0x50] sm:$0xff]  ;;  %s4274_s2 = smov [#allocation2]  }
 0x48a   :  { %s3454_s23 = sshll.u32 %s4274_s2, 4  ;;  %s3455_s23 = int_to_ptr.vmem [resolvable:$true] %s3454_s23 }
 0x48b   :  { %s4243_s18 = scalar_lea.vmem %s3455_s23, 1024  ;;  %p4248_p1 = scmp.lt.s32.totalorder %s3455_s23, %s3455_s23 }
 0x48c   :  { %3894 = vmatpush1.bf16.msra.mxu1 %v3893_v11  ;;  %p4244_p0 = scmp.ne.s32.totalorder %s3455_s23, %s4243_s18  ;;  %p4249_p2 = scmp.lt.s32.totalorder %s4243_s18, %s4243_s18 }
 0x48d   :  { %3896 = vmatprep.subr.bf16.mxu1 %v3895_v63 }
 0x48e   :  { %p4250_p3 = por %p4249_p2, %p4248_p1 }
 0x490   :  { %3898 = vmatpush1.bf16.msra.mxu1 %v3897_v2  ;;  %p4251_p4 = pnand %p4250_p3, %p4244_p0 }
 0x53e   :  { %v3680_v9 = vpop.f32.mrb[0].mxu0 }
 0x53f   :  { %v3681_v19 = vpop.f32.mrb[1].mxu0 }
 0x540   :  { %v3682_v25 = vadd.f32 %v3681_v19, %v3680_v9  ;;  %v3243_v19 = vpop.permute.xlu0 %3242 }
 0x542   :  { %v3075_v57 = vadd.f32 %v3682_v25, %v3007_v34 }
 0x544   :  { %v3561_v31 = vmul.f32 -1.442695, %v3075_v57  ;;  %v3253_v39 = vpop.permute.xlu0 %3252 }
 0x546   :  { %4199 = vpow2.f32 %v3561_v31 }
 0x550   :  { %v4200_v50 = vpop.eup %4199 }
 0x551   :  { %v3081_v56 = vadd.f32 1.0, %v4200_v50 }
 0x553   :  { %4201 = vrcp.f32 %v3081_v56 }
 0x55d   :  { %v4202_v17 = vpop.eup %4201 }
 0x55e   :  { %v3084_v54 = vmul.f32 %v4202_v17, %v3075_v57  ;;  %v3248_v17 = vpop.permute.xlu1 %3247 }
 0x560   :  { %3563 = vmatmul.mubr.msk.f32.vlgmr.msra.gmra.mrb[34].mxu1 %vm296_vm0, %v3084_v54 }
 0x633   :  { %v3183_v53 = vpop.f32.mrb[34].mxu1 }
 0x634   :  { %v3184_v59 = vadd.f32 %v3183_v53, %v3107_v23  ;;  %v3185_v1 = vpop.f32.mrb[35].mxu1 }
 0x635   :  { %v3186_v26 = vadd.f32 %v3185_v1, %v3111_v14 }
 0x636   :  { %v3564_v37 = vmul.f32 -1.442695, %v3184_v59 }
 0x637   :  { %v3565_v60 = vmul.f32 -1.442695, %v3186_v26  ;;  %v3258_v26 = vpop.permute.xlu1 %3257 }
 0x638   :  { %4203 = vpow2.f32 %v3564_v37 }
 0x639   :  { %4205 = vpow2.f32 %v3565_v60 }
 0x642   :  { %v4204_v41 = vpop.eup %4203 }
 0x643   :  { %v4206_v0 = vpop.eup %4205  ;;  %v3194_v61 = vadd.f32 1.0, %v4204_v41 }
 0x644   :  { %v3195_v20 = vadd.f32 1.0, %v4206_v0 }
 0x645   :  { %4207 = vrcp.f32 %v3194_v61 }
 0x646   :  { %4209 = vrcp.f32 %v3195_v20 }
 0x64f   :  { %v4208_v12 = vpop.eup %4207 }
 0x650   :  { %v4210_v8 = vpop.eup %4209  ;;  %v3219_v6 = vrot.slane %v4208_v12, %v3106_v33  ;;  %v3263_v12 = vpop.permute.xlu0 %3262 }
 0x651   :  { %v3223_v49 = vrot.slane %v4210_v8, %v3106_v33 }
 0x652   :  { %v3224_v7 = vmul.f32 %v3219_v6, %v3200_v40  ;;  %v3226_v55 = vmul.f32 %v3219_v6, %v3202_v35  ;;  %v3228_v10 = vmul.f32 %v3219_v6, %v3204_v16  ;;  %v3230_v28 = vmul.f32 %v3219_v6, %v3206_v36 }
 0x653   :  { %v3225_v29 = vmul.f32 %v3223_v49, %v3201_v5  ;;  %v3227_v24 = vmul.f32 %v3223_v49, %v3203_v51  ;;  %v3229_v46 = vmul.f32 %v3223_v49, %v3205_v27  ;;  %v3231_v38 = vmul.f32 %v3223_v49, %v3207_v44 }
 0x654   :  { %v3233_v48 = vmul.f32 %v3223_v49, %v3209_v52  ;;  %v3232_v15 = vmul.f32 %v3219_v6, %v3208_v47  ;;  %v3235_v32 = vmul.f32 %v3223_v49, %v3211_v13  ;;  %v3234_v43 = vmul.f32 %v3219_v6, %v3210_v3 }
 0x655   :  { %3344 = vmatprep.mubr.f32.mxu0 %v3225_v29  ;;  %v3237_v11 = vmul.f32 %v3223_v49, %v3213_v58  ;;  %v3236_v63 = vmul.f32 %v3219_v6, %v3212_v45  ;;  %v3239_v42 = vmul.f32 %v3223_v49, %v3215_v30  ;;  %v3238_v2 = vmul.f32 %v3219_v6, %v3214_v4 }
 0x656   :  { %3345 = vmatmul.mubr.f32.vlgmr.msra.gmra.mrb[2].mxu0 %v3224_v7  ;;  %v3268_v7 = vpop.permute.xlu1 %3267 }
 0x657   :  { %3349 = vmatprep.mubr.f32.mxu0 %v3227_v24 }
 0x65a   :  { %3350 = vmatmul.mubr.f32.gmra.mrb[4].mxu0 %v3226_v55 }
 0x65b   :  { %3354 = vmatprep.mubr.f32.mxu0 %v3229_v46 }
 0x65e   :  { %3355 = vmatmul.mubr.f32.gmra.mrb[6].mxu0 %v3228_v10  ;;  %v3273_v10 = vpop.permute.xlu0 %3272 }
 0x65f   :  { %3359 = vmatprep.mubr.f32.mxu0 %v3231_v38 }
 0x662   :  { %3360 = vmatmul.mubr.f32.gmra.mrb[8].mxu0 %v3230_v28 }
 0x663   :  { %3364 = vmatprep.mubr.f32.mxu0 %v3233_v48 }
 0x666   :  { %3365 = vmatmul.mubr.f32.gmra.mrb[10].mxu0 %v3232_v15 }
 0x667   :  { %3369 = vmatprep.mubr.f32.mxu0 %v3235_v32  ;;  %v3278_v32 = vpop.permute.xlu1 %3277 }
 0x66a   :  { %3370 = vmatmul.mubr.f32.gmra.mrb[12].mxu0 %v3234_v43 }
 0x66b   :  { %3374 = vmatprep.mubr.f32.mxu0 %v3237_v11 }
 0x66e   :  { %3375 = vmatmul.mubr.f32.gmra.mrb[14].mxu0 %v3236_v63 }
 0x66f   :  { %3379 = vmatprep.mubr.f32.mxu0 %v3239_v42 }
 0x672   :  { %3380 = vmatmul.mubr.f32.gmra.mrb[16].mxu0 %v3238_v2 }
 0x729   :  { %v3715_v18 = vpop.f32.mrb[2].mxu0 }
 0x72a   :  { %v3716_v9 = vpop.f32.mrb[3].mxu0 }
 0x72b   :  { %v3717_v34 = vadd.f32 %v3716_v9, %v3715_v18 }
 0x72d   :  { %v3347_v25 = vadd.f32 %v3717_v34, %v3243_v19  ;;  %v3718_v57 = vpop.f32.mrb[4].mxu0 }
 0x72e   :  { %v3719_v31 = vpop.f32.mrb[5].mxu0 }
 0x72f   :  { %v3566_v50 = vmul.f32 -1.442695, %v3347_v25  ;;  %v3720_v56 = vadd.f32 %v3719_v31, %v3718_v57 }
 0x731   :  { %4211 = vpow2.f32 %v3566_v50  ;;  %v3352_v54 = vadd.f32 %v3720_v56, %v3248_v17  ;;  %v3721_v22 = vpop.f32.mrb[6].mxu0 }
 0x732   :  { %v3722_v21 = vpop.f32.mrb[7].mxu0 }
 0x733   :  { %v3567_v33 = vmul.f32 -1.442695, %v3352_v54  ;;  %v3723_v62 = vadd.f32 %v3722_v21, %v3721_v22 }
 0x735   :  { %4213 = vpow2.f32 %v3567_v33  ;;  %v3357_v23 = vadd.f32 %v3723_v62, %v3253_v39  ;;  %v3724_v14 = vpop.f32.mrb[8].mxu0 }
 0x736   :  { %v3725_v53 = vpop.f32.mrb[9].mxu0 }
 0x737   :  { %v3568_v59 = vmul.f32 -1.442695, %v3357_v23  ;;  %v3726_v1 = vadd.f32 %v3725_v53, %v3724_v14 }
 0x739   :  { %4215 = vpow2.f32 %v3568_v59  ;;  %v3362_v37 = vadd.f32 %v3726_v1, %v3258_v26  ;;  %v3727_v60 = vpop.f32.mrb[10].mxu0 }
 0x73a   :  { %v3728_v41 = vpop.f32.mrb[11].mxu0 }
 0x73b   :  { %v4212_v0 = vpop.eup %4211  ;;  %v3569_v61 = vmul.f32 -1.442695, %v3362_v37  ;;  %v3729_v20 = vadd.f32 %v3728_v41, %v3727_v60 }
 0x73c   :  { %v3409_v8 = vadd.f32 1.0, %v4212_v0 }
 0x73d   :  { %4217 = vpow2.f32 %v3569_v61  ;;  %v3367_v6 = vadd.f32 %v3729_v20, %v3263_v12  ;;  %v3730_v5 = vpop.f32.mrb[12].mxu0 }
 0x73e   :  { %4219 = vrcp.f32 %v3409_v8  ;;  %v3731_v49 = vpop.f32.mrb[13].mxu0 }
 0x73f   :  { %v4214_v40 = vpop.eup %4213  ;;  %v3570_v51 = vmul.f32 -1.442695, %v3367_v6  ;;  %v3732_v29 = vadd.f32 %v3731_v49, %v3730_v5 }
 0x740   :  { %v3410_v24 = vadd.f32 1.0, %v4214_v40 }
 0x741   :  { %4221 = vpow2.f32 %v3570_v51  ;;  %v3372_v35 = vadd.f32 %v3732_v29, %v3268_v7  ;;  %v3733_v27 = vpop.f32.mrb[14].mxu0 }
 0x742   :  { %4223 = vrcp.f32 %v3410_v24  ;;  %v3734_v55 = vpop.f32.mrb[15].mxu0 }
 0x743   :  { %v4216_v46 = vpop.eup %4215  ;;  %v3571_v16 = vmul.f32 -1.442695, %v3372_v35  ;;  %v3735_v44 = vadd.f32 %v3734_v55, %v3733_v27 }
 0x744   :  { %v3411_v38 = vadd.f32 1.0, %v4216_v46 }
 0x745   :  { %4225 = vpow2.f32 %v3571_v16  ;;  %v3377_v36 = vadd.f32 %v3735_v44, %v3273_v10  ;;  %v3736_v52 = vpop.f32.mrb[16].mxu0 }
 0x746   :  { %4227 = vrcp.f32 %v3411_v38  ;;  %v3737_v28 = vpop.f32.mrb[17].mxu0 }
 0x747   :  { %v4218_v48 = vpop.eup %4217  ;;  %v3572_v47 = vmul.f32 -1.442695, %v3377_v36  ;;  %v3738_v13 = vadd.f32 %v3737_v28, %v3736_v52 }
 0x748   :  { %v4220_v15 = vpop.eup %4219  ;;  %v3412_v3 = vadd.f32 1.0, %v4218_v48 }
 0x749   :  { %v3433_v58 = vmul.f32 %v4220_v15, %v3347_v25  ;;  %4229 = vpow2.f32 %v3572_v47  ;;  %v3382_v43 = vadd.f32 %v3738_v13, %v3278_v32 }
 0x74a   :  { %4231 = vrcp.f32 %v3412_v3 }
 0x74b   :  { %v4222_v11 = vpop.eup %4221  ;;  %3441 = vst [vmem:[#allocation2] sm:$0xff] %v3433_v58  ;;  %v3573_v45 = vmul.f32 -1.442695, %v3382_v43 }
 0x74c   :  { %v4224_v30 = vpop.eup %4223  ;;  %v3413_v63 = vadd.f32 1.0, %v4222_v11 }
 0x74d   :  { %v3434_v42 = vmul.f32 %v4224_v30, %v3352_v54  ;;  %4233 = vpow2.f32 %v3573_v45 }
 0x74e   :  { %4235 = vrcp.f32 %v3413_v63 }
 0x74f   :  { %v4226_v4 = vpop.eup %4225  ;;  %3442 = vst [vmem:[#allocation2 + $0x8] sm:$0xff] %v3434_v42 }
 0x750   :  { %v4228_v2 = vpop.eup %4227  ;;  %v3414_v18 = vadd.f32 1.0, %v4226_v4 }
 0x751   :  { %v3435_v9 = vmul.f32 %v4228_v2, %v3357_v23 }
 0x752   :  { %4237 = vrcp.f32 %v3414_v18 }
 0x753   :  { %v4230_v34 = vpop.eup %4229  ;;  %3443 = vst [vmem:[#allocation2 + $0x10] sm:$0xff] %v3435_v9 }
 0x754   :  { %v4232_v19 = vpop.eup %4231  ;;  %v3415_v25 = vadd.f32 1.0, %v4230_v34 }
 0x755   :  { %v3436_v57 = vmul.f32 %v4232_v19, %v3362_v37 }
 0x756   :  { %4239 = vrcp.f32 %v3415_v25 }
 0x757   :  { %v4234_v31 = vpop.eup %4233  ;;  %3444 = vst [vmem:[#allocation2 + $0x18] sm:$0xff] %v3436_v57 }
 0x758   :  { %v4236_v50 = vpop.eup %4235  ;;  %v3416_v56 = vadd.f32 1.0, %v4234_v31 }
 0x759   :  { %v3437_v17 = vmul.f32 %v4236_v50, %v3367_v6 }
 0x75a   :  { %4241 = vrcp.f32 %v3416_v56 }
 0x75b   :  { %3445 = vst [vmem:[#allocation2 + $0x20] sm:$0xff] %v3437_v17 }
 0x75c   :  { %v4238_v54 = vpop.eup %4237 }
 0x75d   :  { %v3438_v22 = vmul.f32 %v4238_v54, %v3372_v35 }
 0x75f   :  { %3446 = vst [vmem:[#allocation2 + $0x28] sm:$0xff] %v3438_v22 }
 0x760   :  { %v4240_v21 = vpop.eup %4239 }
 0x761   :  { %v3439_v33 = vmul.f32 %v4240_v21, %v3377_v36 }
 0x763   :  { %3447 = vst [vmem:[#allocation2 + $0x30] sm:$0xff] %v3439_v33 }
 0x764   :  { %v4242_v62 = vpop.eup %4241 }
 0x765   :  { %v3440_v39 = vmul.f32 %v4242_v62, %v3382_v43 }
 0x767   :  { %3448 = vst [vmem:[#allocation2 + $0x38] sm:$0xff] %v3440_v39 }
 0x768   :  { %4254 = shalt.err (!%p4251_p4)
}
 0x769   :  { %s4255_s26 = scalar_lea.hbm %s7073_s6, 1024 }
 0x76a   :  { %p4256_p5 = scmp.ne.s32.totalorder %s7073_s6, %s4255_s26  ;;  %p4259_p6 = scmp.lt.u32.totalorder %s4255_s26, %s7073_s6 }
 0x76c   :  { %p4261_p7 = pnand %p4259_p6, %p4256_p5 }
 0x76e   :  { %4264 = shalt.err (!%p4261_p7)
}
 0x76f   :  { %s4275_s30 = smov 128   ;;  %s4276_s7 = smov 8  }
 0x770   :  { %3460 = dma.vmem_to_hbm [thread:$0]  %s3455_s23, 1024, %s7073_s6, [#allocation3], %s4275_s30, %s4275_s30, %s4276_s7  }
 0x771   :  { %4265 = dma.done.wait [#allocation3], 1024  }
 0x772   :  { %4266 = vsyncadd [#allocation3], 4294966272 }
 0x773   :  { %3464 = vsyncpa [#allocation3], 1 }

</bundles_post_ra>
